<compile_context>
chip_gen: v6e
topology: v6e:2x2x1
jax: 0.10.0
libtpu: 0.0.40
codegen_flags: <defaults>
</compile_context>

<pallas_src>
import functools

import jax
import jax.numpy as jnp
from jax import lax
from jax.experimental import pallas as pl
from jax.experimental.pallas import tpu as pltpu

C_IN = 3
C_FEAT = 32     # feat channels of the stand-in backbone (outA_pos / outB)
C_SIDE = 128    # side-branch channels (classifier_6 = Conv2d(128,128,3,pad=1))
K_TAPS = 9
EPS_COS = 1e-8  # nn.CosineSimilarity default eps


# ---------------------------------------------------------------------------
# Kernel 1: support branch = stand-in backbone (feat) + masked global pooling
# ---------------------------------------------------------------------------
def _support_kernel(patches_ref, mask_ref, wA_ref, bA_ref, vec_ref,
                    num_ref, den_ref):
    step = pl.program_id(0)

    @pl.when(step == 0)
    def _():
        num_ref[...] = jnp.zeros_like(num_ref)
        den_ref[...] = jnp.zeros_like(den_ref)

    # backbone feature tile: ReLU(patches @ wA + bA)   -> [TM, C_FEAT] f32
    feat = jnp.dot(patches_ref[...], wA_ref[...],
                   preferred_element_type=jnp.float32)
    feat = jnp.maximum(feat + bA_ref[...], 0.0)

    m = mask_ref[...]                                       # [1, TM] f32
    # masked pooling as an MXU matmul: [1,TM] @ [TM,C] -> [1,C]  (f32 accumulate)
    num_ref[...] += jnp.dot(m, feat, preferred_element_type=jnp.float32)
    den_ref[...] += jnp.sum(m, axis=1, keepdims=True)

    @pl.when(step == pl.num_programs(0) - 1)
    def _():
        den = jnp.maximum(den_ref[...], 1e-12)              # guard all-zero mask
        vec_ref[...] = num_ref[...] / den


def support_vec(patches, mask_row, wA, bA, *, tile_m):
    P = patches.shape[0]
    return pl.pallas_call(
        _support_kernel,
        out_shape=jax.ShapeDtypeStruct((1, C_FEAT), jnp.float32),
        grid_spec=pltpu.PrefetchScalarGridSpec(
            num_scalar_prefetch=0,
            grid=(P // tile_m,),
            in_specs=[
                pl.BlockSpec((tile_m, 9 * C_IN), lambda i: (i, 0)),
                pl.BlockSpec((1, tile_m), lambda i: (0, i)),
                pl.BlockSpec((9 * C_IN, C_FEAT), lambda i: (0, 0)),   # resident
                pl.BlockSpec((1, C_FEAT), lambda i: (0, 0)),          # resident
            ],
            out_specs=pl.BlockSpec((1, C_FEAT), lambda i: (0, 0)),
            scratch_shapes=[pltpu.VMEM((1, C_FEAT), jnp.float32),
                            pltpu.VMEM((1, 1), jnp.float32)],
        ),
        compiler_params=pltpu.CompilerParams(
            dimension_semantics=("arbitrary",)),
    )(patches, mask_row, wA, bA)


# ---------------------------------------------------------------------------
# Kernel 2: query branch = backbone (side|feat) + cosine gate + classifier_6
#           (3x3 conv as 9 shifted matmuls) + exit_layer 1x1 epilogue
# ---------------------------------------------------------------------------
def _query_kernel(patches_ref, valid_ref, vec_ref, wbb_ref, bbb_ref,
                  w6_ref, b6_ref, wE_ref, bE_ref, out_ref, *, th, we):
    i = pl.program_id(0)
    n_ext = (th + 2) * we + 8            # halo-extended rows for this tile
    n_out = th * we                      # output rows (includes 2 junk cols/row)
    start = pl.multiple_of(i * (th * we), 8)

    patches = patches_ref[pl.ds(start, n_ext), :]           # [n_ext, 27]  bf16
    vmask = valid_ref[pl.ds(start, n_ext), :]               # [n_ext, 1]   f32

    # fused stand-in backbone: one matmul produces  side(128) | feat(32)
    feats = jnp.dot(patches, wbb_ref[...],
                    preferred_element_type=jnp.float32) + bbb_ref[...]
    feats = jnp.maximum(feats, 0.0)                         # [n_ext, 160] f32
    side = feats[:, :C_SIDE]                                # [n_ext, 128]
    featB = feats[:, C_SIDE:C_SIDE + C_FEAT]                # [n_ext, 32]

    # cosine-similarity gate over channels (nn.CosineSimilarity, eps=1e-8)
    vec = vec_ref[...]                                      # [1, 32] f32
    dotv = jnp.sum(featB * vec, axis=1, keepdims=True)      # [n_ext, 1]
    nb2 = jnp.sum(featB * featB, axis=1, keepdims=True)
    nv2 = jnp.sum(vec * vec, axis=1, keepdims=True)         # [1, 1]
    cos = dotv * lax.rsqrt(jnp.maximum(nb2 * nv2, EPS_COS * EPS_COS))

    # gate the side features; zero halo / padding rows so the 3x3 conv below
    # sees proper zero padding
    exit_feat = side * cos * vmask                          # [n_ext, 128] f32

    # classifier_6: Conv2d(128,128,3,pad=1) + ReLU as 9 shifted matmuls.
    # exit_feat is flattened with row stride `we`; tap (dh,dw) is the
    # contiguous slice starting at dh*we + dw.
    acc = jnp.zeros((n_out, C_SIDE), jnp.float32)
    for t in range(K_TAPS):
        dh, dw = t // 3, t % 3
        off = dh * we + dw
        tap = exit_feat[off:off + n_out, :]
        acc = acc + jnp.dot(tap.astype(jnp.bfloat16), w6_ref[t],
                            preferred_element_type=jnp.float32)
    out6 = jnp.maximum(acc + b6_ref[...], 0.0)              # [n_out, 128]

    # exit_layer: Conv2d(128,2,kernel_size=1); its padding=1 border is bias-only
    # and is filled in the wrapper.
    out2 = jnp.dot(out6, wE_ref[...],
                   preferred_element_type=jnp.float32) + bE_ref[...]
    out_ref[...] = out2.astype(out_ref.dtype)


def query_head(patches_pad, valid, vec, wbb, bbb, w6, b6, wE, bE, *, H, W, th):
    we = W + 2
    n_rows_in = (H + 2) * we + 8
    kernel = functools.partial(_query_kernel, th=th, we=we)
    return pl.pallas_call(
        kernel,
        out_shape=jax.ShapeDtypeStruct((H * we, 2), jnp.float32),
        grid_spec=pltpu.PrefetchScalarGridSpec(
            num_scalar_prefetch=0,
            grid=(H // th,),
            in_specs=[
                pl.BlockSpec((n_rows_in, 9 * C_IN), lambda i: (0, 0)),   # resident
                pl.BlockSpec((n_rows_in, 1), lambda i: (0, 0)),          # resident
                pl.BlockSpec((1, C_FEAT), lambda i: (0, 0)),
                pl.BlockSpec((9 * C_IN, C_SIDE + C_FEAT), lambda i: (0, 0)),
                pl.BlockSpec((1, C_SIDE + C_FEAT), lambda i: (0, 0)),
                pl.BlockSpec((K_TAPS, C_SIDE, C_SIDE), lambda i: (0, 0, 0)),
                pl.BlockSpec((1, C_SIDE), lambda i: (0, 0)),
                pl.BlockSpec((C_SIDE, 2), lambda i: (0, 0)),
                pl.BlockSpec((1, 2), lambda i: (0, 0)),
            ],
            out_specs=pl.BlockSpec((th * we, 2), lambda i: (i, 0)),
        ),
        compiler_params=pltpu.CompilerParams(
            dimension_semantics=("parallel",)),
    )(patches_pad, valid, vec, wbb, bbb, w6, b6, wE, bE)


# ---------------------------------------------------------------------------
# JAX glue: layout / tiny 3-channel im2col for the stand-in backbone / params
# ---------------------------------------------------------------------------
def im2col_3x3(x_hwc):
    """3x3 / pad=1 patches of the 3-channel stand-in input: [H,W,C] -> [H,W,9C]."""
    H, W, C = x_hwc.shape
    xp = jnp.pad(x_hwc, ((1, 1), (1, 1), (0, 0)))
    cols = [xp[dh:dh + H, dw:dw + W, :] for dh in range(3) for dw in range(3)]
    return jnp.concatenate(cols, axis=-1)


def init_params(key):
    ks = jax.random.split(key, 8)
    s = 0.05
    return {
        # stand-in backbone: conv3x3 3->C_FEAT (main), conv3x3 3->C_SIDE (side)
        "wA": s * jax.random.normal(ks[0], (9 * C_IN, C_FEAT), jnp.float32),
        "bA": s * jax.random.normal(ks[1], (1, C_FEAT), jnp.float32),
        "wS": s * jax.random.normal(ks[2], (9 * C_IN, C_SIDE), jnp.float32),
        "bS": s * jax.random.normal(ks[3], (1, C_SIDE), jnp.float32),
        # classifier_6: Conv2d(128,128,3,pad=1) + ReLU   (tap-major layout)
        "w6": s * jax.random.normal(ks[4], (K_TAPS, C_SIDE, C_SIDE), jnp.float32),
        "b6": s * jax.random.normal(ks[5], (1, C_SIDE), jnp.float32),
        # exit_layer: Conv2d(128,2,kernel_size=1,padding=1)
        "wE": s * jax.random.normal(ks[6], (C_SIDE, 2), jnp.float32),
        "bE": s * jax.random.normal(ks[7], (1, 2), jnp.float32),
    }


def _p_tile(P):
    for t in (2048, 1024, 512, 256, 128):
        if P % t == 0 and (P // t) >= 2:
            return t
    return P


def _row_tile(H, max_rows=64):
    best, t = 1, 1
    while t <= min(H, max_rows):
        if H % t == 0 and (H // t) >= 2:
            best = t
        t *= 2
    return best


def oneshot_forward(support_img, support_mask, query_img, params):
    """support_img/query_img: [3,H,W]; support_mask: [1,H,W] -> [1,2,H+2,W+2]."""
    _, H, W = support_img.shape
    assert H % 8 == 0 and W % 8 == 0, "kernels assume H, W multiples of 8"
    we = W + 2
    P = H * W
    bf = jnp.bfloat16

    # ---- support branch: backbone feat + masked global average pooling -----
    sup_hwc = jnp.transpose(support_img, (1, 2, 0))
    patches_s = im2col_3x3(sup_hwc).reshape(P, 9 * C_IN).astype(bf)
    mask_row = support_mask.reshape(1, P).astype(jnp.float32)
    vec_pos = support_vec(patches_s, mask_row,
                          params["wA"].astype(bf), params["bA"],
                          tile_m=_p_tile(P))                       # [1, C_FEAT]
    # (bilinear interpolate of outA_pos to mask size is identity here -> skipped)

    # ---- query branch: backbone + cosine gate + classifier_6 + exit --------
    qry_hwc = jnp.transpose(query_img, (1, 2, 0))
    patches_q = im2col_3x3(qry_hwc)                                # [H, W, 27]
    pq = jnp.zeros((H + 2, we, 9 * C_IN), jnp.float32)
    pq = pq.at[1:H + 1, 1:W + 1, :].set(patches_q)
    pq = pq.reshape((H + 2) * we, 9 * C_IN)
    pq = jnp.concatenate([pq, jnp.zeros((8, 9 * C_IN), jnp.float32)], axis=0)
    pq = pq.astype(bf)                                             # [(H+2)*we+8, 27]
    valid = jnp.zeros((H + 2, we, 1), jnp.float32)
    valid = valid.at[1:H + 1, 1:W + 1, :].set(1.0)
    valid = valid.reshape((H + 2) * we, 1)
    valid = jnp.concatenate([valid, jnp.zeros((8, 1), jnp.float32)], axis=0)

    # concatenated backbone weight: side(128) first so in-kernel lane slices align
    wbb = jnp.concatenate([params["wS"], params["wA"]], axis=1).astype(bf)
    bbb = jnp.concatenate([params["bS"], params["bA"]], axis=1)

    th = _row_tile(H)
    out_ext = query_head(pq, valid, vec_pos, wbb, bbb,
                         params["w6"].astype(bf), params["b6"],
                         params["wE"], params["bE"],
                         H=H, W=W, th=th)                          # [H*we, 2]
    out_core = out_ext.reshape(H, we, 2)[:, :W, :]                 # [H, W, 2]

    # exit_layer has kernel_size=1, padding=1: the 1-pixel border is bias-only.
    out_full = jnp.broadcast_to(params["bE"].reshape(1, 1, 2), (H + 2, W + 2, 2))
    out_full = out_full.at[1:H + 1, 1:W + 1, :].set(out_core)
    return jnp.transpose(out_full, (2, 0, 1))[None]                # [1,2,H+2,W+2]


if __name__ == "__main__":
    key = jax.random.PRNGKey(0)
    k_img, k_q, k_params = jax.random.split(key, 3)

    H = W = 16
    support_img = jax.random.normal(k_img, (3, H, W), jnp.float32)
    query_img = jax.random.normal(k_q, (3, H, W), jnp.float32)
    # deterministic binary support mask: a centered square of ones
    support_mask = jnp.zeros((1, H, W), jnp.float32)
    support_mask = support_mask.at[:, 4:12, 4:12].set(1.0)

    params = init_params(k_params)

    fwd = jax.jit(oneshot_forward)
    out = fwd(support_img, support_mask, query_img, params)
    out = jax.block_until_ready(out)
    assert out.shape == (1, 2, H + 2, W + 2), out.shape
    assert bool(jnp.all(jnp.isfinite(out)))
    print("KERNEL_OK")
</pallas_src>

<mosaic_0001>
module attributes {stable_mosaic.version = 11 : i64} {
  func.func @_support_kernel(%arg0: i32, %arg1: memref<128x27xbf16, #tpu.memory_space<vmem>>, %arg2: memref<1x128xf32, #tpu.memory_space<vmem>>, %arg3: memref<27x32xbf16, #tpu.memory_space<vmem>>, %arg4: memref<1x32xf32, #tpu.memory_space<vmem>>, %arg5: memref<1x32xf32, #tpu.memory_space<vmem>>, %arg6: memref<1x32xf32, #tpu.memory_space<vmem>>, %arg7: memref<1x1xf32, #tpu.memory_space<vmem>>) attributes {dimension_semantics = [#tpu.dimension_semantics<arbitrary>], iteration_bounds = array<i64: 2>, scalar_prefetch = 0 : i64, scratch_operands = 2 : i64, tpu.core_type = #tpu.core_type<tc>, window_params = [{transform_indices = @transform_0, window_bounds = array<i64: 128, 27>}, {transform_indices = @transform_1, window_bounds = array<i64: 1, 128>}, {pipeline_mode = #tpu.pipeline_mode<synchronous>, transform_indices = @transform_2, window_bounds = array<i64: 27, 32>}, {pipeline_mode = #tpu.pipeline_mode<synchronous>, transform_indices = @transform_3, window_bounds = array<i64: 1, 32>}, {pipeline_mode = #tpu.pipeline_mode<synchronous>, transform_indices = @transform_4, window_bounds = array<i64: 1, 32>}]} {
    %c0_i32 = arith.constant 0 : i32
    %0 = arith.cmpi eq, %arg0, %c0_i32 : i32
    %1 = arith.extui %0 : i1 to i32
    %c0_i32_0 = arith.constant 0 : i32
    %2 = arith.cmpi ne, %1, %c0_i32_0 : i32
    scf.if %2 {
      %cst_20 = arith.constant 0.000000e+00 : f32
      %24 = vector.broadcast %cst_20 : f32 to vector<1x32xf32>
      %c0_21 = arith.constant 0 : index
      %c0_22 = arith.constant 0 : index
      %25 = vector.load %arg6[%c0_21, %c0_22] : memref<1x32xf32, #tpu.memory_space<vmem>>, vector<1x32xf32>
      tpu.vector_store %arg6[%c0_21, %c0_22], %24 {strides = array<i32>} : memref<1x32xf32, #tpu.memory_space<vmem>>, vector<1x32xf32>,
      %cst_23 = arith.constant 0.000000e+00 : f32
      %26 = vector.broadcast %cst_23 : f32 to vector<1x1xf32>
      %c0_24 = arith.constant 0 : index
      %c0_25 = arith.constant 0 : index
      %27 = vector.load %arg7[%c0_24, %c0_25] : memref<1x1xf32, #tpu.memory_space<vmem>>, vector<1x1xf32>
      tpu.vector_store %arg7[%c0_24, %c0_25], %26 {strides = array<i32>} : memref<1x1xf32, #tpu.memory_space<vmem>>, vector<1x1xf32>,
    } else {
    }
    %c0 = arith.constant 0 : index
    %c0_1 = arith.constant 0 : index
    %3 = vector.load %arg1[%c0, %c0_1] : memref<128x27xbf16, #tpu.memory_space<vmem>>, vector<128x27xbf16>
    %c0_2 = arith.constant 0 : index
    %c0_3 = arith.constant 0 : index
    %4 = vector.load %arg3[%c0_2, %c0_3] : memref<27x32xbf16, #tpu.memory_space<vmem>>, vector<27x32xbf16>
    %cst = arith.constant dense<0.000000e+00> : vector<128x32xf32>
    %5 = tpu.matmul %3, %4, %cst {dimension_numbers = #tpu.dot_dimension_numbers<[1], [0], [0], [1], [0, 0, 1, 1], [], []>} : vector<128x27xbf16>, vector<27x32xbf16>, vector<128x32xf32> -> vector<128x32xf32>
    %c0_4 = arith.constant 0 : index
    %c0_5 = arith.constant 0 : index
    %6 = vector.load %arg4[%c0_4, %c0_5] : memref<1x32xf32, #tpu.memory_space<vmem>>, vector<1x32xf32>
    %7 = vector.broadcast %6 : vector<1x32xf32> to vector<128x32xf32>
    %8 = arith.addf %5, %7 : vector<128x32xf32>
    %cst_6 = arith.constant 0.000000e+00 : f32
    %9 = vector.broadcast %cst_6 : f32 to vector<128x32xf32>
    %10 = arith.maximumf %8, %9 : vector<128x32xf32>
    %c0_7 = arith.constant 0 : index
    %c0_8 = arith.constant 0 : index
    %11 = vector.load %arg2[%c0_7, %c0_8] : memref<1x128xf32, #tpu.memory_space<vmem>>, vector<1x128xf32>
    %c0_9 = arith.constant 0 : index
    %c0_10 = arith.constant 0 : index
    %12 = vector.load %arg6[%c0_9, %c0_10] : memref<1x32xf32, #tpu.memory_space<vmem>>, vector<1x32xf32>
    %cst_11 = arith.constant dense<0.000000e+00> : vector<1x32xf32>
    %13 = tpu.matmul %11, %10, %cst_11 {dimension_numbers = #tpu.dot_dimension_numbers<[1], [0], [0], [1], [0, 0, 1, 1], [], []>} : vector<1x128xf32>, vector<128x32xf32>, vector<1x32xf32> -> vector<1x32xf32>
    %14 = arith.addf %12, %13 : vector<1x32xf32>
    %c0_12 = arith.constant 0 : index
    %c0_13 = arith.constant 0 : index
    %15 = vector.load %arg6[%c0_12, %c0_13] : memref<1x32xf32, #tpu.memory_space<vmem>>, vector<1x32xf32>
    tpu.vector_store %arg6[%c0_12, %c0_13], %14 {strides = array<i32>} : memref<1x32xf32, #tpu.memory_space<vmem>>, vector<1x32xf32>,
    %c0_14 = arith.constant 0 : index
    %c0_15 = arith.constant 0 : index
    %16 = vector.load %arg7[%c0_14, %c0_15] : memref<1x1xf32, #tpu.memory_space<vmem>>, vector<1x1xf32>
    %cst_16 = arith.constant dense<0.000000e+00> : vector<1xf32>
    %17 = vector.multi_reduction <add>, %11, %cst_16 [1] : vector<1x128xf32> to vector<1xf32>
    %18 = vector.shape_cast %17 : vector<1xf32> to vector<1x1xf32>
    %19 = arith.addf %16, %18 : vector<1x1xf32>
    %c0_17 = arith.constant 0 : index
    %c0_18 = arith.constant 0 : index
    %20 = vector.load %arg7[%c0_17, %c0_18] : memref<1x1xf32, #tpu.memory_space<vmem>>, vector<1x1xf32>
    tpu.vector_store %arg7[%c0_17, %c0_18], %19 {strides = array<i32>} : memref<1x1xf32, #tpu.memory_space<vmem>>, vector<1x1xf32>,
    %c1_i32 = arith.constant 1 : i32
    %21 = arith.cmpi eq, %arg0, %c1_i32 : i32
    %22 = arith.extui %21 : i1 to i32
    %c0_i32_19 = arith.constant 0 : i32
    %23 = arith.cmpi ne, %22, %c0_i32_19 : i32
    scf.if %23 {
      %c0_20 = arith.constant 0 : index
      %c0_21 = arith.constant 0 : index
      %24 = vector.load %arg7[%c0_20, %c0_21] : memref<1x1xf32, #tpu.memory_space<vmem>>, vector<1x1xf32>
      %cst_22 = arith.constant 9.99999996E-13 : f32
      %25 = vector.broadcast %cst_22 : f32 to vector<1x1xf32>
      %26 = arith.maximumf %24, %25 : vector<1x1xf32>
      %c0_23 = arith.constant 0 : index
      %c0_24 = arith.constant 0 : index
      %27 = vector.load %arg6[%c0_23, %c0_24] : memref<1x32xf32, #tpu.memory_space<vmem>>, vector<1x32xf32>
      %28 = vector.broadcast %26 : vector<1x1xf32> to vector<1x32xf32>
      %29 = arith.divf %27, %28 : vector<1x32xf32>
      %c0_25 = arith.constant 0 : index
      %c0_26 = arith.constant 0 : index
      %30 = vector.load %arg5[%c0_25, %c0_26] : memref<1x32xf32, #tpu.memory_space<vmem>>, vector<1x32xf32>
      tpu.vector_store %arg5[%c0_25, %c0_26], %29 {strides = array<i32>} : memref<1x32xf32, #tpu.memory_space<vmem>>, vector<1x32xf32>,
    } else {
    }
    return
  }
  func.func @transform_0(%arg0: i32) -> (i32, i32) {
    %c0_i32 = arith.constant 0 : i32
    %c0_i32_0 = arith.constant 0 : i32
    return %arg0, %c0_i32 : i32, i32
  }
  func.func @transform_1(%arg0: i32) -> (i32, i32) {
    %c0_i32 = arith.constant 0 : i32
    %c0_i32_0 = arith.constant 0 : i32
    return %c0_i32, %arg0 : i32, i32
  }
  func.func @transform_2(%arg0: i32) -> (i32, i32) {
    %c0_i32 = arith.constant 0 : i32
    %c0_i32_0 = arith.constant 0 : i32
    %c0_i32_1 = arith.constant 0 : i32
    return %c0_i32, %c0_i32_0 : i32, i32
  }
  func.func @transform_3(%arg0: i32) -> (i32, i32) {
    %c0_i32 = arith.constant 0 : i32
    %c0_i32_0 = arith.constant 0 : i32
    %c0_i32_1 = arith.constant 0 : i32
    return %c0_i32, %c0_i32_0 : i32, i32
  }
  func.func @transform_4(%arg0: i32) -> (i32, i32) {
    %c0_i32 = arith.constant 0 : i32
    %c0_i32_0 = arith.constant 0 : i32
    %c0_i32_1 = arith.constant 0 : i32
    return %c0_i32, %c0_i32_0 : i32, i32
  }
}

module attributes {stable_mosaic.version = 11 : i64} {
  func.func @_query_kernel(%arg0: i32, %arg1: memref<332x27xbf16, #tpu.memory_space<vmem>>, %arg2: memref<332x1xf32, #tpu.memory_space<vmem>>, %arg3: memref<1x32xf32, #tpu.memory_space<vmem>>, %arg4: memref<27x160xbf16, #tpu.memory_space<vmem>>, %arg5: memref<1x160xf32, #tpu.memory_space<vmem>>, %arg6: memref<9x128x128xbf16, #tpu.memory_space<vmem>>, %arg7: memref<1x128xf32, #tpu.memory_space<vmem>>, %arg8: memref<128x2xf32, #tpu.memory_space<vmem>>, %arg9: memref<1x2xf32, #tpu.memory_space<vmem>>, %arg10: memref<144x2xf32, #tpu.memory_space<vmem>>) attributes {dimension_semantics = [#tpu.dimension_semantics<parallel>], iteration_bounds = array<i64: 2>, scalar_prefetch = 0 : i64, scratch_operands = 0 : i64, tpu.core_type = #tpu.core_type<tc>, window_params = [{pipeline_mode = #tpu.pipeline_mode<synchronous>, transform_indices = @transform_0, window_bounds = array<i64: 332, 27>}, {pipeline_mode = #tpu.pipeline_mode<synchronous>, transform_indices = @transform_1, window_bounds = array<i64: 332, 1>}, {pipeline_mode = #tpu.pipeline_mode<synchronous>, transform_indices = @transform_2, window_bounds = array<i64: 1, 32>}, {pipeline_mode = #tpu.pipeline_mode<synchronous>, transform_indices = @transform_3, window_bounds = array<i64: 27, 160>}, {pipeline_mode = #tpu.pipeline_mode<synchronous>, transform_indices = @transform_4, window_bounds = array<i64: 1, 160>}, {pipeline_mode = #tpu.pipeline_mode<synchronous>, transform_indices = @transform_5, window_bounds = array<i64: 9, 128, 128>}, {pipeline_mode = #tpu.pipeline_mode<synchronous>, transform_indices = @transform_6, window_bounds = array<i64: 1, 128>}, {pipeline_mode = #tpu.pipeline_mode<synchronous>, transform_indices = @transform_7, window_bounds = array<i64: 128, 2>}, {pipeline_mode = #tpu.pipeline_mode<synchronous>, transform_indices = @transform_8, window_bounds = array<i64: 1, 2>}, {transform_indices = @transform_9, window_bounds = array<i64: 144, 2>}]} {
    %c144_i32 = arith.constant 144 : i32
    %0 = arith.muli %arg0, %c144_i32 : i32
    %1 = tpu.assume_multiple %0, 8 : i32
    %2 = arith.index_cast %1 : i32 to index
    %c0 = arith.constant 0 : index
    %3 = vector.load %arg1[%2, %c0] : memref<332x27xbf16, #tpu.memory_space<vmem>>, vector<188x27xbf16>
    %4 = arith.index_cast %1 : i32 to index
    %c0_0 = arith.constant 0 : index
    %5 = vector.load %arg2[%4, %c0_0] : memref<332x1xf32, #tpu.memory_space<vmem>>, vector<188x1xf32>
    %c0_1 = arith.constant 0 : index
    %c0_2 = arith.constant 0 : index
    %6 = vector.load %arg4[%c0_1, %c0_2] : memref<27x160xbf16, #tpu.memory_space<vmem>>, vector<27x160xbf16>
    %cst = arith.constant dense<0.000000e+00> : vector<188x160xf32>
    %7 = tpu.matmul %3, %6, %cst {dimension_numbers = #tpu.dot_dimension_numbers<[1], [0], [0], [1], [0, 0, 1, 1], [], []>} : vector<188x27xbf16>, vector<27x160xbf16>, vector<188x160xf32> -> vector<188x160xf32>
    %c0_3 = arith.constant 0 : index
    %c0_4 = arith.constant 0 : index
    %8 = vector.load %arg5[%c0_3, %c0_4] : memref<1x160xf32, #tpu.memory_space<vmem>>, vector<1x160xf32>
    %9 = vector.broadcast %8 : vector<1x160xf32> to vector<188x160xf32>
    %10 = arith.addf %7, %9 : vector<188x160xf32>
    %cst_5 = arith.constant 0.000000e+00 : f32
    %11 = vector.broadcast %cst_5 : f32 to vector<188x160xf32>
    %12 = arith.maximumf %10, %11 : vector<188x160xf32>
    %13 = vector.extract_strided_slice %12 {offsets = [0, 0], sizes = [188, 128], strides = [1, 1]} : vector<188x160xf32> to vector<188x128xf32>
    %14 = vector.extract_strided_slice %12 {offsets = [0, 128], sizes = [188, 32], strides = [1, 1]} : vector<188x160xf32> to vector<188x32xf32>
    %c0_6 = arith.constant 0 : index
    %c0_7 = arith.constant 0 : index
    %15 = vector.load %arg3[%c0_6, %c0_7] : memref<1x32xf32, #tpu.memory_space<vmem>>, vector<1x32xf32>
    %16 = vector.broadcast %15 : vector<1x32xf32> to vector<188x32xf32>
    %17 = arith.mulf %14, %16 : vector<188x32xf32>
    %cst_8 = arith.constant dense<0.000000e+00> : vector<188xf32>
    %18 = vector.multi_reduction <add>, %17, %cst_8 [1] : vector<188x32xf32> to vector<188xf32>
    %19 = vector.shape_cast %18 : vector<188xf32> to vector<188x1xf32>
    %20 = arith.mulf %14, %14 : vector<188x32xf32>
    %cst_9 = arith.constant dense<0.000000e+00> : vector<188xf32>
    %21 = vector.multi_reduction <add>, %20, %cst_9 [1] : vector<188x32xf32> to vector<188xf32>
    %22 = vector.shape_cast %21 : vector<188xf32> to vector<188x1xf32>
    %23 = arith.mulf %15, %15 : vector<1x32xf32>
    %cst_10 = arith.constant dense<0.000000e+00> : vector<1xf32>
    %24 = vector.multi_reduction <add>, %23, %cst_10 [1] : vector<1x32xf32> to vector<1xf32>
    %25 = vector.shape_cast %24 : vector<1xf32> to vector<1x1xf32>
    %26 = vector.broadcast %25 : vector<1x1xf32> to vector<188x1xf32>
    %27 = arith.mulf %22, %26 : vector<188x1xf32>
    %cst_11 = arith.constant 1.000000e-16 : f32
    %28 = vector.broadcast %cst_11 : f32 to vector<188x1xf32>
    %29 = arith.maximumf %27, %28 : vector<188x1xf32>
    %30 = math.rsqrt %29 : vector<188x1xf32>
    %31 = arith.mulf %19, %30 : vector<188x1xf32>
    %32 = vector.broadcast %31 : vector<188x1xf32> to vector<188x128xf32>
    %33 = arith.mulf %13, %32 : vector<188x128xf32>
    %34 = vector.broadcast %5 : vector<188x1xf32> to vector<188x128xf32>
    %35 = arith.mulf %33, %34 : vector<188x128xf32>
    %cst_12 = arith.constant 0.000000e+00 : f32
    %36 = vector.broadcast %cst_12 : f32 to vector<144x128xf32>
    %37 = vector.extract_strided_slice %35 {offsets = [0, 0], sizes = [144, 128], strides = [1, 1]} : vector<188x128xf32> to vector<144x128xf32>
    %38 = arith.truncf %37 : vector<144x128xf32> to vector<144x128xbf16>
    %c0_13 = arith.constant 0 : index
    %c0_14 = arith.constant 0 : index
    %c0_15 = arith.constant 0 : index
    %39 = vector.load %arg6[%c0_13, %c0_14, %c0_15] : memref<9x128x128xbf16, #tpu.memory_space<vmem>>, vector<1x128x128xbf16>
    %40 = vector.shape_cast %39 : vector<1x128x128xbf16> to vector<128x128xbf16>
    %cst_16 = arith.constant dense<0.000000e+00> : vector<144x128xf32>
    %41 = tpu.matmul %38, %40, %cst_16 {dimension_numbers = #tpu.dot_dimension_numbers<[1], [0], [0], [1], [0, 0, 1, 1], [], []>} : vector<144x128xbf16>, vector<128x128xbf16>, vector<144x128xf32> -> vector<144x128xf32>
    %42 = arith.addf %36, %41 : vector<144x128xf32>
    %43 = vector.extract_strided_slice %35 {offsets = [1, 0], sizes = [144, 128], strides = [1, 1]} : vector<188x128xf32> to vector<144x128xf32>
    %44 = arith.truncf %43 : vector<144x128xf32> to vector<144x128xbf16>
    %c1 = arith.constant 1 : index
    %c0_17 = arith.constant 0 : index
    %c0_18 = arith.constant 0 : index
    %45 = vector.load %arg6[%c1, %c0_17, %c0_18] : memref<9x128x128xbf16, #tpu.memory_space<vmem>>, vector<1x128x128xbf16>
    %46 = vector.shape_cast %45 : vector<1x128x128xbf16> to vector<128x128xbf16>
    %cst_19 = arith.constant dense<0.000000e+00> : vector<144x128xf32>
    %47 = tpu.matmul %44, %46, %cst_19 {dimension_numbers = #tpu.dot_dimension_numbers<[1], [0], [0], [1], [0, 0, 1, 1], [], []>} : vector<144x128xbf16>, vector<128x128xbf16>, vector<144x128xf32> -> vector<144x128xf32>
    %48 = arith.addf %42, %47 : vector<144x128xf32>
    %49 = vector.extract_strided_slice %35 {offsets = [2, 0], sizes = [144, 128], strides = [1, 1]} : vector<188x128xf32> to vector<144x128xf32>
    %50 = arith.truncf %49 : vector<144x128xf32> to vector<144x128xbf16>
    %c2 = arith.constant 2 : index
    %c0_20 = arith.constant 0 : index
    %c0_21 = arith.constant 0 : index
    %51 = vector.load %arg6[%c2, %c0_20, %c0_21] : memref<9x128x128xbf16, #tpu.memory_space<vmem>>, vector<1x128x128xbf16>
    %52 = vector.shape_cast %51 : vector<1x128x128xbf16> to vector<128x128xbf16>
    %cst_22 = arith.constant dense<0.000000e+00> : vector<144x128xf32>
    %53 = tpu.matmul %50, %52, %cst_22 {dimension_numbers = #tpu.dot_dimension_numbers<[1], [0], [0], [1], [0, 0, 1, 1], [], []>} : vector<144x128xbf16>, vector<128x128xbf16>, vector<144x128xf32> -> vector<144x128xf32>
    %54 = arith.addf %48, %53 : vector<144x128xf32>
    %55 = vector.extract_strided_slice %35 {offsets = [18, 0], sizes = [144, 128], strides = [1, 1]} : vector<188x128xf32> to vector<144x128xf32>
    %56 = arith.truncf %55 : vector<144x128xf32> to vector<144x128xbf16>
    %c3 = arith.constant 3 : index
    %c0_23 = arith.constant 0 : index
    %c0_24 = arith.constant 0 : index
    %57 = vector.load %arg6[%c3, %c0_23, %c0_24] : memref<9x128x128xbf16, #tpu.memory_space<vmem>>, vector<1x128x128xbf16>
    %58 = vector.shape_cast %57 : vector<1x128x128xbf16> to vector<128x128xbf16>
    %cst_25 = arith.constant dense<0.000000e+00> : vector<144x128xf32>
    %59 = tpu.matmul %56, %58, %cst_25 {dimension_numbers = #tpu.dot_dimension_numbers<[1], [0], [0], [1], [0, 0, 1, 1], [], []>} : vector<144x128xbf16>, vector<128x128xbf16>, vector<144x128xf32> -> vector<144x128xf32>
    %60 = arith.addf %54, %59 : vector<144x128xf32>
    %61 = vector.extract_strided_slice %35 {offsets = [19, 0], sizes = [144, 128], strides = [1, 1]} : vector<188x128xf32> to vector<144x128xf32>
    %62 = arith.truncf %61 : vector<144x128xf32> to vector<144x128xbf16>
    %c4 = arith.constant 4 : index
    %c0_26 = arith.constant 0 : index
    %c0_27 = arith.constant 0 : index
    %63 = vector.load %arg6[%c4, %c0_26, %c0_27] : memref<9x128x128xbf16, #tpu.memory_space<vmem>>, vector<1x128x128xbf16>
    %64 = vector.shape_cast %63 : vector<1x128x128xbf16> to vector<128x128xbf16>
    %cst_28 = arith.constant dense<0.000000e+00> : vector<144x128xf32>
    %65 = tpu.matmul %62, %64, %cst_28 {dimension_numbers = #tpu.dot_dimension_numbers<[1], [0], [0], [1], [0, 0, 1, 1], [], []>} : vector<144x128xbf16>, vector<128x128xbf16>, vector<144x128xf32> -> vector<144x128xf32>
    %66 = arith.addf %60, %65 : vector<144x128xf32>
    %67 = vector.extract_strided_slice %35 {offsets = [20, 0], sizes = [144, 128], strides = [1, 1]} : vector<188x128xf32> to vector<144x128xf32>
    %68 = arith.truncf %67 : vector<144x128xf32> to vector<144x128xbf16>
    %c5 = arith.constant 5 : index
    %c0_29 = arith.constant 0 : index
    %c0_30 = arith.constant 0 : index
    %69 = vector.load %arg6[%c5, %c0_29, %c0_30] : memref<9x128x128xbf16, #tpu.memory_space<vmem>>, vector<1x128x128xbf16>
    %70 = vector.shape_cast %69 : vector<1x128x128xbf16> to vector<128x128xbf16>
    %cst_31 = arith.constant dense<0.000000e+00> : vector<144x128xf32>
    %71 = tpu.matmul %68, %70, %cst_31 {dimension_numbers = #tpu.dot_dimension_numbers<[1], [0], [0], [1], [0, 0, 1, 1], [], []>} : vector<144x128xbf16>, vector<128x128xbf16>, vector<144x128xf32> -> vector<144x128xf32>
    %72 = arith.addf %66, %71 : vector<144x128xf32>
    %73 = vector.extract_strided_slice %35 {offsets = [36, 0], sizes = [144, 128], strides = [1, 1]} : vector<188x128xf32> to vector<144x128xf32>
    %74 = arith.truncf %73 : vector<144x128xf32> to vector<144x128xbf16>
    %c6 = arith.constant 6 : index
    %c0_32 = arith.constant 0 : index
    %c0_33 = arith.constant 0 : index
    %75 = vector.load %arg6[%c6, %c0_32, %c0_33] : memref<9x128x128xbf16, #tpu.memory_space<vmem>>, vector<1x128x128xbf16>
    %76 = vector.shape_cast %75 : vector<1x128x128xbf16> to vector<128x128xbf16>
    %cst_34 = arith.constant dense<0.000000e+00> : vector<144x128xf32>
    %77 = tpu.matmul %74, %76, %cst_34 {dimension_numbers = #tpu.dot_dimension_numbers<[1], [0], [0], [1], [0, 0, 1, 1], [], []>} : vector<144x128xbf16>, vector<128x128xbf16>, vector<144x128xf32> -> vector<144x128xf32>
    %78 = arith.addf %72, %77 : vector<144x128xf32>
    %79 = vector.extract_strided_slice %35 {offsets = [37, 0], sizes = [144, 128], strides = [1, 1]} : vector<188x128xf32> to vector<144x128xf32>
    %80 = arith.truncf %79 : vector<144x128xf32> to vector<144x128xbf16>
    %c7 = arith.constant 7 : index
    %c0_35 = arith.constant 0 : index
    %c0_36 = arith.constant 0 : index
    %81 = vector.load %arg6[%c7, %c0_35, %c0_36] : memref<9x128x128xbf16, #tpu.memory_space<vmem>>, vector<1x128x128xbf16>
    %82 = vector.shape_cast %81 : vector<1x128x128xbf16> to vector<128x128xbf16>
    %cst_37 = arith.constant dense<0.000000e+00> : vector<144x128xf32>
    %83 = tpu.matmul %80, %82, %cst_37 {dimension_numbers = #tpu.dot_dimension_numbers<[1], [0], [0], [1], [0, 0, 1, 1], [], []>} : vector<144x128xbf16>, vector<128x128xbf16>, vector<144x128xf32> -> vector<144x128xf32>
    %84 = arith.addf %78, %83 : vector<144x128xf32>
    %85 = vector.extract_strided_slice %35 {offsets = [38, 0], sizes = [144, 128], strides = [1, 1]} : vector<188x128xf32> to vector<144x128xf32>
    %86 = arith.truncf %85 : vector<144x128xf32> to vector<144x128xbf16>
    %c8 = arith.constant 8 : index
    %c0_38 = arith.constant 0 : index
    %c0_39 = arith.constant 0 : index
    %87 = vector.load %arg6[%c8, %c0_38, %c0_39] : memref<9x128x128xbf16, #tpu.memory_space<vmem>>, vector<1x128x128xbf16>
    %88 = vector.shape_cast %87 : vector<1x128x128xbf16> to vector<128x128xbf16>
    %cst_40 = arith.constant dense<0.000000e+00> : vector<144x128xf32>
    %89 = tpu.matmul %86, %88, %cst_40 {dimension_numbers = #tpu.dot_dimension_numbers<[1], [0], [0], [1], [0, 0, 1, 1], [], []>} : vector<144x128xbf16>, vector<128x128xbf16>, vector<144x128xf32> -> vector<144x128xf32>
    %90 = arith.addf %84, %89 : vector<144x128xf32>
    %c0_41 = arith.constant 0 : index
    %c0_42 = arith.constant 0 : index
    %91 = vector.load %arg7[%c0_41, %c0_42] : memref<1x128xf32, #tpu.memory_space<vmem>>, vector<1x128xf32>
    %92 = vector.broadcast %91 : vector<1x128xf32> to vector<144x128xf32>
    %93 = arith.addf %90, %92 : vector<144x128xf32>
    %cst_43 = arith.constant 0.000000e+00 : f32
    %94 = vector.broadcast %cst_43 : f32 to vector<144x128xf32>
    %95 = arith.maximumf %93, %94 : vector<144x128xf32>
    %c0_44 = arith.constant 0 : index
    %c0_45 = arith.constant 0 : index
    %96 = vector.load %arg8[%c0_44, %c0_45] : memref<128x2xf32, #tpu.memory_space<vmem>>, vector<128x2xf32>
    %cst_46 = arith.constant dense<0.000000e+00> : vector<144x2xf32>
    %97 = tpu.matmul %95, %96, %cst_46 {dimension_numbers = #tpu.dot_dimension_numbers<[1], [0], [0], [1], [0, 0, 1, 1], [], []>} : vector<144x128xf32>, vector<128x2xf32>, vector<144x2xf32> -> vector<144x2xf32>
    %c0_47 = arith.constant 0 : index
    %c0_48 = arith.constant 0 : index
    %98 = vector.load %arg9[%c0_47, %c0_48] : memref<1x2xf32, #tpu.memory_space<vmem>>, vector<1x2xf32>
    %99 = vector.broadcast %98 : vector<1x2xf32> to vector<144x2xf32>
    %100 = arith.addf %97, %99 : vector<144x2xf32>
    %c0_49 = arith.constant 0 : index
    %c0_50 = arith.constant 0 : index
    %101 = vector.load %arg10[%c0_49, %c0_50] : memref<144x2xf32, #tpu.memory_space<vmem>>, vector<144x2xf32>
    tpu.vector_store %arg10[%c0_49, %c0_50], %100 {strides = array<i32>} : memref<144x2xf32, #tpu.memory_space<vmem>>, vector<144x2xf32>,
    return
  }
  func.func @transform_0(%arg0: i32) -> (i32, i32) {
    %c0_i32 = arith.constant 0 : i32
    %c0_i32_0 = arith.constant 0 : i32
    %c0_i32_1 = arith.constant 0 : i32
    return %c0_i32, %c0_i32_0 : i32, i32
  }
  func.func @transform_1(%arg0: i32) -> (i32, i32) {
    %c0_i32 = arith.constant 0 : i32
    %c0_i32_0 = arith.constant 0 : i32
    %c0_i32_1 = arith.constant 0 : i32
    return %c0_i32, %c0_i32_0 : i32, i32
  }
  func.func @transform_2(%arg0: i32) -> (i32, i32) {
    %c0_i32 = arith.constant 0 : i32
    %c0_i32_0 = arith.constant 0 : i32
    %c0_i32_1 = arith.constant 0 : i32
    return %c0_i32, %c0_i32_0 : i32, i32
  }
  func.func @transform_3(%arg0: i32) -> (i32, i32) {
    %c0_i32 = arith.constant 0 : i32
    %c0_i32_0 = arith.constant 0 : i32
    %c0_i32_1 = arith.constant 0 : i32
    return %c0_i32, %c0_i32_0 : i32, i32
  }
  func.func @transform_4(%arg0: i32) -> (i32, i32) {
    %c0_i32 = arith.constant 0 : i32
    %c0_i32_0 = arith.constant 0 : i32
    %c0_i32_1 = arith.constant 0 : i32
    return %c0_i32, %c0_i32_0 : i32, i32
  }
  func.func @transform_5(%arg0: i32) -> (i32, i32, i32) {
    %c0_i32 = arith.constant 0 : i32
    %c0_i32_0 = arith.constant 0 : i32
    %c0_i32_1 = arith.constant 0 : i32
    %c0_i32_2 = arith.constant 0 : i32
    return %c0_i32, %c0_i32_0, %c0_i32_1 : i32, i32, i32
  }
  func.func @transform_6(%arg0: i32) -> (i32, i32) {
    %c0_i32 = arith.constant 0 : i32
    %c0_i32_0 = arith.constant 0 : i32
    %c0_i32_1 = arith.constant 0 : i32
    return %c0_i32, %c0_i32_0 : i32, i32
  }
  func.func @transform_7(%arg0: i32) -> (i32, i32) {
    %c0_i32 = arith.constant 0 : i32
    %c0_i32_0 = arith.constant 0 : i32
    %c0_i32_1 = arith.constant 0 : i32
    return %c0_i32, %c0_i32_0 : i32, i32
  }
  func.func @transform_8(%arg0: i32) -> (i32, i32) {
    %c0_i32 = arith.constant 0 : i32
    %c0_i32_0 = arith.constant 0 : i32
    %c0_i32_1 = arith.constant 0 : i32
    return %c0_i32, %c0_i32_0 : i32, i32
  }
  func.func @transform_9(%arg0: i32) -> (i32, i32) {
    %c0_i32 = arith.constant 0 : i32
    %c0_i32_0 = arith.constant 0 : i32
    return %arg0, %c0_i32 : i32, i32
  }
}

</mosaic_0001>

<bundles_post_ra>
// kernel: oneshot_forward.2
= control target key start
LH: loop header
LB: loop body
LE: loop exit
PB: predicated region body
PF: predicated region fallthrough
CT: control target
= control target key end

     0   :  { %s745_s15 = smov 0   ;;  %s836_s0 = inlined_call_operand.vmem [shape: bf16[256,27], index: 0, kind: input, shape index: {}]   ;;  %s837_s1 = inlined_call_operand.vmem [shape: f32[1,256], index: 1, kind: input, shape index: {}]   ;;  %s838_s2 = inlined_call_operand.vmem [shape: bf16[27,32], index: 2, kind: input, shape index: {}]   ;;  %s839_s3 = inlined_call_operand.vmem [shape: f32[1,32], index: 3, kind: input, shape index: {}]   ;;  %s840_s4 = inlined_call_operand.vmem [shape: f32[1,32], index: 4, kind: output, shape index: {}]  }
   0x1 LB: > { %s751_s16 = sadd.s32 4294967295, %s713_s15   ;;  %p573_p0 = scmp.ge.s32.totalorder %s713_s15, 1  ;;  %s713_s15 = sphi %s745_s15, %s14_s15  }
   0x2   : > { %p166_p1 = scmp.lt.s32.totalorder %s713_s15, 3 }
   0x4   : > { %p167_p2 = pnand %p573_p0, %p166_p1 }
   0x5   : > { %s574_s17 = sshll.u32 (!%p167_p2), %s751_s16, 4  ;;  %p196_p3 = scmp.lt.s32.totalorder (!%p167_p2), %s751_s16, 1 }
   0x6   : > { %170 = sbr.rel (%p167_p2) target bundleno = 631 (0x277), region = 36  ;;  %p191_p4 = scmp.lt.s32.totalorder (!%p167_p2), %s574_s17, 31 }
   0x7   : > { %p576_p5 = scmp.ne.s32.totalorder (!%p167_p2), %s751_s16, 0 }
   0xb   : > { %s758_s18 = scalar_select %p196_p3, %s751_s16, 1 }
   0xc   : > { %s842_s17 = smov (!%p191_p4, %s574_s17), 31  ;;  %203 = sbr.rel (%p576_p5) target bundleno = 20 (0x14), region = 40 }
   0xd   : > { %s198_s21 = scalar_lea.vmem %s837_s1, %s758_s18  ;;  %s575_s22 = sshll.u32 %s842_s17, 2 }
   0xe   : > { %s767_s25 = scalar_lea.vmem %s836_s0, %s575_s22 }
  0x11   : > { %vm204_vm0 = vcmask 253952   ;;  %vm206_vm1 = vcmask 0   ;;  %v715_v0 = vmov 0.0  }
  0x12   : > { %205 = vst.msk [vmem:[#allocation2] sm:$0x1] %vm204_vm0, %v715_v0 }
  0x13   : > { %207 = vst.msk [vmem:[#allocation3] sm:$0x1] %vm206_vm1, %v715_v0 }
  0x14 PF: > { %v694_v1 = vld [vmem:[%s838_s2 + $0x8] sm:$0x3f]   ;;  %vm311_vm2 = vcmask 1044480   ;;  %vm312_vm3 = vcmask 1045504   ;;  %v716_v2 = vmov 65535   ;;  %v696_v4 = vld [vmem:[%s767_s25] sm:$0xff]  }
  0x15   : > { %v313_v3 = vsel %vm311_vm2, 4294967295, %v716_v2  ;;  %vm286_vm4 = vcmask 220160   ;;  %v695_v7 = vld [vmem:[%s838_s2] sm:$0xff]   ;;  %v697_v8 = vld [vmem:[%s767_s25 + $0x8] sm:$0xff]   ;;  %v698_v9 = vld [vmem:[%s767_s25 + $0x10] sm:$0xff]   ;;  %v717_v15 = vmov 0.0  }
  0x16   : > { %v314_v5 = vsel %vm312_vm3, %v313_v3, 0  ;;  %630 = vmatprep.mubr.msk.bf16.mxu0 %vm286_vm4, %v696_v4  ;;  %v699_v10 = vld [vmem:[%s767_s25 + $0x18] sm:$0xff]   ;;  %v700_v11 = vld [vmem:[%s767_s25 + $0x20] sm:$0xff]   ;;  %v701_v12 = vld [vmem:[%s767_s25 + $0x28] sm:$0xff]   ;;  %646 = vmatprep.subr.mxu1 %v717_v15  ;;  %vm718_vm5 = vmmov 0   ;;  %vm507_vm6 = vcmask 1040384  }
  0x17   : > { %v316_v6 = vand.u32 %v694_v1, %v314_v5  ;;  %v702_v13 = vld [vmem:[%s767_s25 + $0x30] sm:$0xff]   ;;  %v703_v14 = vld [vmem:[%s767_s25 + $0x38] sm:$0xff]   ;;  %678 = vmatprep.mubr.msk.f32.mxu1 %vm718_vm5, %v717_v15  ;;  %v799_v16 = vld [vmem:[%s198_s21] sm:$0x1]  ;;  %vm512_vm7 = vcmask 0   ;;  %vm504_vm8 = vcmask 253952  }
  0x18   : > { %v508_v17 = vsel %vm507_vm6, %v799_v16, 0.0  ;;  %v577_v32 = vld [vmem:[%s839_s3] ss:$0 sm:$0xff]  ;;  %p596_p6 = scmp.ne.s32.totalorder %s751_s16, 1 }
  0x19   : > { %626 = vmatprep.subr.bf16.mxu0 %v316_v6  ;;  %509 = vadd.xlane.f32.xlu0 %v508_v17 }
  0x1a   : > { %627 = vmatpush3.bf16.msra.mxu0 %v316_v6  ;;  %v506_v3 = vld [vmem:[#allocation3] sm:$0x1]  ;;  %v432_v6 = vld [vmem:[#allocation2] sm:$0x1] }
  0x1b   : > { %628 = vmatprep.subr.bf16.mxu0 %v695_v7 }
  0x1e   : > { %629 = vmatpush3.bf16.msra.mxu0 %v695_v7 }
  0x21   : > { %631 = vmatmul.mubr.msk.bf16.vlgmr.msra.gmra.mxu0 %vm286_vm4, %v697_v8 }
  0x22   : > { %634 = vmatprep.mubr.msk.bf16.mxu0 %vm286_vm4, %v698_v9 }
  0x29   : > { %635 = vmatmul.mubr.msk.bf16.gmra.mxu0 %vm286_vm4, %v699_v10 }
  0x2a   : > { %638 = vmatprep.mubr.msk.bf16.mxu0 %vm286_vm4, %v700_v11 }
  0x31   : > { %639 = vmatmul.mubr.msk.bf16.gmra.mxu0 %vm286_vm4, %v701_v12 }
  0x32   : > { %642 = vmatprep.mubr.msk.bf16.mxu0 %vm286_vm4, %v702_v13 }
  0x39   : > { %643 = vmatmul.mubr.msk.bf16.gmra.mxu0 %vm286_vm4, %v703_v14 }
  0xa2   : > { %v510_v4 = vpop.xlane.xlu0 %509 }
  0xa3   : > { %v511_v5 = vadd.f32 %v510_v4, %v506_v3 }
  0xa5   : > { %513 = vst.msk [vmem:[#allocation3] sm:$0x1] %vm512_vm7, %v511_v5 }
  0xe1   : > { %v632_v18 = vpop.f32.mrf.mxu0 }
  0xe2   : > { %v361_v59 = vadd.f32 %v632_v18, %v577_v32 }
  0xe3   : > { %v802_v19 = vpop.f32.mrf.mxu0 }
  0xe4   : > { %v417_v63 = vmax.f32 %v361_v59, 0.0  ;;  %v353_v0 = vadd.f32 %v577_v32, %v802_v19 }
  0xe5   : > { %v633_v20 = vpop.f32.mrf.mxu0 }
  0xe6   : > { %v364_v57 = vadd.f32 %v633_v20, %v577_v32  ;;  %v415_v2 = vmax.f32 %v353_v0, 0.0 }
  0xe7   : > { %v804_v21 = vpop.f32.mrf.mxu0 }
  0xe8   : > { %v418_v61 = vmax.f32 %v364_v57, 0.0  ;;  %v356_v62 = vadd.f32 %v577_v32, %v804_v21 }
  0xe9   : > { %v636_v22 = vpop.f32.mrf.mxu0 }
  0xea   : > { %v377_v51 = vadd.f32 %v636_v22, %v577_v32  ;;  %v416_v1 = vmax.f32 %v356_v62, 0.0 }
  0xeb   : > { %v368_v23 = vpop.f32.mrf.mxu0 }
  0xec   : > { %v421_v55 = vmax.f32 %v377_v51, 0.0  ;;  %v369_v56 = vadd.f32 %v577_v32, %v368_v23 }
  0xed   : > { %v637_v24 = vpop.f32.mrf.mxu0 }
  0xee   : > { %v380_v49 = vadd.f32 %v637_v24, %v577_v32  ;;  %v419_v60 = vmax.f32 %v369_v56, 0.0 }
  0xef   : > { %v371_v25 = vpop.f32.mrf.mxu0 }
  0xf0   : > { %v422_v53 = vmax.f32 %v380_v49, 0.0  ;;  %v372_v54 = vadd.f32 %v577_v32, %v371_v25 }
  0xf1   : > { %v640_v26 = vpop.f32.mrf.mxu0 }
  0xf2   : > { %v393_v43 = vadd.f32 %v640_v26, %v577_v32  ;;  %v420_v58 = vmax.f32 %v372_v54, 0.0 }
  0xf3   : > { %v384_v27 = vpop.f32.mrf.mxu0 }
  0xf4   : > { %v425_v47 = vmax.f32 %v393_v43, 0.0  ;;  %v385_v48 = vadd.f32 %v577_v32, %v384_v27 }
  0xf5   : > { %v641_v28 = vpop.f32.mrf.mxu0 }
  0xf6   : > { %v396_v41 = vadd.f32 %v641_v28, %v577_v32  ;;  %v423_v52 = vmax.f32 %v385_v48, 0.0 }
  0xf7   : > { %v387_v29 = vpop.f32.mrf.mxu0 }
  0xf8   : > { %v426_v45 = vmax.f32 %v396_v41, 0.0  ;;  %v388_v46 = vadd.f32 %v577_v32, %v387_v29 }
  0xf9   : > { %v644_v30 = vpop.f32.mrf.mxu0 }
  0xfa   : > { %v409_v34 = vadd.f32 %v644_v30, %v577_v32  ;;  %v424_v50 = vmax.f32 %v388_v46, 0.0 }
  0xfb   : > { %v400_v31 = vpop.f32.mrf.mxu0 }
  0xfc   : > { %v429_v39 = vmax.f32 %v409_v34, 0.0  ;;  %v401_v40 = vadd.f32 %v577_v32, %v400_v31 }
  0xfd   : > { %v645_v33 = vpop.f32.mrf.mxu0 }
  0xfe   : > { %v412_v35 = vadd.f32 %v645_v33, %v577_v32  ;;  %v427_v44 = vmax.f32 %v401_v40, 0.0 }
  0xff   : > { %v403_v36 = vpop.f32.mrf.mxu0 }
 0x100   : > { %v430_v37 = vmax.f32 %v412_v35, 0.0  ;;  %v404_v38 = vadd.f32 %v577_v32, %v403_v36 }
 0x102   : > { %647 = vmatpush3.msra.mxu1 %v430_v37  ;;  %v428_v42 = vmax.f32 %v404_v38, 0.0 }
 0x103   : > { %648 = vmatprep.subr.mxu1 %v717_v15 }
 0x104   : > { %649 = vmatpush3.msra.mxu1 %v429_v39 }
 0x105   : > { %650 = vmatprep.subr.mxu1 %v717_v15 }
 0x106   : > { %651 = vmatpush3.msra.mxu1 %v428_v42 }
 0x107   : > { %652 = vmatprep.subr.mxu1 %v717_v15 }
 0x108   : > { %653 = vmatpush3.msra.mxu1 %v427_v44 }
 0x109   : > { %654 = vmatprep.subr.mxu1 %v717_v15 }
 0x10a   : > { %655 = vmatpush3.msra.mxu1 %v426_v45 }
 0x10b   : > { %656 = vmatprep.subr.mxu1 %v717_v15 }
 0x10c   : > { %657 = vmatpush3.msra.mxu1 %v425_v47 }
 0x10d   : > { %658 = vmatprep.subr.mxu1 %v717_v15 }
 0x10e   : > { %659 = vmatpush3.msra.mxu1 %v424_v50 }
 0x10f   : > { %660 = vmatprep.subr.mxu1 %v717_v15 }
 0x110   : > { %661 = vmatpush3.msra.mxu1 %v423_v52 }
 0x111   : > { %662 = vmatprep.subr.mxu1 %v717_v15 }
 0x112   : > { %663 = vmatpush3.msra.mxu1 %v422_v53 }
 0x113   : > { %664 = vmatprep.subr.mxu1 %v717_v15 }
 0x114   : > { %665 = vmatpush3.msra.mxu1 %v421_v55 }
 0x115   : > { %666 = vmatprep.subr.mxu1 %v717_v15 }
 0x116   : > { %667 = vmatpush3.msra.mxu1 %v420_v58 }
 0x117   : > { %668 = vmatprep.subr.mxu1 %v717_v15 }
 0x118   : > { %669 = vmatpush3.msra.mxu1 %v419_v60 }
 0x119   : > { %670 = vmatprep.subr.mxu1 %v717_v15 }
 0x11a   : > { %671 = vmatpush3.msra.mxu1 %v418_v61 }
 0x11b   : > { %672 = vmatprep.subr.mxu1 %v717_v15 }
 0x11c   : > { %673 = vmatpush3.msra.mxu1 %v417_v63 }
 0x11d   : > { %674 = vmatprep.subr.mxu1 %v717_v15 }
 0x11e   : > { %675 = vmatpush3.msra.mxu1 %v416_v1 }
 0x11f   : > { %676 = vmatprep.subr.mxu1 %v717_v15 }
 0x120   : > { %677 = vmatpush3.msra.mxu1 %v415_v2 }
 0x121   : > { %679 = vmatmul.mubr.f32.vlgmr.msra.gmra.mxu1 %v799_v16 }
 0x1e0   : > { %517 = sbr.rel (%p596_p6) target bundleno = 631 (0x277), region = 44 }
 0x1e1   : > { %v499_v7 = vpop.f32.mrf.mxu1 }
 0x1e2   : > { %v503_v8 = vadd.f32 %v499_v7, %v432_v6 }
 0x1e3   : > { %v680_v9 = vpop.f32.mrf.mxu1 }
 0x1e4   : > { %505 = vst.msk [vmem:[#allocation2] sm:$0x1] %vm504_vm8, %v503_v8 }
 0x1e5   : > { %v518_v10 = vld [vmem:[#allocation3] sm:$0x1]  ;;  %v719_v11 = vmov 0   ;;  %v526_v13 = vlaneseq }
 0x1e6   : > { %704 = vset.pattern.permute.xlu0 %v719_v11  ;;  %v519_v12 = vmax.f32 %v518_v10, 1e-12 }
 0x1e7   : > { %v527_v14 = vshrl.u32 %v526_v13, 7 }
 0x1e8   : > { %523 = vperm.xlu0 %704, %v519_v12  }
 0x1e9   : > { %v528_v15 = vsub.s32 0, %v527_v14 }
 0x1eb   : > { %v520_v18 = vld [vmem:[#allocation2] sm:$0x1] }
 0x263   : > { %v524_v16 = vpop.permute.xlu0 %523 }
 0x264   : > { %v529_v17 = vrot.slane %v524_v16, %v528_v15 }
 0x266   : > { %705 = vrcp.f32 %v529_v17 }
 0x273   : > { %v706_v19 = vpop.eup %705 }
 0x274   : > { %v531_v20 = vmul.f32 %v706_v19, %v520_v18 }
 0x276   : > { %532 = vst.msk [vmem:[%s840_s4] sm:$0x1] %vm504_vm8, %v531_v20 }
 0x277 PF: > { %s14_s15 = sadd.s32 1, %s713_s15  }
 0x278   : > { %p11_p7 = scmp.ge.s32.totalorder %s14_s15, 4  }
 0x27a   :  { %13 = sbr.rel (!%p11_p7) target bundleno = 1 (0x1), region = 73 }

// kernel: oneshot_forward.3
= control target key start
LH: loop header
LB: loop body
LE: loop exit
PB: predicated region body
PF: predicated region fallthrough
CT: control target
= control target key end

     0   :  { %s4630_s30 = smov 0   ;;  %s6303_s0 = inlined_call_operand.vmem [shape: bf16[332,27], index: 0, kind: input, shape index: {}]   ;;  %s6304_s1 = inlined_call_operand.vmem [shape: f32[332,1], index: 1, kind: input, shape index: {}]   ;;  %s6305_s2 = inlined_call_operand.vmem [shape: f32[1,32], index: 2, kind: input, shape index: {}]   ;;  %s6306_s3 = inlined_call_operand.vmem [shape: bf16[27,160], index: 3, kind: input, shape index: {}]   ;;  %s6307_s4 = inlined_call_operand.vmem [shape: f32[1,160], index: 4, kind: input, shape index: {}]   ;;  %s6308_s5 = inlined_call_operand.vmem [shape: bf16[9,128,128], index: 5, kind: input, shape index: {}]   ;;  %s6309_s6 = inlined_call_operand.vmem [shape: f32[1,128], index: 6, kind: input, shape index: {}]   ;;  %s6310_s7 = inlined_call_operand.vmem [shape: f32[128,2], index: 7, kind: input, shape index: {}]   ;;  %s6311_s8 = inlined_call_operand.vmem [shape: f32[1,2], index: 8, kind: input, shape index: {}]   ;;  %s6312_s9 = inlined_call_operand.vmem [shape: f32[288,2], index: 9, kind: output, shape index: {}]  }
   0x1 LB: > { %s3434_s10 = sadd.s32 4294967295, %s4574_s30   ;;  %p3437_p0 = scmp.ge.s32.totalorder %s4574_s30, 1  ;;  %s4574_s30 = sphi %s4630_s30, %s19_s30  }
   0x2   : > { %p277_p1 = scmp.lt.s32.totalorder %s4574_s30, 3 }
   0x4   : > { %p278_p2 = pnand %p3437_p0, %p277_p1 }
   0x6   : > { %281 = sbr.rel (%p278_p2) target bundleno = 1231 (0x4cf), region = 56 }
   0xb   : > { %v4432_v0 = vld [vmem:[%s6306_s3 + $0x14] ss:$8 sps:$4 sm:$0x3f]   ;;  %vm499_vm0 = vcmask 1044480   ;;  %vm500_vm1 = vcmask 1045504   ;;  %v4576_v2 = vmov 65535   ;;  %v374_v30 = vlaneseq }
   0xc   : > { %v4434_v1 = vld [vmem:[%s6306_s3 + $0x10] ss:$8 sps:$4 sm:$0x3f]   ;;  %v501_v3 = vsel %vm499_vm0, 4294967295, %v4576_v2  ;;  %v4577_v5 = vmov 0   ;;  %s315_s15 = smul.u32 144, %s3434_s10 }
   0xd   : > { %v502_v4 = vsel %vm500_vm1, %v501_v3, 0  ;;  %541 = vmatprep.mubr.bf16.mxu0 %v4577_v5  ;;  %4430 = vset.pattern.permute.xlu1 %v4577_v5  ;;  %v4435_v8 = vld [vmem:[%s6306_s3 + $0x4] ss:$8 sps:$4 sm:$0xff]   ;;  %v4437_v10 = vld [vmem:[%s6306_s3] ss:$8 sps:$4 sm:$0xff]   ;;  %vm462_vm2 = vcmask 220160  }
   0xe   : > { %v507_v6 = vand.u32 %v4432_v0, %v502_v4  ;;  %v504_v7 = vand.u32 %v4434_v1, %v502_v4  ;;  %4431 = vset.pattern.permute.xlu0 %v4577_v5  ;;  %s316_s18 = sshra.s32 %s315_s15, 3  ;;  %s4657_s21 = scalar_lea.vmem %s6304_s1, %s315_s15  ;;  %v706_v24 = vld [vmem:[%s6305_s2] sm:$0x1]  ;;  %vm899_vm3 = vcmask 253952   ;;  %v375_v31 = vshrl.u32 %v374_v30, 7 }
   0xf   : > { %s3439_s22 = sshll.u32 %s316_s18, 2  ;;  %v345_v9 = vld [vmem:[%s4657_s21] sm:$0xff]  ;;  %v347_v11 = vld [vmem:[%s4657_s21 + $0x10] sm:$0xff]  ;;  %v348_v13 = vld [vmem:[%s4657_s21 + $0x18] sm:$0xff]  ;;  %v898_v25 = vmul.f32 %v706_v24, %v706_v24  ;;  %vm736_vm4 = vcmask 261120   ;;  %vm4579_vm5 = vmmov 0  }
  0x10   : > { %521 = vmatprep.subr.bf16.mxu0 %v507_v6  ;;  %s4666_s27 = scalar_lea.vmem %s6303_s0, %s3439_s22  ;;  %1024 = vperm.xlu1 %4430, %v345_v9   ;;  %v349_v14 = vld [vmem:[%s4657_s21 + $0x20] sm:$0xff]  ;;  %v351_v16 = vld [vmem:[%s4657_s21 + $0x30] sm:$0xff]  ;;  %v380_v32 = vsub.s32 1, %v375_v31  ;;  %v4720_v36 = vsub.s32 0, %v375_v31  ;;  %vm1622_vm6 = vcmask 1046528   ;;  %vm3367_vm10 = vcmask 15360  }
  0x11   : > { %522 = vmatpush1.bf16.msra.mxu0 %v504_v7  ;;  %v4438_v12 = vld [vmem:[%s4666_s27] sm:$0xff]   ;;  %v4439_v15 = vld [vmem:[%s4666_s27 + $0x8] sm:$0xff]   ;;  %v4440_v17 = vld [vmem:[%s4666_s27 + $0x10] sm:$0xff]   ;;  %v900_v27 = vsel %vm899_vm3, %v898_v25, 0.0  ;;  %vm1203_vm7 = vsmask.f32 7424 }
  0x12   : > { %523 = vmatprep.subr.bf16.mxu0 %v4435_v8  ;;  %v4441_v18 = vld [vmem:[%s4666_s27 + $0x18] sm:$0xff]   ;;  %v4442_v19 = vld [vmem:[%s4666_s27 + $0x20] sm:$0xff]   ;;  %v4443_v20 = vld [vmem:[%s4666_s27 + $0x28] sm:$0xff]   ;;  %901 = vadd.xlane.f32.xlu0 %v900_v27  ;;  %v4724_v39 = vrot.slane %v706_v24, %v4720_v36  ;;  %vm2037_vm8 = vsmask.f32 6400 }
  0x13   : > { %v4444_v21 = vld [vmem:[%s4666_s27 + $0x30] sm:$0xff]   ;;  %v4445_v22 = vld [vmem:[%s4666_s27 + $0x38] sm:$0xff]   ;;  %v4446_v23 = vld [vmem:[%s4666_s27 + $0x40] sm:$0xff]   ;;  %vm2699_vm9 = vsmask.f32 5376 }
  0x14   : > { %1034 = vperm.xlu1 %4430, %v347_v11   ;;  %v4447_v26 = vld [vmem:[%s4666_s27 + $0x48] sm:$0xff]   ;;  %v4448_v28 = vld [vmem:[%s4666_s27 + $0x50] sm:$0xff]   ;;  %v4449_v29 = vld [vmem:[%s4666_s27 + $0x58] sm:$0x3f]  }
  0x15   : > { %524 = vmatpush1.bf16.msra.mxu0 %v4437_v10  ;;  %v4713_v33 = vld [vmem:[%s6307_s4] sm:$0x3] }
  0x16   : > { %v4716_v34 = vrot.slane %v4713_v33, %v380_v32 }
  0x18   : > { %3456 = vmatmul.mubr.msk.bf16.vlgmr.msra.gmra.mxu0 %vm462_vm2, %v4438_v12  ;;  %1039 = vperm.xlu1 %4430, %v348_v13  }
  0x19   : > { %551 = vmatprep.mubr.bf16.mxu0 %v4577_v5 }
  0x1c   : > { %1044 = vperm.xlu1 %4430, %v349_v14  }
  0x20   : > { %3457 = vmatmul.mubr.msk.bf16.gmra.mxu0 %vm462_vm2, %v4439_v15  ;;  %1054 = vperm.xlu1 %4430, %v351_v16  }
  0x21   : > { %561 = vmatprep.mubr.bf16.mxu0 %v4577_v5 }
  0x28   : > { %3458 = vmatmul.mubr.msk.bf16.gmra.mxu0 %vm462_vm2, %v4440_v17 }
  0x29   : > { %571 = vmatprep.mubr.bf16.mxu0 %v4577_v5 }
  0x30   : > { %3459 = vmatmul.mubr.msk.bf16.gmra.mxu0 %vm462_vm2, %v4441_v18 }
  0x31   : > { %581 = vmatprep.mubr.bf16.mxu0 %v4577_v5 }
  0x38   : > { %3460 = vmatmul.mubr.msk.bf16.gmra.mxu0 %vm462_vm2, %v4442_v19 }
  0x39   : > { %591 = vmatprep.mubr.bf16.mxu0 %v4577_v5 }
  0x40   : > { %3461 = vmatmul.mubr.msk.bf16.gmra.mxu0 %vm462_vm2, %v4443_v20 }
  0x41   : > { %601 = vmatprep.mubr.bf16.mxu0 %v4577_v5 }
  0x48   : > { %3462 = vmatmul.mubr.msk.bf16.gmra.mxu0 %vm462_vm2, %v4444_v21 }
  0x49   : > { %611 = vmatprep.mubr.bf16.mxu0 %v4577_v5 }
  0x50   : > { %3463 = vmatmul.mubr.msk.bf16.gmra.mxu0 %vm462_vm2, %v4445_v22 }
  0x51   : > { %621 = vmatprep.mubr.bf16.mxu0 %v4577_v5 }
  0x58   : > { %3464 = vmatmul.mubr.msk.bf16.gmra.mxu0 %vm462_vm2, %v4446_v23 }
  0x59   : > { %631 = vmatprep.mubr.bf16.mxu0 %v4577_v5 }
  0x60   : > { %3465 = vmatmul.mubr.msk.bf16.gmra.mxu0 %vm462_vm2, %v4447_v26 }
  0x61   : > { %641 = vmatprep.mubr.bf16.mxu0 %v4577_v5 }
  0x68   : > { %3466 = vmatmul.mubr.msk.bf16.gmra.mxu0 %vm462_vm2, %v4448_v28 }
  0x69   : > { %651 = vmatprep.mubr.bf16.mxu0 %v4577_v5 }
  0x70   : > { %3467 = vmatmul.mubr.msk.bf16.gmra.mxu0 %vm462_vm2, %v4449_v29 }
  0xd8   : > { %v4718_v35 = vpop.f32.mrf.mxu0 }
  0xda   : > { %v545_v37 = vpop.f32.mrf.mxu0 }
  0xdb   : > { %v546_v38 = vadd.f32 %v545_v37, %v4716_v34 }
  0xdc   : > { %v4726_v40 = vpop.f32.mrf.mxu0 }
  0xdd   : > { %v661_v41 = vmax.f32 %v546_v38, 0.0 }
  0xde   : > { %v549_v42 = vpop.f32.mrf.mxu0 }
  0xdf   : > { %v550_v43 = vadd.f32 %v549_v42, %v4716_v34  ;;  %v806_v44 = vmul.f32 %v661_v41, %v661_v41  ;;  %v713_v45 = vmul.f32 %v4724_v39, %v661_v41 }
  0xe0   : > { %v4730_v46 = vpop.f32.mrf.mxu0 }
  0xe1   : > { %v663_v47 = vmax.f32 %v550_v43, 0.0  ;;  %v829_v48 = vsel %vm736_vm4, %v806_v44, 0.0  ;;  %v737_v49 = vsel %vm736_vm4, %v713_v45, 0.0 }
  0xe2   : > { %v555_v50 = vpop.f32.mrf.mxu0  ;;  %830 = vadd.xlane.f32.xlu0 %v829_v48  ;;  %738 = vadd.xlane.f32.xlu1 %v737_v49 }
  0xe3   : > { %v556_v51 = vadd.f32 %v555_v50, %v4716_v34  ;;  %v714_v52 = vmul.f32 %v4724_v39, %v663_v47  ;;  %v807_v53 = vmul.f32 %v663_v47, %v663_v47 }
  0xe4   : > { %v4736_v54 = vpop.f32.mrf.mxu0 }
  0xe5   : > { %v665_v55 = vmax.f32 %v556_v51, 0.0  ;;  %v740_v56 = vsel %vm736_vm4, %v714_v52, 0.0  ;;  %v832_v57 = vsel %vm736_vm4, %v807_v53, 0.0 }
  0xe6   : > { %v559_v58 = vpop.f32.mrf.mxu0  ;;  %741 = vadd.xlane.f32.xlu0 %v740_v56  ;;  %833 = vadd.xlane.f32.xlu1 %v832_v57 }
  0xe7   : > { %v560_v59 = vadd.f32 %v559_v58, %v4716_v34  ;;  %v808_v60 = vmul.f32 %v665_v55, %v665_v55  ;;  %v715_v0 = vmul.f32 %v4724_v39, %v665_v55 }
  0xe8   : > { %v4741_v61 = vpop.f32.mrf.mxu0 }
  0xe9   : > { %v667_v62 = vmax.f32 %v560_v59, 0.0  ;;  %v835_v63 = vsel %vm736_vm4, %v808_v60, 0.0  ;;  %v743_v7 = vsel %vm736_vm4, %v715_v0, 0.0 }
  0xea   : > { %v565_v1 = vpop.f32.mrf.mxu0  ;;  %836 = vadd.xlane.f32.xlu1 %v835_v63 }
  0xeb   : > { %v566_v2 = vadd.f32 %v565_v1, %v4716_v34  ;;  %v809_v3 = vmul.f32 %v667_v62, %v667_v62  ;;  %v716_v8 = vmul.f32 %v4724_v39, %v667_v62 }
  0xec   : > { %v4746_v4 = vpop.f32.mrf.mxu0 }
  0xed   : > { %v669_v5 = vmax.f32 %v566_v2, 0.0  ;;  %v838_v6 = vsel %vm736_vm4, %v809_v3, 0.0  ;;  %v746_v14 = vsel %vm736_vm4, %v716_v8, 0.0 }
  0xee   : > { %v569_v9 = vpop.f32.mrf.mxu0  ;;  %839 = vadd.xlane.f32.xlu0 %v838_v6  ;;  %744 = vadd.xlane.f32.xlu1 %v743_v7 }
  0xef   : > { %v570_v10 = vadd.f32 %v569_v9, %v4716_v34  ;;  %v810_v11 = vmul.f32 %v669_v5, %v669_v5  ;;  %v717_v16 = vmul.f32 %v4724_v39, %v669_v5 }
  0xf0   : > { %v4752_v12 = vpop.f32.mrf.mxu0 }
  0xf1   : > { %v671_v13 = vmax.f32 %v570_v10, 0.0  ;;  %v841_v15 = vsel %vm736_vm4, %v810_v11, 0.0  ;;  %v749_v23 = vsel %vm736_vm4, %v717_v16, 0.0 }
  0xf2   : > { %v575_v17 = vpop.f32.mrf.mxu0  ;;  %747 = vadd.xlane.f32.xlu0 %v746_v14  ;;  %842 = vadd.xlane.f32.xlu1 %v841_v15 }
  0xf3   : > { %v576_v18 = vadd.f32 %v575_v17, %v4716_v34  ;;  %v811_v19 = vmul.f32 %v671_v13, %v671_v13  ;;  %v718_v24 = vmul.f32 %v4724_v39, %v671_v13 }
  0xf4   : > { %v4758_v20 = vpop.f32.mrf.mxu0 }
  0xf5   : > { %v673_v21 = vmax.f32 %v576_v18, 0.0  ;;  %v844_v22 = vsel %vm736_vm4, %v811_v19, 0.0  ;;  %v752_v30 = vsel %vm736_vm4, %v718_v24, 0.0 }
  0xf6   : > { %v579_v25 = vpop.f32.mrf.mxu0  ;;  %845 = vadd.xlane.f32.xlu0 %v844_v22  ;;  %750 = vadd.xlane.f32.xlu1 %v749_v23 }
  0xf7   : > { %v580_v26 = vadd.f32 %v579_v25, %v4716_v34  ;;  %v812_v27 = vmul.f32 %v673_v21, %v673_v21  ;;  %v719_v32 = vmul.f32 %v4724_v39, %v673_v21 }
  0xf8   : > { %v4764_v28 = vpop.f32.mrf.mxu0 }
  0xf9   : > { %v675_v29 = vmax.f32 %v580_v26, 0.0  ;;  %v847_v31 = vsel %vm736_vm4, %v812_v27, 0.0  ;;  %v755_v45 = vsel %vm736_vm4, %v719_v32, 0.0 }
  0xfa   : > { %v585_v37 = vpop.f32.mrf.mxu0  ;;  %753 = vadd.xlane.f32.xlu0 %v752_v30  ;;  %848 = vadd.xlane.f32.xlu1 %v847_v31 }
  0xfb   : > { %v586_v38 = vadd.f32 %v585_v37, %v4716_v34  ;;  %v813_v41 = vmul.f32 %v675_v29, %v675_v29  ;;  %v720_v47 = vmul.f32 %v4724_v39, %v675_v29 }
  0xfc   : > { %v4770_v42 = vpop.f32.mrf.mxu0 }
  0xfd   : > { %v677_v43 = vmax.f32 %v586_v38, 0.0  ;;  %v850_v44 = vsel %vm736_vm4, %v813_v41, 0.0  ;;  %v758_v52 = vsel %vm736_vm4, %v720_v47, 0.0 }
  0xfe   : > { %v589_v48 = vpop.f32.mrf.mxu0  ;;  %851 = vadd.xlane.f32.xlu0 %v850_v44  ;;  %756 = vadd.xlane.f32.xlu1 %v755_v45 }
  0xff   : > { %v590_v49 = vadd.f32 %v589_v48, %v4716_v34  ;;  %v814_v53 = vmul.f32 %v677_v43, %v677_v43  ;;  %v721_v62 = vmul.f32 %v4724_v39, %v677_v43 }
 0x100   : > { %v4776_v50 = vpop.f32.mrf.mxu0 }
 0x101   : > { %v679_v51 = vmax.f32 %v590_v49, 0.0  ;;  %v853_v60 = vsel %vm736_vm4, %v814_v53, 0.0  ;;  %v761_v6 = vsel %vm736_vm4, %v721_v62, 0.0 }
 0x102   : > { %v595_v55 = vpop.f32.mrf.mxu0  ;;  %759 = vadd.xlane.f32.xlu1 %v758_v52 }
 0x103   : > { %v815_v56 = vmul.f32 %v679_v51, %v679_v51  ;;  %v596_v58 = vadd.f32 %v595_v55, %v4716_v34  ;;  %v722_v2 = vmul.f32 %v4724_v39, %v679_v51 }
 0x104   : > { %v4779_v57 = vpop.f32.mrf.mxu0 }
 0x105   : > { %v856_v59 = vsel %vm736_vm4, %v815_v56, 0.0  ;;  %v681_v3 = vmax.f32 %v596_v58, 0.0  ;;  %v764_v10 = vsel %vm736_vm4, %v722_v2, 0.0  ;;  %v4450_v2 = vld [vmem:[%s6308_s5 + $0x38] sm:$0xff]  }
 0x106   : > { %v599_v63 = vpop.f32.mrf.mxu0  ;;  %857 = vadd.xlane.f32.xlu0 %v856_v59  ;;  %854 = vadd.xlane.f32.xlu1 %v853_v60 }
 0x107   : > { %v600_v0 = vadd.f32 %v599_v63, %v4716_v34  ;;  %v816_v15 = vmul.f32 %v681_v3, %v681_v3  ;;  %v723_v19 = vmul.f32 %v4724_v39, %v681_v3 }
 0x108   : > { %v4786_v1 = vpop.f32.mrf.mxu0 }
 0x109   : > { %v683_v5 = vmax.f32 %v600_v0, 0.0  ;;  %v859_v24 = vsel %vm736_vm4, %v816_v15, 0.0  ;;  %v767_v29 = vsel %vm736_vm4, %v723_v19, 0.0 }
 0x10a   : > { %v605_v7 = vpop.f32.mrf.mxu0  ;;  %762 = vadd.xlane.f32.xlu1 %v761_v6 }
 0x10b   : > { %v817_v8 = vmul.f32 %v683_v5, %v683_v5  ;;  %v606_v11 = vadd.f32 %v605_v7, %v4716_v34  ;;  %v724_v14 = vmul.f32 %v4724_v39, %v683_v5  ;;  %v6313_v7 = vmov 0.0  }
 0x10c   : > { %v4790_v9 = vpop.f32.mrf.mxu0  ;;  %3911 = vmatprep.subr.bf16.mxu0 %v6313_v7  ;;  %3859 = vmatprep.subr.bf16.mxu1 %v6313_v7 }
 0x10d   : > { %v862_v13 = vsel %vm736_vm4, %v817_v8, 0.0  ;;  %v685_v21 = vmax.f32 %v606_v11, 0.0  ;;  %v770_v23 = vsel %vm736_vm4, %v724_v14, 0.0  ;;  %3912 = vmatpush3.bf16.msra.mxu0 %v4450_v2  ;;  %v4451_v14 = vld [vmem:[%s6308_s5 + $0x30] sm:$0xff]   ;;  %v4463_v2 = vld [vmem:[%s6308_s5] sm:$0xff]   ;;  %3927 = vmatprep.mubr.msk.bf16.mxu0 %vm4579_vm5, %v6313_v7 }
 0x10e   : > { %v609_v16 = vpop.f32.mrf.mxu0  ;;  %863 = vadd.xlane.f32.xlu0 %v862_v13  ;;  %765 = vadd.xlane.f32.xlu1 %v764_v10 }
 0x10f   : > { %v610_v17 = vadd.f32 %v609_v16, %v4716_v34  ;;  %v818_v37 = vmul.f32 %v685_v21, %v685_v21  ;;  %v725_v44 = vmul.f32 %v4724_v39, %v685_v21  ;;  %3913 = vmatprep.subr.bf16.mxu0 %v6313_v7  ;;  %3875 = vmatprep.mubr.msk.bf16.mxu1 %vm4579_vm5, %v6313_v7 }
 0x110   : > { %v4797_v18 = vpop.f32.mrf.mxu0 }
 0x111   : > { %v687_v22 = vmax.f32 %v610_v17, 0.0  ;;  %v865_v49 = vsel %vm736_vm4, %v818_v37, 0.0  ;;  %v773_v59 = vsel %vm736_vm4, %v725_v44, 0.0  ;;  %3914 = vmatpush3.bf16.msra.mxu0 %v4451_v14  ;;  %v355_v14 = vld [vmem:[%s4657_s21 + $0x50] sm:$0xff] }
 0x112   : > { %v615_v25 = vpop.f32.mrf.mxu0  ;;  %771 = vadd.xlane.f32.xlu0 %v770_v23  ;;  %860 = vadd.xlane.f32.xlu1 %v859_v24  ;;  %v4452_v23 = vld [vmem:[%s6308_s5 + $0x78] sm:$0xff]  }
 0x113   : > { %v819_v26 = vmul.f32 %v687_v22, %v687_v22  ;;  %v616_v30 = vadd.f32 %v615_v25, %v4716_v34  ;;  %v726_v32 = vmul.f32 %v4724_v39, %v687_v22  ;;  %3915 = vmatprep.subr.bf16.mxu0 %v6313_v7  ;;  %v4453_v25 = vld [vmem:[%s6308_s5 + $0x28] sm:$0xff]   ;;  %3860 = vmatpush3.bf16.msra.mxu1 %v4452_v23  ;;  %v356_v23 = vld [vmem:[%s4657_s21 + $0x58] sm:$0xff] }
 0x114   : > { %v4802_v27 = vpop.f32.mrf.mxu0  ;;  %3861 = vmatprep.subr.bf16.mxu1 %v6313_v7 }
 0x115   : > { %v868_v31 = vsel %vm736_vm4, %v819_v26, 0.0  ;;  %v689_v45 = vmax.f32 %v616_v30, 0.0  ;;  %v776_v48 = vsel %vm736_vm4, %v726_v32, 0.0  ;;  %3916 = vmatpush3.bf16.msra.mxu0 %v4453_v25  ;;  %v4454_v32 = vld [vmem:[%s6308_s5 + $0x70] sm:$0xff]   ;;  %v4936_v25 = vpop.permute.xlu1 %1024 }
 0x116   : > { %v619_v38 = vpop.f32.mrf.mxu0  ;;  %869 = vadd.xlane.f32.xlu0 %v868_v31  ;;  %768 = vadd.xlane.f32.xlu1 %v767_v29 }
 0x117   : > { %v620_v41 = vadd.f32 %v619_v38, %v4716_v34  ;;  %v820_v60 = vmul.f32 %v689_v45, %v689_v45  ;;  %v727_v19 = vmul.f32 %v4724_v39, %v689_v45  ;;  %3917 = vmatprep.subr.bf16.mxu0 %v6313_v7  ;;  %v4455_v38 = vld [vmem:[%s6308_s5 + $0x20] sm:$0xff]   ;;  %3862 = vmatpush3.bf16.msra.mxu1 %v4454_v32 }
 0x118   : > { %v4809_v43 = vpop.f32.mrf.mxu0  ;;  %3863 = vmatprep.subr.bf16.mxu1 %v6313_v7 }
 0x119   : > { %v691_v47 = vmax.f32 %v620_v41, 0.0  ;;  %v871_v5 = vsel %vm736_vm4, %v820_v60, 0.0  ;;  %v779_v26 = vsel %vm736_vm4, %v727_v19, 0.0  ;;  %3918 = vmatpush3.bf16.msra.mxu0 %v4455_v38  ;;  %v4460_v60 = vld [vmem:[%s6308_s5 + $0x58] sm:$0xff]   ;;  %v354_v19 = vld [vmem:[%s4657_s21 + $0x48] sm:$0xff] }
 0x11a   : > { %v625_v51 = vpop.f32.mrf.mxu0  ;;  %777 = vadd.xlane.f32.xlu0 %v776_v48  ;;  %866 = vadd.xlane.f32.xlu1 %v865_v49  ;;  %v4457_v49 = vld [vmem:[%s6308_s5 + $0x18] sm:$0xff]  }
 0x11b   : > { %v626_v52 = vadd.f32 %v625_v51, %v4716_v34  ;;  %v821_v53 = vmul.f32 %v691_v47, %v691_v47  ;;  %v728_v30 = vmul.f32 %v4724_v39, %v691_v47  ;;  %v4456_v47 = vld [vmem:[%s6308_s5 + $0x68] sm:$0xff]   ;;  %3919 = vmatprep.subr.bf16.mxu0 %v6313_v7 }
 0x11c   : > { %v4815_v55 = vpop.f32.mrf.mxu0  ;;  %3864 = vmatpush3.bf16.msra.mxu1 %v4456_v47 }
 0x11d   : > { %v693_v56 = vmax.f32 %v626_v52, 0.0  ;;  %v874_v58 = vsel %vm736_vm4, %v821_v53, 0.0  ;;  %v782_v41 = vsel %vm736_vm4, %v728_v30, 0.0  ;;  %3865 = vmatprep.subr.bf16.mxu1 %v6313_v7  ;;  %3920 = vmatpush3.bf16.msra.mxu0 %v4457_v49  ;;  %v4458_v53 = vld [vmem:[%s6308_s5 + $0x60] sm:$0xff]  }
 0x11e   : > { %v629_v62 = vpop.f32.mrf.mxu0  ;;  %875 = vadd.xlane.f32.xlu0 %v874_v58  ;;  %774 = vadd.xlane.f32.xlu1 %v773_v59 }
 0x11f   : > { %v630_v63 = vadd.f32 %v629_v62, %v4716_v34  ;;  %v822_v6 = vmul.f32 %v693_v56, %v693_v56  ;;  %v729_v44 = vmul.f32 %v4724_v39, %v693_v56  ;;  %3921 = vmatprep.subr.bf16.mxu0 %v6313_v7  ;;  %v4459_v56 = vld [vmem:[%s6308_s5 + $0x10] sm:$0xff]   ;;  %v4461_v62 = vld [vmem:[%s6308_s5 + $0x8] sm:$0xff]  }
 0x120   : > { %v4820_v0 = vpop.f32.mrf.mxu0  ;;  %3866 = vmatpush3.bf16.msra.mxu1 %v4458_v53 }
 0x121   : > { %v4825_v3 = vmax.f32 %v630_v63, 0.0  ;;  %v877_v17 = vsel %vm736_vm4, %v822_v6, 0.0  ;;  %v785_v51 = vsel %vm736_vm4, %v729_v44, 0.0  ;;  %3867 = vmatprep.subr.bf16.mxu1 %v6313_v7  ;;  %3922 = vmatpush3.bf16.msra.mxu0 %v4459_v56  ;;  %v4462_v63 = vld [vmem:[%s6308_s5 + $0x50] sm:$0xff]   ;;  %v4464_v6 = vld [vmem:[%s6308_s5 + $0x48] sm:$0xff]  }
 0x122   : > { %v635_v8 = vpop.f32.mrf.mxu0  ;;  %872 = vadd.xlane.f32.xlu1 %v871_v5  ;;  %3923 = vmatprep.subr.bf16.mxu0 %v6313_v7  ;;  %v346_v5 = vld [vmem:[%s4657_s21 + $0x8] sm:$0xff] }
 0x123   : > { %v636_v10 = vadd.f32 %v635_v8, %v4716_v34  ;;  %v823_v11 = vmul.f32 %v4825_v3, %v4825_v3  ;;  %v353_v8 = vld [vmem:[%s4657_s21 + $0x40] sm:$0xff]  ;;  %v730_v56 = vmul.f32 %v4724_v39, %v4825_v3 }
 0x124   : > { %v4834_v13 = vpop.f32.mrf.mxu0  ;;  %3868 = vmatpush3.bf16.msra.mxu1 %v4460_v60 }
 0x125   : > { %v4839_v15 = vmax.f32 %v636_v10, 0.0  ;;  %v880_v16 = vsel %vm736_vm4, %v823_v11, 0.0  ;;  %3869 = vmatprep.subr.bf16.mxu1 %v6313_v7  ;;  %3924 = vmatpush3.bf16.msra.mxu0 %v4461_v62  ;;  %v350_v10 = vld [vmem:[%s4657_s21 + $0x28] sm:$0xff]  ;;  %v4465_v11 = vld [vmem:[%s6308_s5 + $0x40] sm:$0xff]  }
 0x126   : > { %881 = vadd.xlane.f32.xlu0 %v880_v16  ;;  %878 = vadd.xlane.f32.xlu1 %v877_v17  ;;  %v4844_v21 = vpop.f32.mrf.mxu0  ;;  %v352_v16 = vld [vmem:[%s4657_s21 + $0x38] sm:$0xff]  ;;  %v358_v17 = vld [vmem:[%s4657_s21 + $0x68] sm:$0xff] }
 0x127   : > { %v824_v22 = vmul.f32 %v4839_v15, %v4839_v15  ;;  %3925 = vmatprep.subr.bf16.mxu0 %v6313_v7  ;;  %v640_v53 = vadd.f32 %v4844_v21, %v4716_v34 }
 0x128   : > { %v4851_v24 = vpop.f32.mrf.mxu0  ;;  %3870 = vmatpush3.bf16.msra.mxu1 %v4462_v63  ;;  %v788_v63 = vsel %vm736_vm4, %v730_v56, 0.0 }
 0x129   : > { %v883_v29 = vsel %vm736_vm4, %v824_v22, 0.0  ;;  %3871 = vmatprep.subr.bf16.mxu1 %v6313_v7  ;;  %3926 = vmatpush3.bf16.msra.mxu0 %v4463_v2  ;;  %v360_v22 = vld [vmem:[%s4657_s21 + $0x78] sm:$0xff]  ;;  %v4961_v62 = vmax.f32 %v640_v53, 0.0 }
 0x12a   : > { %780 = vadd.xlane.f32.xlu0 %v779_v26  ;;  %884 = vadd.xlane.f32.xlu1 %v883_v29  ;;  %v4860_v31 = vpop.f32.mrf.mxu0  ;;  %v357_v26 = vld [vmem:[%s4657_s21 + $0x60] sm:$0xff]  ;;  %v4939_v29 = vpop.permute.xlu1 %1034 }
 0x12b   : > { %4015 = vmatprep.subr.bf16.mxu0 %v6313_v7  ;;  %v646_v44 = vadd.f32 %v4860_v31, %v4716_v34 }
 0x12c   : > { %v4866_v37 = vpop.f32.mrf.mxu0  ;;  %3872 = vmatpush3.bf16.msra.mxu1 %v4464_v6 }
 0x12d   : > { %6320 = vst [vmem:[#allocation2_spill] sm:$0xff] %v4866_v37  ;;  %3873 = vmatprep.subr.bf16.mxu1 %v6313_v7  ;;  %v701_v49 = vmax.f32 %v646_v44, 0.0  ;;  %v4982_v44 = vrot.slane %v4713_v33, %v4720_v36 }
 0x12e   : > { %783 = vadd.xlane.f32.xlu1 %v782_v41  ;;  %v4874_v45 = vpop.f32.mrf.mxu0  ;;  %v4941_v30 = vpop.permute.xlu1 %1039 }
 0x12f   : > { %v902_v41 = vpop.xlane.xlu0 %901  ;;  %v826_v60 = vmul.f32 %v701_v49, %v701_v49 }
 0x130   : > { %v4880_v48 = vpop.f32.mrf.mxu0  ;;  %3874 = vmatpush3.bf16.msra.mxu1 %v4465_v11  ;;  %v4964_v31 = vrot.slane %v902_v41, %v4720_v36 }
 0x131   : > { %6321 = vst [vmem:[#allocation3_spill] sm:$0xff] %v4880_v48  ;;  %3963 = vmatprep.subr.bf16.mxu1 %v6313_v7 }
 0x132   : > { %786 = vadd.xlane.f32.xlu1 %v785_v51  ;;  %v4887_v52 = vpop.f32.mrf.mxu0  ;;  %v4943_v32 = vpop.permute.xlu1 %1044 }
 0x134   : > { %v657_v58 = vpop.f32.mrf.mxu0 }
 0x135   : > { %v731_v58 = vmul.f32 %v4724_v39, %v4839_v15  ;;  %v889_v15 = vsel %vm736_vm4, %v826_v60, 0.0 }
 0x136   : > { %v658_v59 = vpop.f32.mrf.mxu0  ;;  %v4945_v38 = vpop.permute.xlu1 %1054 }
 0x137   : > { %v791_v2 = vsel %vm736_vm4, %v731_v58, 0.0 }
 0x140   : > { %1029 = vperm.xlu0 %4431, %v346_v5  }
 0x143   : > { %1064 = vperm.xlu1 %4430, %v353_v8   ;;  %v732_v8 = vmul.f32 %v4724_v39, %v4961_v62 }
 0x144   : > { %1049 = vperm.xlu0 %4431, %v350_v10  }
 0x147   : > { %1074 = vperm.xlu1 %4430, %v355_v14  }
 0x148   : > { %1059 = vperm.xlu0 %4431, %v352_v16   ;;  %v733_v16 = vmul.f32 %v4724_v39, %v701_v49  ;;  %v554_v49 = vadd.f32 %v4730_v46, %v4982_v44 }
 0x14a   : > { %v664_v33 = vmax.f32 %v554_v49, 0.0 }
 0x14b   : > { %1089 = vperm.xlu1 %4430, %v358_v17  }
 0x14c   : > { %1069 = vperm.xlu0 %4431, %v354_v19   ;;  %v794_v19 = vsel %vm736_vm4, %v732_v8, 0.0 }
 0x14f   : > { %1099 = vperm.xlu1 %4430, %v360_v22  }
 0x150   : > { %1079 = vperm.xlu0 %4431, %v356_v23   ;;  %v797_v23 = vsel %vm736_vm4, %v733_v16, 0.0 }
 0x154   : > { %1084 = vperm.xlu0 %4431, %v357_v26  }
 0x16b   : > { %v4949_v47 = vpop.xlane.xlu1 %738  ;;  %v4951_v51 = vpop.xlane.xlu0 %830 }
 0x16f   : > { %v4959_v59 = vpop.xlane.xlu1 %833  ;;  %v4968_v5 = vpop.xlane.xlu0 %741 }
 0x173   : > { %789 = vadd.xlane.f32.xlu0 %v788_v63  ;;  %792 = vadd.xlane.f32.xlu1 %v791_v2  ;;  %v837_v3 = vpop.xlane.xlu1 %836  ;;  %v558_v63 = vadd.f32 %v4736_v54, %v4982_v44 }
 0x174   : > { %v909_v21 = vmul.f32 %v4964_v31, %v837_v3 }
 0x175   : > { %v666_v46 = vmax.f32 %v558_v63, 0.0 }
 0x176   : > { %v932_v6 = vmax.f32 %v909_v21, 1e-16  ;;  %v359_v21 = vld [vmem:[%s4657_s21 + $0x70] sm:$0xff] }
 0x177   : > { %v840_v10 = vpop.xlane.xlu0 %839  ;;  %890 = vadd.xlane.f32.xlu1 %v889_v15  ;;  %v745_v11 = vpop.xlane.xlu1 %744 }
 0x178   : > { %4522 = vrsqrt.f32 %v932_v6  ;;  %v910_v14 = vmul.f32 %v4964_v31, %v840_v10 }
 0x17a   : > { %v933_v17 = vmax.f32 %v910_v14, 1e-16  ;;  %v361_v14 = vld [vmem:[%s4657_s21 + $0x80] sm:$0xff] }
 0x17b   : > { %795 = vadd.xlane.f32.xlu1 %v794_v19  ;;  %v843_v22 = vpop.xlane.xlu1 %842  ;;  %v748_v26 = vpop.xlane.xlu0 %747 }
 0x17c   : > { %4524 = vrsqrt.f32 %v933_v17 }
 0x17f   : > { %798 = vadd.xlane.f32.xlu1 %v797_v23  ;;  %v4978_v41 = vpop.xlane.xlu1 %750  ;;  %v846_v53 = vpop.xlane.xlu0 %845  ;;  %v362_v23 = vld [vmem:[%s4657_s21 + $0x88] sm:$0xff] }
 0x183   : > { %v849_v56 = vpop.xlane.xlu1 %848  ;;  %v4990_v6 = vpop.xlane.xlu0 %753 }
 0x184   : > { %v913_v58 = vmul.f32 %v4964_v31, %v849_v56 }
 0x185   : > { %v4523_v60 = vpop.eup %4522 }
 0x186   : > { %v978_v2 = vmul.f32 %v4523_v60, %v745_v11  ;;  %v936_v3 = vmax.f32 %v913_v58, 1e-16  ;;  %v365_v11 = vld [vmem:[%s4657_s21 + $0xa0] sm:$0xff]  ;;  %v363_v60 = vld [vmem:[%s4657_s21 + $0x90] sm:$0xff] }
 0x187   : > { %v757_v15 = vpop.xlane.xlu1 %756  ;;  %v852_v56 = vpop.xlane.xlu0 %851 }
 0x188   : > { %4526 = vrsqrt.f32 %v936_v3  ;;  %v1001_v8 = vmul.f32 %v978_v2, %v664_v33 }
 0x189   : > { %v4525_v36 = vpop.eup %4524  ;;  %1094 = vperm.xlu0 %4431, %v359_v21  }
 0x18a   : > { %v979_v10 = vmul.f32 %v4525_v36, %v748_v26  ;;  %v1139_v17 = vmul.f32 %v4939_v29, %v1001_v8  ;;  %v574_v26 = vadd.f32 %v4752_v12, %v4982_v44 }
 0x18b   : > { %v4993_v16 = vpop.xlane.xlu1 %759 }
 0x18c   : > { %v1002_v54 = vmul.f32 %v979_v10, %v666_v46  ;;  %v672_v36 = vmax.f32 %v574_v26, 0.0 }
 0x18d   : > { %1104 = vperm.xlu0 %4431, %v361_v14  }
 0x18e   : > { %v1140_v19 = vmul.f32 %v4941_v30, %v1002_v54 }
 0x18f   : > { %v855_v49 = vpop.xlane.xlu1 %854  ;;  %v858_v63 = vpop.xlane.xlu0 %857 }
 0x190   : > { %v4999_v58 = vpack.c.bf16 %v1140_v19, %v1139_v17  ;;  %1124 = vperm.xlu1 %4430, %v365_v11   ;;  %v907_v19 = vmul.f32 %v4964_v31, %v4951_v51  ;;  %v916_v10 = vmul.f32 %v4964_v31, %v858_v63  ;;  %v915_v7 = vmul.f32 %v4964_v31, %v855_v49 }
 0x191   : > { %1109 = vperm.xlu0 %4431, %v362_v23   ;;  %v911_v23 = vmul.f32 %v4964_v31, %v843_v22 }
 0x192   : > { %v6316_v3 = vshll.u32 %v4999_v58, 16  ;;  %v6315_v29 = vshrl.u32 %v4999_v58, 16 }
 0x193   : > { %v5004_v2 = vpop.xlane.xlu1 %762 }
 0x194   : > { %v5010_v30 = vrot.slane %v6316_v3, 2  ;;  %v5014_v33 = vrot.slane %v6315_v29, 1 }
 0x195   : > { %v4527_v21 = vpop.eup %4526  ;;  %1114 = vperm.xlu0 %4431, %v363_v60   ;;  %v930_v60 = vmax.f32 %v907_v19, 1e-16 }
 0x196   : > { %v982_v12 = vmul.f32 %v4527_v21, %v757_v15  ;;  %v908_v15 = vmul.f32 %v4964_v31, %v4959_v59  ;;  %v912_v21 = vmul.f32 %v4964_v31, %v846_v53  ;;  %v650_v53 = vadd.f32 %v4874_v45, %v4716_v34 }
 0x197   : > { %v864_v46 = vpop.xlane.xlu0 %863  ;;  %v5016_v8 = vpop.xlane.xlu1 %765  ;;  %4528 = vrsqrt.f32 %v930_v60  ;;  %v656_v45 = vadd.f32 %v4887_v52, %v4716_v34  ;;  %v825_v52 = vmul.f32 %v4961_v62, %v4961_v62  ;;  %v564_v62 = vadd.f32 %v4741_v61, %v4982_v44 }
 0x198   : > { %v1005_v14 = vmul.f32 %v982_v12, %v672_v36  ;;  %v934_v36 = vmax.f32 %v911_v23, 1e-16  ;;  %v935_v22 = vmax.f32 %v912_v21, 1e-16  ;;  %v918_v29 = vmul.f32 %v4964_v31, %v864_v46 }
 0x199   : > { %v5088_v61 = vadd.f32 %v4770_v42, %v4982_v44  ;;  %v5103_v42 = vadd.f32 %v4786_v1, %v4982_v44 }
 0x19a   : > { %v5021_v54 = vmul.f32 %v4945_v38, %v1005_v14  ;;  %v914_v38 = vmul.f32 %v4964_v31, %v852_v56  ;;  %v931_v14 = vmax.f32 %v908_v15, 1e-16  ;;  %4530 = vrsqrt.f32 %v934_v36 }
 0x19b   : > { %v5023_v11 = vpop.xlane.xlu0 %771  ;;  %v861_v17 = vpop.xlane.xlu1 %860  ;;  %v939_v56 = vmax.f32 %v916_v10, 1e-16  ;;  %v938_v15 = vmax.f32 %v915_v7, 1e-16  ;;  %v941_v46 = vmax.f32 %v918_v29, 1e-16 }
 0x19c   : > { %v937_v59 = vmax.f32 %v914_v38, 1e-16  ;;  %v917_v19 = vmul.f32 %v4964_v31, %v861_v17  ;;  %4532 = vrsqrt.f32 %v931_v14  ;;  %v5046_v36 = vmax.f32 %v650_v53, 0.0 }
 0x19d   : > { %4534 = vrsqrt.f32 %v935_v22  ;;  %v5053_v14 = vmax.f32 %v656_v45, 0.0  ;;  %v568_v45 = vadd.f32 %v4746_v4, %v4982_v44 }
 0x19e   : > { %4536 = vrsqrt.f32 %v937_v59  ;;  %v940_v21 = vmax.f32 %v917_v19, 1e-16  ;;  %v827_v29 = vmul.f32 %v5046_v36, %v5046_v36 }
 0x19f   : > { %v5030_v26 = vpop.xlane.xlu1 %768  ;;  %v870_v12 = vpop.xlane.xlu0 %869  ;;  %4538 = vrsqrt.f32 %v939_v56  ;;  %v735_v53 = vmul.f32 %v4724_v39, %v5053_v14 }
 0x1a0   : > { %v920_v23 = vmul.f32 %v4964_v31, %v870_v12  ;;  %4540 = vrsqrt.f32 %v938_v15  ;;  %v892_v19 = vsel %vm736_vm4, %v827_v29, 0.0  ;;  %v5098_v29 = vadd.f32 %v4779_v57, %v4982_v44 }
 0x1a1   : > { %4542 = vrsqrt.f32 %v941_v46  ;;  %v803_v4 = vsel %vm736_vm4, %v735_v53, 0.0 }
 0x1a2   : > { %v943_v10 = vmax.f32 %v920_v23, 1e-16  ;;  %4544 = vrsqrt.f32 %v940_v21  ;;  %v544_v23 = vadd.f32 %v4718_v35, %v4982_v44  ;;  %v886_v21 = vsel %vm736_vm4, %v825_v52, 0.0 }
 0x1a3   : > { %v867_v51 = vpop.xlane.xlu1 %866  ;;  %v5041_v63 = vpop.xlane.xlu0 %777  ;;  %v668_v52 = vmax.f32 %v564_v62, 0.0  ;;  %v678_v62 = vmax.f32 %v5088_v61, 0.0 }
 0x1a4   : > { %v919_v49 = vmul.f32 %v4964_v31, %v867_v51  ;;  %4546 = vrsqrt.f32 %v943_v10  ;;  %v4529_v22 = vpop.eup %4528  ;;  %v5079_v10 = vadd.f32 %v4758_v20, %v4982_v44  ;;  %v660_v20 = vmax.f32 %v544_v23, 0.0 }
 0x1a5   : > { %v976_v35 = vmul.f32 %v4529_v22, %v4949_v47  ;;  %v5094_v47 = vadd.f32 %v4776_v50, %v4982_v44  ;;  %v614_v50 = vadd.f32 %v4797_v18, %v4982_v44  ;;  %v682_v18 = vmax.f32 %v5098_v29, 0.0 }
 0x1a6   : > { %v942_v17 = vmax.f32 %v919_v49, 1e-16  ;;  %v548_v49 = vadd.f32 %v4726_v40, %v4982_v44  ;;  %v5084_v40 = vadd.f32 %v4764_v28, %v4982_v44 }
 0x1a7   : > { %v5044_v60 = vpop.xlane.xlu1 %774  ;;  %v5051_v12 = vpop.xlane.xlu0 %875  ;;  %v680_v3 = vmax.f32 %v5094_v47, 0.0  ;;  %v6322_v47 = vshll.u32 %v4999_v58, 16 }
 0x1a8   : > { %4548 = vrsqrt.f32 %v942_v17  ;;  %v4531_v56 = vpop.eup %4530  ;;  %v662_v53 = vmax.f32 %v548_v49, 0.0  ;;  %v676_v1 = vmax.f32 %v5084_v40, 0.0 }
 0x1a9   : > { %v4533_v15 = vpop.eup %4532  ;;  %v1214_v29 = vrot.slane %v6322_v47, 1 }
 0x1aa   : > { %v4535_v17 = vpop.eup %4534  ;;  %v977_v28 = vmul.f32 %v4533_v15, %v4968_v5  ;;  %v999_v5 = vmul.f32 %v976_v35, %v660_v20  ;;  %v674_v15 = vmax.f32 %v5079_v10, 0.0 }
 0x1ab   : > { %v873_v7 = vpop.xlane.xlu1 %872  ;;  %v981_v48 = vmul.f32 %v4535_v17, %v4990_v6 }
 0x1ac   : > { %v921_v38 = vmul.f32 %v4964_v31, %v873_v7  ;;  %v980_v7 = vmul.f32 %v4531_v56, %v4978_v41  ;;  %v5107_v41 = vadd.f32 %v4790_v9, %v4982_v44  ;;  %v670_v56 = vmax.f32 %v568_v45, 0.0 }
 0x1ad   : > { %v1000_v37 = vmul.f32 %v977_v28, %v662_v53  ;;  %v684_v45 = vmax.f32 %v5103_v42, 0.0  ;;  %v1137_v61 = vmul.f32 %v4936_v25, %v999_v5  ;;  %v4470_v42 = vld [vmem:[%s6308_s5 + $0xf8] sm:$0xff]  }
 0x1ae   : > { %v944_v51 = vmax.f32 %v921_v38, 1e-16  ;;  %v4537_v38 = vpop.eup %4536  ;;  %v1003_v9 = vmul.f32 %v980_v7, %v668_v52  ;;  %v686_v35 = vmax.f32 %v5107_v41, 0.0  ;;  %v1624_v41 = vrot.slane %v4999_v58, 1 }
 0x1af   : > { %v5057_v34 = vpop.xlane.xlu1 %878  ;;  %v5061_v59 = vpop.xlane.xlu0 %881  ;;  %v983_v17 = vmul.f32 %v4537_v38, %v4993_v16  ;;  %v1004_v53 = vmul.f32 %v981_v48, %v670_v56 }
 0x1b0   : > { %4550 = vrsqrt.f32 %v944_v51  ;;  %v4539_v51 = vpop.eup %4538  ;;  %v1141_v52 = vmul.f32 %v4943_v32, %v1003_v9  ;;  %v2285_v32 = vrot.slane %v4999_v58, 2 }
 0x1b1   : > { %v4541_v57 = vpop.eup %4540  ;;  %v985_v28 = vmul.f32 %v4539_v51, %v5016_v8  ;;  %v1006_v48 = vmul.f32 %v983_v17, %v674_v15 }
 0x1b2   : > { %v4543_v23 = vpop.eup %4542  ;;  %v984_v25 = vmul.f32 %v4541_v57, %v5004_v2  ;;  %v6323_v2 = vshrl.u32 %v4999_v58, 16 }
 0x1b3   : > { %v5072_v46 = vpop.xlane.xlu1 %884  ;;  %v781_v22 = vpop.xlane.xlu0 %780  ;;  %v987_v5 = vmul.f32 %v4543_v23, %v5023_v11  ;;  %v1008_v57 = vmul.f32 %v985_v28, %v678_v62  ;;  %v6324_v11 = vmov 0.0  }
 0x1b4   : > { %887 = vadd.xlane.f32.xlu0 %v886_v21  ;;  %893 = vadd.xlane.f32.xlu1 %v892_v19  ;;  %v4545_v21 = vpop.eup %4544  ;;  %v1007_v23 = vmul.f32 %v984_v25, %v676_v1 }
 0x1b5   : > { %v4547_v49 = vpop.eup %4546 }
 0x1b6   : > { %v4549_v40 = vpop.eup %4548  ;;  %v989_v16 = vmul.f32 %v4547_v49, %v5041_v63 }
 0x1b7   : > { %v5111_v19 = vpop.xlane.xlu1 %783  ;;  %v988_v51 = vmul.f32 %v4549_v40, %v5044_v60 }
 0x1b8   : > { %804 = vadd.xlane.f32.xlu1 %v803_v4  ;;  %v688_v4 = vmax.f32 %v614_v50, 0.0 }
 0x1b9   : > { %v5154_v28 = vmul.f32 %v988_v51, %v684_v45 }
 0x1bb   : > { %v1030_v10 = vpop.permute.xlu0 %1029  ;;  %v5121_v20 = vpop.xlane.xlu1 %786 }
 0x1bc   : > { %v1138_v7 = vmul.f32 %v1030_v10, %v1000_v37  ;;  %v986_v10 = vmul.f32 %v4545_v21, %v5030_v26  ;;  %v4471_v26 = vld [vmem:[%s6308_s5 + $0xf0] sm:$0xff]  }
 0x1bd   : > { %v4551_v6 = vpop.eup %4550 }
 0x1be   : > { %v990_v37 = vmul.f32 %v4551_v6, %v781_v22  ;;  %v1160_v50 = vpack.c.bf16 %v1138_v7, %v1137_v61  ;;  %v1218_v22 = vor.u32 %v6323_v2, %v1214_v29  ;;  %v1009_v62 = vmul.f32 %v986_v10, %v680_v3 }
 0x1bf   : > { %v1050_v8 = vpop.permute.xlu0 %1049  ;;  %v1065_v38 = vpop.permute.xlu1 %1064  ;;  %v1012_v61 = vmul.f32 %v989_v16, %v686_v35  ;;  %v1010_v7 = vmul.f32 %v987_v5, %v682_v18  ;;  %v364_v16 = vld [vmem:[%s4657_s21 + $0x98] sm:$0xff] }
 0x1c0   : > { %v1142_v9 = vmul.f32 %v1050_v8, %v1004_v53  ;;  %3928 = vmatmul.mubr.bf16.vlgmr.msra.gmra.mxu0 %v1160_v50  ;;  %v1207_v47 = vshll.u32 %v1160_v50, 16  ;;  %v5146_v63 = vmul.f32 %v990_v37, %v688_v4  ;;  %v1623_v60 = vrot.slane %v1160_v50, 1  ;;  %v367_v37 = vld [vmem:[%s4657_s21 + $0xb0] sm:$0xff] }
 0x1c1   : > { %3931 = vmatprep.mubr.msk.bf16.mxu0 %vm4579_vm5, %v6324_v11  ;;  %4016 = vmatpush3.bf16.msra.mxu0 %v4470_v42  ;;  %v1205_v21 = vshrl.u32 %v1160_v50, 16  ;;  %v1145_v1 = vmul.f32 %v1065_v38, %v1007_v23  ;;  %v4466_v50 = vld [vmem:[%s6308_s5 + $0xb8] sm:$0xff]  }
 0x1c2   : > { %v5148_v56 = vpack.c.bf16 %v1142_v9, %v1141_v52  ;;  %v1209_v49 = vrot.slane %v1207_v47, 1  ;;  %4017 = vmatprep.subr.bf16.mxu0 %v6324_v11  ;;  %v5152_v6 = vsel %vm1622_vm6, %v1623_v60, %v1624_v41  ;;  %v4467_v60 = vld [vmem:[%s6308_s5 + $0xb0] sm:$0xff]  }
 0x1c3   : > { %v1060_v15 = vpop.permute.xlu0 %1059  ;;  %v1075_v40 = vpop.permute.xlu1 %1074 }
 0x1c4   : > { %v1144_v17 = vmul.f32 %v1060_v15, %v1006_v48  ;;  %v1210_v4 = vor.u32 %v1209_v49, %v1205_v21  ;;  %v5157_v52 = vshll.u32 %v5148_v56, 16  ;;  %v1224_v42 = vshrl.u32 %v5148_v56, 16 }
 0x1c5   : > { %4018 = vmatpush3.bf16.msra.mxu0 %v4471_v26  ;;  %v1626_v3 = vrot.slane %v5148_v56, 1  ;;  %v2286_v35 = vrot.slane %v5148_v56, 2  ;;  %v1147_v5 = vmul.f32 %v1075_v40, %v1009_v62  ;;  %v6325_v62 = vor.u32 %v5010_v30, %v5014_v33  ;;  %v4474_v33 = vld [vmem:[%s6308_s5 + $0xe0] sm:$0xff]  }
 0x1c6   : > { %v5163_v18 = vpack.c.bf16 %v1144_v17, %v5021_v54  ;;  %v1215_v25 = vsel %vm1203_vm7, %v1210_v4, %v1214_v29  ;;  %v1222_v45 = vrot.slane %v5157_v52, 1  ;;  %4019 = vmatprep.subr.bf16.mxu0 %v6324_v11  ;;  %v2042_v53 = vrot.slane %v5157_v52, 2  ;;  %v4473_v54 = vld [vmem:[%s6308_s5 + $0xe8] sm:$0xff]  }
 0x1c7   : > { %v1070_v10 = vpop.permute.xlu0 %1069  ;;  %3876 = vmatmul.mubr.bf16.vlgmr.msra.gmra.mxu1 %v1215_v25  ;;  %v5178_v29 = vsel %vm1622_vm6, %v1624_v41, %v1626_v3  ;;  %v5181_v8 = vsel %vm500_vm1, %v2285_v32, %v2286_v35  ;;  %v2041_v38 = vrot.slane %v1224_v42, 1  ;;  %v2700_v2 = vrot.slane %v1224_v42, 2  ;;  %v1090_v48 = vpop.permute.xlu1 %1089 }
 0x1c8   : > { %v1146_v51 = vmul.f32 %v1070_v10, %v1008_v57  ;;  %3932 = vmatmul.mubr.bf16.gmra.mxu0 %v4999_v58  ;;  %3879 = vmatprep.mubr.msk.bf16.mxu1 %vm4579_vm5, %v6324_v11  ;;  %v1223_v9 = vsel %vm1203_vm7, %v1218_v22, %v1222_v45  ;;  %v5188_v47 = vshll.u32 %v5163_v18, 16  ;;  %v1226_v41 = vor.u32 %v1224_v42, %v1222_v45  ;;  %v4468_v45 = vld [vmem:[%s6308_s5 + $0xa8] sm:$0xff]  }
 0x1c9   : > { %1134 = vperm.xlu1 %4430, %v367_v37   ;;  %3935 = vmatprep.mubr.msk.bf16.mxu0 %vm4579_vm5, %v6324_v11  ;;  %v5193_v32 = vshrl.u32 %v5163_v18, 16  ;;  %v1628_v58 = vrot.slane %v5163_v18, 1  ;;  %v2043_v57 = vor.u32 %v2042_v53, %v2041_v38  ;;  %v2288_v23 = vrot.slane %v5163_v18, 2 }
 0x1ca   : > { %v5196_v26 = vpack.c.bf16 %v1146_v51, %v1145_v1  ;;  %1119 = vperm.xlu0 %4431, %v364_v16   ;;  %v1230_v22 = vrot.slane %v5188_v47, 1  ;;  %3964 = vmatpush3.bf16.msra.mxu1 %v4466_v50  ;;  %v2046_v21 = vrot.slane %v5188_v47, 2  ;;  %v2701_v4 = vrot.slane %v5157_v52, 3 }
 0x1cb   : > { %v1080_v49 = vpop.permute.xlu0 %1079  ;;  %3965 = vmatprep.subr.bf16.mxu1 %v6324_v11  ;;  %4020 = vmatpush3.bf16.msra.mxu0 %v4473_v54  ;;  %v5206_v15 = vsel %vm1622_vm6, %v1626_v3, %v1628_v58  ;;  %v5212_v40 = vsel %vm2037_vm8, %v6325_v62, %v2043_v57  ;;  %v2045_v17 = vrot.slane %v5193_v32, 1  ;;  %v1150_v1 = vmul.f32 %v1090_v48, %v1012_v61  ;;  %v4469_v62 = vld [vmem:[%s6308_s5 + $0xa0] sm:$0xff]  }
 0x1cc   : > { %v1148_v42 = vmul.f32 %v1080_v49, %v1010_v7  ;;  %v1231_v25 = vsel %vm1203_vm7, %v1226_v41, %v1230_v22  ;;  %v1234_v37 = vor.u32 %v5193_v32, %v1230_v22  ;;  %4021 = vmatprep.subr.bf16.mxu0 %v6324_v11  ;;  %v5220_v3 = vshll.u32 %v5196_v26, 16 }
 0x1cd   : > { %v5223_v30 = vshrl.u32 %v5196_v26, 16  ;;  %v1630_v52 = vrot.slane %v5196_v26, 1  ;;  %v5230_v61 = vsel %vm500_vm1, %v2286_v35, %v2288_v23  ;;  %v2047_v50 = vor.u32 %v2046_v21, %v2045_v17 }
 0x1ce   : > { %v5232_v7 = vpack.c.bf16 %v1148_v42, %v1147_v5  ;;  %3966 = vmatpush3.bf16.msra.mxu1 %v4467_v60  ;;  %v2290_v53 = vrot.slane %v5196_v26, 2  ;;  %v5238_v10 = vor.u32 %v2701_v4, %v2700_v2  ;;  %v1238_v54 = vrot.slane %v5220_v3, 1 }
 0x1cf   : > { %v1085_v16 = vpop.permute.xlu0 %1084  ;;  %3880 = vmatmul.mubr.bf16.gmra.mxu1 %v1223_v9  ;;  %3967 = vmatprep.subr.bf16.mxu1 %v6324_v11  ;;  %v5243_v35 = vsel %vm1622_vm6, %v1628_v58, %v1630_v52  ;;  %v2049_v5 = vrot.slane %v5223_v30, 1  ;;  %v2050_v38 = vrot.slane %v5220_v3, 2  ;;  %v4475_v58 = vld [vmem:[%s6308_s5 + $0xd8] sm:$0xff]   ;;  %v5268_v22 = vsel %vm2037_vm8, %v2043_v57, %v2047_v50 }
 0x1d0   : > { %v1149_v51 = vmul.f32 %v1085_v16, %v5154_v28  ;;  %3936 = vmatmul.mubr.bf16.gmra.mxu0 %v5148_v56  ;;  %3883 = vmatprep.mubr.msk.bf16.mxu1 %vm4579_vm5, %v6324_v11  ;;  %v5252_v9 = vshll.u32 %v5232_v7, 16  ;;  %v5255_v2 = vshrl.u32 %v5232_v7, 16  ;;  %v1632_v48 = vrot.slane %v5232_v7, 1 }
 0x1d1   : > { %3939 = vmatprep.mubr.msk.bf16.mxu0 %vm4579_vm5, %v6324_v11  ;;  %v5261_v41 = vsel %vm1203_vm7, %v1234_v37, %v1238_v54  ;;  %v1242_v28 = vor.u32 %v5223_v30, %v1238_v54  ;;  %4022 = vmatpush3.bf16.msra.mxu0 %v4474_v33  ;;  %v2292_v60 = vrot.slane %v5232_v7, 2  ;;  %v5282_v4 = vsel %vm500_vm1, %v2288_v23, %v2290_v53  ;;  %v4477_v23 = vld [vmem:[%s6308_s5 + $0xd0] sm:$0xff]  }
 0x1d2   : > { %v5271_v21 = vpack.c.bf16 %v1150_v1, %v1149_v51  ;;  %v1246_v49 = vrot.slane %v5252_v9, 1  ;;  %3968 = vmatpush3.bf16.msra.mxu1 %v4468_v45  ;;  %4023 = vmatprep.subr.bf16.mxu0 %v6324_v11  ;;  %v5279_v17 = vsel %vm1622_vm6, %v1630_v52, %v1632_v48  ;;  %v2051_v57 = vor.u32 %v2050_v38, %v2049_v5 }
 0x1d3   : > { %3969 = vmatprep.subr.bf16.mxu1 %v6324_v11  ;;  %v5286_v1 = vsel %vm500_vm1, %v2290_v53, %v2292_v60  ;;  %v2053_v42 = vrot.slane %v5255_v2, 1  ;;  %v2054_v37 = vrot.slane %v5252_v9, 2 }
 0x1d4   : > { %v5291_v33 = vsel %vm1203_vm7, %v1242_v28, %v1246_v49  ;;  %v5294_v45 = vshll.u32 %v5271_v21, 16  ;;  %v5297_v52 = vshrl.u32 %v5271_v21, 16  ;;  %v5304_v16 = vsel %vm2037_vm8, %v2047_v50, %v2051_v57  ;;  %v4472_v28 = vld [vmem:[%s6308_s5 + $0x98] sm:$0xff]  }
 0x1d5   : > { %4024 = vmatpush3.bf16.msra.mxu0 %v4475_v58  ;;  %v2055_v54 = vor.u32 %v2054_v37, %v2053_v42  ;;  %v6317_v5 = vrot.slane %v5271_v21, 2  ;;  %v1250_v38 = vor.u32 %v5255_v2, %v1246_v49  ;;  %v6326_v50 = vrot.slane %v5271_v21, 1 }
 0x1d6   : > { %v6318_v51 = vrot.slane %v5294_v45, 1  ;;  %3970 = vmatpush3.bf16.msra.mxu1 %v4469_v62  ;;  %4025 = vmatprep.subr.bf16.mxu0 %v6324_v11  ;;  %v2057_v58 = vrot.slane %v5297_v52, 1  ;;  %v2058_v53 = vrot.slane %v5294_v45, 2  ;;  %v2703_v37 = vrot.slane %v5193_v32, 2  ;;  %v4478_v32 = vld [vmem:[%s6308_s5 + $0xc8] sm:$0xff]  }
 0x1d7   : > { %3884 = vmatmul.mubr.bf16.gmra.mxu1 %v1231_v25  ;;  %3971 = vmatprep.subr.bf16.mxu1 %v6324_v11  ;;  %v5319_v49 = vsel %vm1622_vm6, %v1632_v48, %v6326_v50  ;;  %v5322_v62 = vsel %vm2037_vm8, %v2051_v57, %v2055_v54  ;;  %v5327_v42 = vsel %vm500_vm1, %v2292_v60, %v6317_v5  ;;  %v2704_v57 = vrot.slane %v5188_v47, 3  ;;  %v4476_v47 = vld [vmem:[%s6308_s5 + $0x90] sm:$0xff]  }
 0x1d8   : > { %6327 = vst [vmem:[#allocation4_spill] sm:$0xff] %v5327_v42  ;;  %3940 = vmatmul.mubr.bf16.gmra.mxu0 %v5163_v18  ;;  %3887 = vmatprep.mubr.msk.bf16.mxu1 %vm4579_vm5, %v6324_v11  ;;  %v5336_v25 = vsel %vm1203_vm7, %v1250_v38, %v6318_v51  ;;  %v5338_v48 = vor.u32 %v2058_v53, %v2057_v58  ;;  %v2707_v60 = vrot.slane %v5223_v30, 2  ;;  %v2708_v50 = vrot.slane %v5220_v3, 3 }
 0x1d9   : > { %3943 = vmatprep.mubr.msk.bf16.mxu0 %vm4579_vm5, %v6324_v11  ;;  %4026 = vmatpush3.bf16.msra.mxu0 %v4477_v23  ;;  %v2711_v38 = vrot.slane %v5255_v2, 2  ;;  %v2712_v53 = vrot.slane %v5252_v9, 3  ;;  %v2705_v58 = vor.u32 %v2704_v57, %v2703_v37  ;;  %v2715_v30 = vrot.slane %v5297_v52, 2  ;;  %v4480_v57 = vld [vmem:[%s6308_s5 + $0xc0] sm:$0xff]  }
 0x1da   : > { %3972 = vmatpush3.bf16.msra.mxu1 %v4472_v28  ;;  %4027 = vmatprep.subr.bf16.mxu0 %v6324_v11  ;;  %v5356_v23 = vsel %vm2037_vm8, %v2055_v54, %v5338_v48  ;;  %v2716_v3 = vrot.slane %v5294_v45, 3  ;;  %v2709_v2 = vor.u32 %v2708_v50, %v2707_v60  ;;  %v2947_v28 = vrot.slane %v5148_v56, 3 }
 0x1db   : > { %3973 = vmatprep.subr.bf16.mxu1 %v6324_v11  ;;  %v2713_v9 = vor.u32 %v2712_v53, %v2711_v38  ;;  %v2948_v5 = vrot.slane %v5163_v18, 3  ;;  %v5365_v51 = vsel %vm2699_vm9, %v5238_v10, %v2705_v58  ;;  %v2950_v54 = vrot.slane %v5196_v26, 3 }
 0x1dc   : > { %v5367_v42 = vor.u32 %v2716_v3, %v2715_v30  ;;  %v2952_v37 = vrot.slane %v5232_v7, 3  ;;  %v5375_v60 = vsel %vm2699_vm9, %v2705_v58, %v2709_v2  ;;  %v2954_v10 = vrot.slane %v5271_v21, 3 }
 0x1dd   : > { %4028 = vmatpush3.bf16.msra.mxu0 %v4478_v32  ;;  %v5378_v56 = vsel %vm2699_vm9, %v2709_v2, %v2713_v9  ;;  %v5381_v18 = vsel %vm499_vm0, %v2947_v28, %v2948_v5  ;;  %v4479_v32 = vld [vmem:[%s6308_s5 + $0x88] sm:$0xff]   ;;  %v5393_v38 = vsel %vm499_vm0, %v2948_v5, %v2950_v54  ;;  %v828_v5 = vmul.f32 %v5053_v14, %v5053_v14 }
 0x1de   : > { %3974 = vmatpush3.bf16.msra.mxu1 %v4476_v47  ;;  %4029 = vmatprep.subr.bf16.mxu0 %v6324_v11  ;;  %v5390_v50 = vsel %vm2699_vm9, %v2713_v9, %v5367_v42  ;;  %v5396_v53 = vsel %vm499_vm0, %v2950_v54, %v2952_v37  ;;  %v5403_v47 = vsel %vm499_vm0, %v2952_v37, %v2954_v10 }
 0x1df   : > { %3888 = vmatmul.mubr.bf16.gmra.mxu1 %v5261_v41  ;;  %3975 = vmatprep.subr.bf16.mxu1 %v6324_v11  ;;  %v4481_v41 = vld [vmem:[%s6308_s5 + $0x80] sm:$0xff]   ;;  %v895_v58 = vsel %vm736_vm4, %v828_v5, 0.0  ;;  %v734_v30 = vmul.f32 %v4724_v39, %v5046_v36  ;;  %v924_v14 = vmul.f32 %v4964_v31, %v5061_v59  ;;  %v923_v59 = vmul.f32 %v4964_v31, %v5057_v34  ;;  %v366_v5 = vld [vmem:[%s4657_s21 + $0xa8] sm:$0xff]  ;;  %s308_s21 = smul.u32 18, %s3434_s10 }
 0x1e0   : > { %3944 = vmatmul.mubr.bf16.gmra.mxu0 %v5196_v26  ;;  %3891 = vmatprep.mubr.msk.bf16.mxu1 %vm4579_vm5, %v6324_v11  ;;  %v922_v26 = vmul.f32 %v4964_v31, %v5051_v12  ;;  %v628_v3 = vadd.f32 %v4815_v55, %v4982_v44  ;;  %v618_v28 = vadd.f32 %v4802_v27, %v4982_v44 }
 0x1e1   : > { %3947 = vmatprep.mubr.msk.bf16.mxu0 %vm4579_vm5, %v6324_v11  ;;  %4030 = vmatpush3.bf16.msra.mxu0 %v4480_v57  ;;  %v800_v39 = vsel %vm736_vm4, %v734_v30, 0.0  ;;  %v947_v36 = vmax.f32 %v924_v14, 1e-16  ;;  %v634_v30 = vadd.f32 %v4820_v0, %v4982_v44  ;;  %v6328_v0 = vrot.slane %v5294_v45, 1  ;;  %p309_p3 = scmp.lt.s32.totalorder %s308_s21, 35 }
 0x1e2   : > { %3976 = vmatpush3.bf16.msra.mxu1 %v4479_v32  ;;  %4119 = vmatprep.subr.bf16.mxu0 %v6324_v11  ;;  %v945_v12 = vmax.f32 %v922_v26, 1e-16  ;;  %v694_v54 = vmax.f32 %v628_v3, 0.0  ;;  %v1100_v26 = vpop.permute.xlu1 %1099 }
 0x1e3   : > { %3977 = vmatprep.subr.bf16.mxu1 %v6324_v11  ;;  %s6335_s21 = smov (!%p309_p3, %s308_s21), 35 }
 0x1e4   : > { %4552 = vrsqrt.f32 %v945_v12  ;;  %s3438_s24 = sshll.u32 %s6335_s21, 3 }
 0x1e5   : > { %4554 = vrsqrt.f32 %v947_v36  ;;  %s6262_s29 = scalar_lea.vmem %s6312_s9, %s3438_s24 }
 0x1e6   : > { %3978 = vmatpush3.bf16.msra.mxu1 %v4481_v41  ;;  %v690_v41 = vmax.f32 %v618_v28, 0.0  ;;  %v1258_v28 = vor.u32 %v5297_v52, %v6328_v0 }
 0x1e7   : > { %3892 = vmatmul.mubr.bf16.gmra.mxu1 %v5291_v33  ;;  %4067 = vmatprep.subr.bf16.mxu1 %v6324_v11  ;;  %v925_v33 = vmul.f32 %v4964_v31, %v5072_v46 }
 0x1e8   : > { %3948 = vmatmul.mubr.bf16.gmra.mxu0 %v5232_v7  ;;  %3895 = vmatprep.mubr.msk.bf16.mxu1 %vm4579_vm5, %v6324_v11  ;;  %v946_v7 = vmax.f32 %v923_v59, 1e-16 }
 0x1e9   : > { %896 = vadd.xlane.f32.xlu0 %v895_v58  ;;  %3951 = vmatprep.mubr.msk.bf16.mxu0 %vm4579_vm5, %v6324_v11  ;;  %v948_v34 = vmax.f32 %v925_v33, 1e-16  ;;  %v624_v58 = vadd.f32 %v4809_v43, %v4982_v44 }
 0x1ea   : > { %4556 = vrsqrt.f32 %v946_v7  ;;  %v696_v7 = vmax.f32 %v634_v30, 0.0 }
 0x1eb   : > { %4558 = vrsqrt.f32 %v948_v34 }
 0x1ed   : > { %801 = vadd.xlane.f32.xlu0 %v800_v39 }
 0x1ef   : > { %3896 = vmatmul.mubr.bf16.gmra.mxu1 %v5336_v25 }
 0x1f0   : > { %3952 = vmatmul.mubr.bf16.gmra.mxu0 %v5271_v21  ;;  %3899 = vmatprep.mubr.msk.bf16.mxu1 %vm4579_vm5, %v6324_v11 }
 0x1f1   : > { %3955 = vmatprep.mubr.msk.bf16.mxu0 %vm4579_vm5, %v6324_v11  ;;  %v4553_v2 = vpop.eup %4552 }
 0x1f2   : > { %v4555_v25 = vpop.eup %4554  ;;  %v991_v57 = vmul.f32 %v4553_v2, %v5111_v19  ;;  %v692_v19 = vmax.f32 %v624_v58, 0.0 }
 0x1f4   : > { %v1014_v55 = vmul.f32 %v991_v57, %v690_v41 }
 0x1f6   : > { %v1152_v12 = vmul.f32 %v1100_v26, %v1014_v55  ;;  %v6330_v26 = vrot.slane %v5271_v21, 2 }
 0x1f7   : > { %v4557_v46 = vpop.eup %4556 }
 0x1f8   : > { %v992_v27 = vmul.f32 %v4557_v46, %v5121_v20  ;;  %v4559_v34 = vpop.eup %4558 }
 0x1fa   : > { %v1015_v3 = vmul.f32 %v992_v27, %v692_v19 }
 0x1fc   : > { %v790_v9 = vpop.xlane.xlu0 %789  ;;  %v793_v36 = vpop.xlane.xlu1 %792 }
 0x1fd   : > { %v993_v37 = vmul.f32 %v4555_v25, %v790_v9  ;;  %v994_v9 = vmul.f32 %v4559_v34, %v793_v36 }
 0x1ff   : > { %v1016_v32 = vmul.f32 %v993_v37, %v694_v54  ;;  %v6329_v37 = vrot.slane %v5271_v21, 1  ;;  %v1017_v36 = vmul.f32 %v994_v9, %v696_v7 }
 0x203   : > { %1129 = vperm.xlu0 %4431, %v366_v5  }
 0x204   : > { %v1095_v14 = vpop.permute.xlu0 %1094 }
 0x205   : > { %v1151_v39 = vmul.f32 %v1095_v14, %v5146_v63 }
 0x207   : > { %v1167_v59 = vpack.c.bf16 %v1152_v12, %v1151_v39 }
 0x208   : > { %v1105_v33 = vpop.permute.xlu0 %1104 }
 0x209   : > { %3956 = vmatmul.mubr.bf16.gmra.mxu0 %v1167_v59  ;;  %v1260_v43 = vshll.u32 %v1167_v59, 16  ;;  %v1264_v2 = vshrl.u32 %v1167_v59, 16  ;;  %v1636_v25 = vrot.slane %v1167_v59, 1  ;;  %v2296_v20 = vrot.slane %v1167_v59, 2 }
 0x20a   : > { %3959 = vmatprep.mubr.msk.bf16.mxu0 %vm4579_vm5, %v6324_v11  ;;  %v2956_v63 = vrot.slane %v1167_v59, 3  ;;  %v1153_v30 = vmul.f32 %v1105_v33, %v1015_v3 }
 0x20b   : > { %v1262_v54 = vrot.slane %v1260_v43, 1  ;;  %v5462_v57 = vsel %vm1622_vm6, %v6329_v37, %v1636_v25  ;;  %v2061_v5 = vrot.slane %v1264_v2, 1  ;;  %v2062_v41 = vrot.slane %v1260_v43, 2 }
 0x20c   : > { %v1110_v46 = vpop.permute.xlu0 %1109  ;;  %v5467_v45 = vsel %vm500_vm1, %v6330_v26, %v2296_v20  ;;  %v2719_v52 = vrot.slane %v1264_v2, 2  ;;  %v2720_v58 = vrot.slane %v1260_v43, 3  ;;  %v5472_v55 = vsel %vm499_vm0, %v2954_v10, %v2956_v63 }
 0x20d   : > { %v1154_v14 = vmul.f32 %v1110_v46, %v1016_v32  ;;  %v1263_v27 = vsel %vm1203_vm7, %v1258_v28, %v1262_v54  ;;  %v2063_v12 = vor.u32 %v2062_v41, %v2061_v5  ;;  %v1266_v43 = vor.u32 %v1264_v2, %v1262_v54  ;;  %v4487_v2 = vld [vmem:[%s6308_s5 + $0x178] sm:$0xff]  }
 0x20e   : > { %3900 = vmatmul.mubr.bf16.gmra.mxu1 %v1263_v27  ;;  %v2721_v39 = vor.u32 %v2720_v58, %v2719_v52 }
 0x20f   : > { %v5475_v19 = vpack.c.bf16 %v1154_v14, %v1153_v30  ;;  %3903 = vmatprep.mubr.msk.bf16.mxu1 %vm4579_vm5, %v6324_v11  ;;  %v5481_v59 = vsel %vm2037_vm8, %v5338_v48, %v2063_v12 }
 0x210   : > { %v1115_v21 = vpop.permute.xlu0 %1114  ;;  %v5485_v10 = vsel %vm2699_vm9, %v5367_v42, %v2721_v39 }
 0x211   : > { %v5487_v32 = vmul.f32 %v1115_v21, %v1017_v36  ;;  %3960 = vmatmul.mubr.bf16.gmra.mxu0 %v5475_v19  ;;  %v1268_v33 = vshll.u32 %v5475_v19, 16  ;;  %v1272_v7 = vshrl.u32 %v5475_v19, 16  ;;  %v5493_v34 = vrot.slane %v5475_v19, 1  ;;  %v4488_v21 = vld [vmem:[%s6308_s5 + $0x170] sm:$0xff]  }
 0x212   : > { %4031 = vmatprep.mubr.msk.bf16.mxu0 %vm4579_vm5, %v6324_v11  ;;  %v2298_v48 = vrot.slane %v5475_v19, 2  ;;  %v2958_v3 = vrot.slane %v5475_v19, 3 }
 0x213   : > { %v1185_v42 = vpack.c.bf16 %v5487_v32, %v5487_v32  ;;  %v1270_v9 = vrot.slane %v1268_v33, 1  ;;  %v5503_v0 = vsel %vm1622_vm6, %v1636_v25, %v5493_v34  ;;  %v2065_v37 = vrot.slane %v1272_v7, 1 }
 0x214   : > { %v5508_v28 = vsel %vm500_vm1, %v2296_v20, %v2298_v48  ;;  %v2066_v5 = vrot.slane %v1268_v33, 2  ;;  %v2723_v41 = vrot.slane %v1272_v7, 2  ;;  %v2724_v25 = vrot.slane %v1268_v33, 3 }
 0x215   : > { %v1276_v46 = vshll.u32 %v1185_v42, 16  ;;  %v1640_v26 = vrot.slane %v1185_v42, 1  ;;  %v1271_v52 = vsel %vm1203_vm7, %v1266_v43, %v1270_v9  ;;  %v5519_v20 = vsel %vm499_vm0, %v2956_v63, %v2958_v3  ;;  %v4493_v42 = vld [vmem:[%s6308_s5 + $0x158] sm:$0xff]   ;;  %v4483_v43 = vld [vmem:[%s6308_s5 + $0x130] sm:$0xff]  }
 0x216   : > { %3904 = vmatmul.mubr.bf16.gmra.mxu1 %v1271_v52  ;;  %v5514_v54 = vor.u32 %v2066_v5, %v2065_v37  ;;  %v1274_v30 = vor.u32 %v1272_v7, %v1270_v9  ;;  %v5531_v36 = vor.u32 %v2724_v25, %v2723_v41  ;;  %v4482_v7 = vld [vmem:[%s6308_s5 + $0x138] sm:$0xff]   ;;  %v4494_v9 = vld [vmem:[%s6308_s5 + $0x150] sm:$0xff]   ;;  %v4484_v37 = vld [vmem:[%s6308_s5 + $0x128] sm:$0xff]  }
 0x217   : > { %v1278_v58 = vrot.slane %v1276_v46, 1  ;;  %3907 = vmatprep.mubr.msk.bf16.mxu1 %vm4579_vm5, %v6324_v11  ;;  %v5525_v14 = vsel %vm1622_vm6, %v5493_v34, %v1640_v26  ;;  %v4495_v41 = vld [vmem:[%s6308_s5 + $0x148] sm:$0xff]   ;;  %v4485_v46 = vld [vmem:[%s6308_s5 + $0x120] sm:$0xff]   ;;  %v4486_v52 = vld [vmem:[%s6308_s5 + $0x118] sm:$0xff]  }
 0x218   : > { %v5529_v27 = vsel %vm2037_vm8, %v2063_v12, %v5514_v54  ;;  %v5542_v33 = vsel %vm2699_vm9, %v2721_v39, %v5531_v36  ;;  %v4490_v12 = vld [vmem:[%s6308_s5 + $0x168] sm:$0xff]   ;;  %v4491_v39 = vld [vmem:[%s6308_s5 + $0x160] sm:$0xff]  }
 0x219   : > { %4032 = vmatmul.mubr.bf16.vlgmr.msra.gmra.mxu0 %v5178_v29  ;;  %v1279_v63 = vsel %vm1203_vm7, %v1274_v30, %v1278_v58 }
 0x21a   : > { %4035 = vmatprep.mubr.msk.bf16.mxu0 %vm4579_vm5, %v6324_v11  ;;  %4120 = vmatpush3.bf16.msra.mxu0 %v4487_v2  ;;  %v4489_v2 = vld [vmem:[%s6308_s5 + $0x110] sm:$0xff]  }
 0x21b   : > { %4121 = vmatprep.subr.bf16.mxu0 %v6324_v11 }
 0x21e   : > { %3908 = vmatmul.mubr.bf16.gmra.mxu1 %v1279_v63  ;;  %4122 = vmatpush3.bf16.msra.mxu0 %v4488_v21  ;;  %v4496_v63 = vld [vmem:[%s6308_s5 + $0x100] sm:$0xff]  }
 0x21f   : > { %3979 = vmatprep.mubr.msk.bf16.mxu1 %vm4579_vm5, %v6324_v11  ;;  %4123 = vmatprep.subr.bf16.mxu0 %v6324_v11 }
 0x221   : > { %4036 = vmatmul.mubr.bf16.gmra.mxu0 %v5206_v15 }
 0x222   : > { %4039 = vmatprep.mubr.msk.bf16.mxu0 %vm4579_vm5, %v6324_v11  ;;  %4124 = vmatpush3.bf16.msra.mxu0 %v4490_v12 }
 0x223   : > { %4125 = vmatprep.subr.bf16.mxu0 %v6324_v11 }
 0x226   : > { %3980 = vmatmul.mubr.bf16.vlgmr.msra.gmra.mxu1 %v5152_v6  ;;  %4126 = vmatpush3.bf16.msra.mxu0 %v4491_v39  ;;  %v891_v6 = vpop.xlane.xlu1 %890 }
 0x227   : > { %4068 = vmatpush3.bf16.msra.mxu1 %v4482_v7  ;;  %3983 = vmatprep.mubr.msk.bf16.mxu1 %vm4579_vm5, %v6324_v11  ;;  %v927_v5 = vmul.f32 %v4964_v31, %v891_v6 }
 0x228   : > { %4069 = vmatprep.subr.bf16.mxu1 %v6324_v11  ;;  %4127 = vmatprep.subr.bf16.mxu0 %v6324_v11 }
 0x229   : > { %4040 = vmatmul.mubr.bf16.gmra.mxu0 %v5243_v35  ;;  %v950_v26 = vmax.f32 %v927_v5, 1e-16 }
 0x22a   : > { %4043 = vmatprep.mubr.msk.bf16.mxu0 %vm4579_vm5, %v6324_v11  ;;  %4128 = vmatpush3.bf16.msra.mxu0 %v4493_v42  ;;  %v796_v58 = vpop.xlane.xlu1 %795 }
 0x22b   : > { %4070 = vmatpush3.bf16.msra.mxu1 %v4483_v43  ;;  %4129 = vmatprep.subr.bf16.mxu0 %v6324_v11  ;;  %4560 = vrsqrt.f32 %v950_v26 }
 0x22c   : > { %4071 = vmatprep.subr.bf16.mxu1 %v6324_v11 }
 0x22e   : > { %3984 = vmatmul.mubr.bf16.gmra.mxu1 %v5178_v29  ;;  %4130 = vmatpush3.bf16.msra.mxu0 %v4494_v9  ;;  %v4497_v29 = vld [vmem:[%s6308_s5 + $0x140] sm:$0xff]   ;;  %v799_v39 = vpop.xlane.xlu1 %798 }
 0x22f   : > { %3987 = vmatprep.mubr.msk.bf16.mxu1 %vm4579_vm5, %v6324_v11  ;;  %4072 = vmatpush3.bf16.msra.mxu1 %v4484_v37 }
 0x230   : > { %4073 = vmatprep.subr.bf16.mxu1 %v6324_v11  ;;  %4131 = vmatprep.subr.bf16.mxu0 %v6324_v11 }
 0x231   : > { %4044 = vmatmul.mubr.bf16.gmra.mxu0 %v5279_v17 }
 0x232   : > { %4047 = vmatprep.mubr.msk.bf16.mxu0 %vm4579_vm5, %v6324_v11  ;;  %4132 = vmatpush3.bf16.msra.mxu0 %v4495_v41  ;;  %v1125_v6 = vpop.permute.xlu1 %1124 }
 0x233   : > { %4074 = vmatpush3.bf16.msra.mxu1 %v4485_v46  ;;  %4133 = vmatprep.subr.bf16.mxu0 %v6324_v11 }
 0x234   : > { %4075 = vmatprep.subr.bf16.mxu1 %v6324_v11 }
 0x236   : > { %3988 = vmatmul.mubr.bf16.gmra.mxu1 %v5206_v15  ;;  %4134 = vmatpush3.bf16.msra.mxu0 %v4497_v29  ;;  %v4492_v15 = vld [vmem:[%s6308_s5 + $0x108] sm:$0xff]  }
 0x237   : > { %3991 = vmatprep.mubr.msk.bf16.mxu1 %vm4579_vm5, %v6324_v11  ;;  %4076 = vmatpush3.bf16.msra.mxu1 %v4486_v52 }
 0x238   : > { %4077 = vmatprep.subr.bf16.mxu1 %v6324_v11  ;;  %4223 = vmatprep.subr.bf16.mxu0 %v6324_v11  ;;  %v4561_v12 = vpop.eup %4560 }
 0x239   : > { %4048 = vmatmul.mubr.bf16.gmra.mxu0 %v5319_v49  ;;  %v996_v7 = vmul.f32 %v4561_v12, %v799_v39 }
 0x23a   : > { %4051 = vmatprep.mubr.msk.bf16.mxu0 %vm4579_vm5, %v6324_v11 }
 0x23b   : > { %4078 = vmatpush3.bf16.msra.mxu1 %v4489_v2 }
 0x23c   : > { %4079 = vmatprep.subr.bf16.mxu1 %v6324_v11 }
 0x23d   : > { %v888_v25 = vpop.xlane.xlu0 %887 }
 0x23e   : > { %v926_v30 = vmul.f32 %v4964_v31, %v888_v25  ;;  %3992 = vmatmul.mubr.bf16.gmra.mxu1 %v5243_v35  ;;  %v644_v35 = vadd.f32 %v4851_v24, %v4982_v44  ;;  %v638_v24 = vadd.f32 %v4834_v13, %v4982_v44 }
 0x23f   : > { %3995 = vmatprep.mubr.msk.bf16.mxu1 %vm4579_vm5, %v6324_v11  ;;  %4080 = vmatpush3.bf16.msra.mxu1 %v4492_v15 }
 0x240   : > { %v949_v21 = vmax.f32 %v926_v30, 1e-16  ;;  %4081 = vmatprep.subr.bf16.mxu1 %v6324_v11  ;;  %v700_v42 = vmax.f32 %v644_v35, 0.0 }
 0x241   : > { %4052 = vmatmul.mubr.bf16.gmra.mxu0 %v5462_v57 }
 0x242   : > { %4562 = vrsqrt.f32 %v949_v21  ;;  %4055 = vmatprep.mubr.msk.bf16.mxu0 %vm4579_vm5, %v6324_v11  ;;  %v1019_v43 = vmul.f32 %v996_v7, %v700_v42 }
 0x243   : > { %4082 = vmatpush3.bf16.msra.mxu1 %v4496_v63 }
 0x244   : > { %4171 = vmatprep.subr.bf16.mxu1 %v6324_v11  ;;  %v5643_v9 = vmul.f32 %v1125_v6, %v1019_v43 }
 0x245   : > { %v1120_v26 = vpop.permute.xlu0 %1119 }
 0x246   : > { %3996 = vmatmul.mubr.bf16.gmra.mxu1 %v5279_v17  ;;  %v698_v17 = vmax.f32 %v638_v24, 0.0  ;;  %v1823_v41 = vpack.c.bf16 %v5643_v9, %v5643_v9 }
 0x247   : > { %3999 = vmatprep.mubr.msk.bf16.mxu1 %vm4579_vm5, %v6324_v11 }
 0x248   : > { %v2079_v52 = vshrl.u32 %v1823_v41, 16  ;;  %v2082_v2 = vshll.u32 %v1823_v41, 16  ;;  %v2302_v30 = vrot.slane %v1823_v41, 2 }
 0x249   : > { %4056 = vmatmul.mubr.bf16.gmra.mxu0 %v5503_v0 }
 0x24a   : > { %4059 = vmatprep.mubr.msk.bf16.mxu0 %vm4579_vm5, %v6324_v11  ;;  %v2081_v63 = vrot.slane %v2079_v52, 1  ;;  %v2084_v21 = vrot.slane %v2082_v2, 2  ;;  %v4500_v52 = vld [vmem:[%s6308_s5 + $0x1a8] sm:$0xff]  }
 0x24c   : > { %v2085_v24 = vor.u32 %v2084_v21, %v2081_v63 }
 0x24e   : > { %4000 = vmatmul.mubr.bf16.gmra.mxu1 %v5319_v49 }
 0x24f   : > { %v4563_v37 = vpop.eup %4562  ;;  %4003 = vmatprep.mubr.msk.bf16.mxu1 %vm4579_vm5, %v6324_v11 }
 0x250   : > { %v995_v5 = vmul.f32 %v4563_v37, %v796_v58 }
 0x252   : > { %v1018_v46 = vmul.f32 %v995_v5, %v698_v17  ;;  %v1845_v5 = vrot.slane %v1823_v41, 1  ;;  %v4498_v41 = vld [vmem:[%s6308_s5 + $0x1b8] sm:$0xff]  }
 0x254   : > { %v1156_v29 = vmul.f32 %v1120_v26, %v1018_v46  ;;  %v4506_v26 = vld [vmem:[%s6308_s5 + $0x1e8] sm:$0xff]  }
 0x256   : > { %v5651_v13 = vpack.c.bf16 %v1156_v29, %v5487_v32  ;;  %4004 = vmatmul.mubr.bf16.gmra.mxu1 %v5462_v57 }
 0x257   : > { %4007 = vmatprep.mubr.msk.bf16.mxu1 %vm4579_vm5, %v6324_v11 }
 0x258   : > { %v1843_v49 = vrot.slane %v5651_v13, 1  ;;  %v5658_v15 = vrot.slane %v5651_v13, 2  ;;  %v2070_v25 = vshrl.u32 %v5651_v13, 16  ;;  %v2073_v58 = vshll.u32 %v5651_v13, 16 }
 0x259   : > { %v2960_v32 = vrot.slane %v5651_v13, 3 }
 0x25a   : > { %v1844_v57 = vsel %vm1622_vm6, %v5493_v34, %v1843_v49  ;;  %v5669_v12 = vsel %vm500_vm1, %v2298_v48, %v5658_v15  ;;  %v2072_v35 = vrot.slane %v2070_v25, 1  ;;  %v2075_v39 = vrot.slane %v2073_v58, 2 }
 0x25b   : > { %4060 = vmatmul.mubr.bf16.gmra.mxu0 %v1844_v57  ;;  %v5673_v7 = vsel %vm500_vm1, %v5658_v15, %v2302_v30  ;;  %v2727_v42 = vrot.slane %v2070_v25, 2  ;;  %v2728_v43 = vrot.slane %v2073_v58, 3  ;;  %v5682_v34 = vsel %vm499_vm0, %v2958_v3, %v2960_v32  ;;  %v894_v3 = vpop.xlane.xlu1 %893  ;;  %v4501_v30 = vld [vmem:[%s6308_s5 + $0x1a0] sm:$0xff]  }
 0x25c   : > { %4063 = vmatprep.mubr.msk.bf16.mxu0 %vm4579_vm5, %v6324_v11  ;;  %v2076_v48 = vor.u32 %v2075_v39, %v2072_v35  ;;  %v1846_v46 = vsel %vm1622_vm6, %v1843_v49, %v1845_v5  ;;  %v4507_v49 = vld [vmem:[%s6308_s5 + $0x1e0] sm:$0xff]   ;;  %v4502_v35 = vld [vmem:[%s6308_s5 + $0x198] sm:$0xff]  }
 0x25d   : > { %v5684_v6 = vor.u32 %v2728_v43, %v2727_v42  ;;  %v4510_v42 = vld [vmem:[%s6308_s5 + $0x1d0] sm:$0xff]  }
 0x25e   : > { %4008 = vmatmul.mubr.bf16.gmra.mxu1 %v5503_v0  ;;  %v5691_v37 = vsel %vm2037_vm8, %v5514_v54, %v2076_v48  ;;  %v5694_v17 = vsel %vm2037_vm8, %v2076_v48, %v2085_v24  ;;  %v928_v0 = vmul.f32 %v4964_v31, %v894_v3  ;;  %v4505_v24 = vld [vmem:[%s6308_s5 + $0x190] sm:$0xff]   ;;  %v6332_v3 = vld [vmem:[#allocation3_spill] sm:$0xff] }
 0x25f   : > { %4011 = vmatprep.mubr.msk.bf16.mxu1 %vm4579_vm5, %v6324_v11  ;;  %v5699_v19 = vsel %vm2699_vm9, %v5531_v36, %v5684_v6  ;;  %v4503_v36 = vld [vmem:[%s6308_s5 + $0x1f8] sm:$0xff]   ;;  %v654_v5 = vadd.f32 %v6332_v3, %v4982_v44 }
 0x260   : > { %v951_v54 = vmax.f32 %v928_v0, 1e-16 }
 0x262   : > { %4564 = vrsqrt.f32 %v951_v54  ;;  %v805_v54 = vpop.xlane.xlu1 %804 }
 0x263   : > { %4064 = vmatmul.mubr.bf16.gmra.mxu0 %v1846_v46 }
 0x264   : > { %4135 = vmatprep.mubr.msk.bf16.mxu0 %vm4579_vm5, %v6324_v11 }
 0x266   : > { %4012 = vmatmul.mubr.bf16.gmra.mxu1 %v5525_v14  ;;  %v4504_v14 = vld [vmem:[%s6308_s5 + $0x1f0] sm:$0xff]  }
 0x267   : > { %4083 = vmatprep.mubr.msk.bf16.mxu1 %vm4579_vm5, %v6324_v11 }
 0x26b   : > { %4136 = vmatmul.mubr.bf16.vlgmr.msra.gmra.mxu0 %v5181_v8  ;;  %v4499_v8 = vld [vmem:[%s6308_s5 + $0x1b0] sm:$0xff]  }
 0x26c   : > { %4139 = vmatprep.mubr.msk.bf16.mxu0 %vm4579_vm5, %v6324_v11  ;;  %4224 = vmatpush3.bf16.msra.mxu0 %v4503_v36 }
 0x26d   : > { %4225 = vmatprep.subr.bf16.mxu0 %v6324_v11 }
 0x26e   : > { %4084 = vmatmul.mubr.bf16.vlgmr.msra.gmra.mxu1 %v5212_v40 }
 0x26f   : > { %4172 = vmatpush3.bf16.msra.mxu1 %v4498_v41  ;;  %4087 = vmatprep.mubr.msk.bf16.mxu1 %vm4579_vm5, %v6324_v11  ;;  %v4565_v63 = vpop.eup %4564 }
 0x270   : > { %4173 = vmatprep.subr.bf16.mxu1 %v6324_v11  ;;  %4226 = vmatpush3.bf16.msra.mxu0 %v4504_v14 }
 0x271   : > { %4227 = vmatprep.subr.bf16.mxu0 %v6324_v11 }
 0x272   : > { %v897_v29 = vpop.xlane.xlu0 %896 }
 0x273   : > { %v929_v40 = vmul.f32 %v4964_v31, %v897_v29  ;;  %4140 = vmatmul.mubr.bf16.gmra.mxu0 %v5230_v61  ;;  %4174 = vmatpush3.bf16.msra.mxu1 %v4499_v8  ;;  %v6331_v31 = vld [vmem:[#allocation2_spill] sm:$0xff]  ;;  %v704_v29 = vmax.f32 %v654_v5, 0.0 }
 0x274   : > { %4143 = vmatprep.mubr.msk.bf16.mxu0 %vm4579_vm5, %v6324_v11  ;;  %4175 = vmatprep.subr.bf16.mxu1 %v6324_v11  ;;  %v648_v58 = vadd.f32 %v6331_v31, %v4982_v44  ;;  %v4508_v44 = vld [vmem:[%s6308_s5 + $0x188] sm:$0xff]  }
 0x275   : > { %v952_v2 = vmax.f32 %v929_v40, 1e-16  ;;  %4228 = vmatpush3.bf16.msra.mxu0 %v4506_v26 }
 0x276   : > { %v802_v25 = vpop.xlane.xlu0 %801  ;;  %4088 = vmatmul.mubr.bf16.gmra.mxu1 %v5268_v22  ;;  %4229 = vmatprep.subr.bf16.mxu0 %v6324_v11  ;;  %v4509_v22 = vld [vmem:[%s6308_s5 + $0x1d8] sm:$0xff]   ;;  %v702_v57 = vmax.f32 %v648_v58, 0.0 }
 0x277   : > { %4566 = vrsqrt.f32 %v952_v2  ;;  %4091 = vmatprep.mubr.msk.bf16.mxu1 %vm4579_vm5, %v6324_v11  ;;  %4176 = vmatpush3.bf16.msra.mxu1 %v4500_v52  ;;  %v997_v21 = vmul.f32 %v4565_v63, %v802_v25  ;;  %v4513_v2 = vld [vmem:[%s6308_s5 + $0x1c0] sm:$0xff]  }
 0x278   : > { %4177 = vmatprep.subr.bf16.mxu1 %v6324_v11 }
 0x279   : > { %4230 = vmatpush3.bf16.msra.mxu0 %v4507_v49  ;;  %v1020_v39 = vmul.f32 %v997_v21, %v702_v57  ;;  %v1135_v57 = vpop.permute.xlu1 %1134 }
 0x27a   : > { %4231 = vmatprep.subr.bf16.mxu0 %v6324_v11 }
 0x27b   : > { %4144 = vmatmul.mubr.bf16.gmra.mxu0 %v5282_v4  ;;  %4178 = vmatpush3.bf16.msra.mxu1 %v4501_v30 }
 0x27c   : > { %4147 = vmatprep.mubr.msk.bf16.mxu0 %vm4579_vm5, %v6324_v11  ;;  %4179 = vmatprep.subr.bf16.mxu1 %v6324_v11 }
 0x27d   : > { %4232 = vmatpush3.bf16.msra.mxu0 %v4509_v22 }
 0x27e   : > { %v1130_v43 = vpop.permute.xlu0 %1129  ;;  %4092 = vmatmul.mubr.bf16.gmra.mxu1 %v5304_v16  ;;  %4233 = vmatprep.subr.bf16.mxu0 %v6324_v11  ;;  %v4511_v16 = vld [vmem:[%s6308_s5 + $0x1c8] sm:$0xff]  }
 0x27f   : > { %v1158_v48 = vmul.f32 %v1130_v43, %v1020_v39  ;;  %4095 = vmatprep.mubr.msk.bf16.mxu1 %vm4579_vm5, %v6324_v11  ;;  %4180 = vmatpush3.bf16.msra.mxu1 %v4502_v35 }
 0x280   : > { %v1524_v46 = vpop.f32.mrf.mxu0  ;;  %4181 = vmatprep.subr.bf16.mxu1 %v6324_v11 }
 0x281   : > { %v5778_v0 = vpack.c.bf16 %v1158_v48, %v5643_v9  ;;  %4234 = vmatpush3.bf16.msra.mxu0 %v4510_v42  ;;  %v6333_v48 = vld [vmem:[#allocation4_spill] sm:$0xff] }
 0x282   : > { %v3929_v36 = vpop.f32.mrf.mxu0  ;;  %4235 = vmatprep.subr.bf16.mxu0 %v6324_v11 }
 0x283   : > { %4148 = vmatmul.mubr.bf16.gmra.mxu0 %v5286_v1  ;;  %4182 = vmatpush3.bf16.msra.mxu1 %v4505_v24  ;;  %v2732_v41 = vshrl.u32 %v5778_v0, 16  ;;  %v2735_v9 = vshll.u32 %v5778_v0, 16  ;;  %v2505_v14 = vrot.slane %v5778_v0, 2  ;;  %v2962_v8 = vrot.slane %v5778_v0, 3 }
 0x284   : > { %v4567_v26 = vpop.eup %4566  ;;  %v1527_v40 = vpop.f32.mrf.mxu0  ;;  %4151 = vmatprep.mubr.msk.bf16.mxu0 %vm4579_vm5, %v6324_v11  ;;  %4183 = vmatprep.subr.bf16.mxu1 %v6324_v11 }
 0x285   : > { %v998_v52 = vmul.f32 %v4567_v26, %v805_v54  ;;  %4236 = vmatpush3.bf16.msra.mxu0 %v4511_v16  ;;  %v2734_v49 = vrot.slane %v2732_v41, 2  ;;  %v2737_v25 = vrot.slane %v2735_v9, 3  ;;  %v5800_v31 = vsel %vm500_vm1, %v5658_v15, %v2505_v14  ;;  %v4512_v15 = vld [vmem:[%s6308_s5 + $0x180] sm:$0xff]  }
 0x286   : > { %v3930_v58 = vpop.f32.mrf.mxu0  ;;  %4096 = vmatmul.mubr.bf16.gmra.mxu1 %v5322_v62  ;;  %4237 = vmatprep.subr.bf16.mxu0 %v6324_v11  ;;  %v5807_v30 = vsel %vm499_vm0, %v2960_v32, %v2962_v8 }
 0x287   : > { %v1021_v63 = vmul.f32 %v998_v52, %v704_v29  ;;  %v1371_v21 = vpop.f32.mrf.mxu1  ;;  %4099 = vmatprep.mubr.msk.bf16.mxu1 %vm4579_vm5, %v6324_v11  ;;  %4184 = vmatpush3.bf16.msra.mxu1 %v4508_v44  ;;  %v2738_v22 = vor.u32 %v2737_v25, %v2734_v49 }
 0x288   : > { %v5814_v62 = vadd.f32 %v1524_v46, %v1371_v21  ;;  %v1532_v35 = vpop.f32.mrf.mxu0  ;;  %4185 = vmatprep.subr.bf16.mxu1 %v6324_v11 }
 0x289   : > { %v3877_v13 = vpop.f32.mrf.mxu1  ;;  %4238 = vmatpush3.bf16.msra.mxu0 %v4513_v2  ;;  %v5819_v32 = vsel %vm2699_vm9, %v5684_v6, %v2738_v22  ;;  %v1159_v39 = vmul.f32 %v1135_v57, %v1021_v63 }
 0x28a   : > { %v3933_v42 = vpop.f32.mrf.mxu0 }
 0x28b   : > { %v1374_v43 = vpop.f32.mrf.mxu1  ;;  %4152 = vmatmul.mubr.bf16.gmra.mxu0 %v6333_v48  ;;  %4186 = vmatpush3.bf16.msra.mxu1 %v4512_v15  ;;  %v2485_v24 = vpack.c.bf16 %v1159_v39, %v1159_v39 }
 0x28c   : > { %v5822_v3 = vadd.f32 %v1527_v40, %v1374_v43  ;;  %v1535_v5 = vpop.f32.mrf.mxu0  ;;  %4155 = vmatprep.mubr.msk.bf16.mxu0 %vm4579_vm5, %v6324_v11  ;;  %4275 = vmatprep.subr.bf16.mxu1 %v6324_v11 }
 0x28d   : > { %v3878_v46 = vpop.f32.mrf.mxu1  ;;  %v2741_v0 = vshrl.u32 %v2485_v24, 16  ;;  %v2744_v16 = vshll.u32 %v2485_v24, 16  ;;  %v2507_v6 = vrot.slane %v2485_v24, 2  ;;  %v2964_v54 = vrot.slane %v2485_v24, 3 }
 0x28e   : > { %v3934_v36 = vpop.f32.mrf.mxu0  ;;  %4100 = vmatmul.mubr.bf16.gmra.mxu1 %v5356_v23 }
 0x28f   : > { %v1379_v44 = vpop.f32.mrf.mxu1  ;;  %4103 = vmatprep.mubr.msk.bf16.mxu1 %vm4579_vm5, %v6324_v11  ;;  %v2743_v41 = vrot.slane %v2741_v0, 2  ;;  %v2746_v9 = vrot.slane %v2744_v16, 3  ;;  %v5831_v26 = vsel %vm500_vm1, %v2505_v14, %v2507_v6  ;;  %v5834_v29 = vsel %vm499_vm0, %v2962_v8, %v2964_v54 }
 0x290   : > { %v5836_v40 = vadd.f32 %v1532_v35, %v1379_v44  ;;  %v1540_v52 = vpop.f32.mrf.mxu0 }
 0x291   : > { %v3881_v2 = vpop.f32.mrf.mxu1  ;;  %v2747_v49 = vor.u32 %v2746_v9, %v2743_v41 }
 0x292   : > { %v3937_v25 = vpop.f32.mrf.mxu0 }
 0x293   : > { %v1382_v58 = vpop.f32.mrf.mxu1  ;;  %4156 = vmatmul.mubr.bf16.gmra.mxu0 %v5467_v45  ;;  %v5840_v23 = vsel %vm2699_vm9, %v2738_v22, %v2747_v49 }
 0x294   : > { %v5842_v63 = vadd.f32 %v1535_v5, %v1382_v58  ;;  %v1543_v21 = vpop.f32.mrf.mxu0  ;;  %4159 = vmatprep.mubr.msk.bf16.mxu0 %vm4579_vm5, %v6324_v11 }
 0x295   : > { %v3882_v14 = vpop.f32.mrf.mxu1 }
 0x296   : > { %v3938_v8 = vpop.f32.mrf.mxu0  ;;  %4104 = vmatmul.mubr.bf16.gmra.mxu1 %v5481_v59 }
 0x297   : > { %v1387_v15 = vpop.f32.mrf.mxu1  ;;  %4107 = vmatprep.mubr.msk.bf16.mxu1 %vm4579_vm5, %v6324_v11 }
 0x298   : > { %v5849_v57 = vadd.f32 %v1540_v52, %v1387_v15  ;;  %v1548_v35 = vpop.f32.mrf.mxu0 }
 0x299   : > { %v3885_v13 = vpop.f32.mrf.mxu1 }
 0x29a   : > { %v3941_v22 = vpop.f32.mrf.mxu0 }
 0x29b   : > { %v1390_v39 = vpop.f32.mrf.mxu1  ;;  %4160 = vmatmul.mubr.bf16.gmra.mxu0 %v5508_v28 }
 0x29c   : > { %v5852_v42 = vadd.f32 %v1543_v21, %v1390_v39  ;;  %v1551_v43 = vpop.f32.mrf.mxu0  ;;  %4163 = vmatprep.mubr.msk.bf16.mxu0 %vm4579_vm5, %v6324_v11 }
 0x29d   : > { %v3886_v24 = vpop.f32.mrf.mxu1 }
 0x29e   : > { %v3942_v59 = vpop.f32.mrf.mxu0  ;;  %4108 = vmatmul.mubr.bf16.gmra.mxu1 %v5529_v27 }
 0x29f   : > { %v1395_v5 = vpop.f32.mrf.mxu1  ;;  %4111 = vmatprep.mubr.msk.bf16.mxu1 %vm4579_vm5, %v6324_v11 }
 0x2a0   : > { %v5859_v46 = vadd.f32 %v1548_v35, %v1395_v5  ;;  %v1556_v0 = vpop.f32.mrf.mxu0 }
 0x2a1   : > { %v3889_v16 = vpop.f32.mrf.mxu1 }
 0x2a2   : > { %v3945_v6 = vpop.f32.mrf.mxu0 }
 0x2a3   : > { %v1398_v54 = vpop.f32.mrf.mxu1  ;;  %4164 = vmatmul.mubr.bf16.gmra.mxu0 %v5669_v12  ;;  %v4520_v6 = vld [vmem:[%s6308_s5 + $0x208] sm:$0xff]  }
 0x2a4   : > { %v5862_v36 = vadd.f32 %v1551_v43, %v1398_v54  ;;  %v1559_v44 = vpop.f32.mrf.mxu0  ;;  %4167 = vmatprep.mubr.msk.bf16.mxu0 %vm4579_vm5, %v6324_v11  ;;  %v4514_v43 = vld [vmem:[%s6308_s5 + $0x238] sm:$0xff]  }
 0x2a5   : > { %v3890_v41 = vpop.f32.mrf.mxu1 }
 0x2a6   : > { %v3946_v27 = vpop.f32.mrf.mxu0  ;;  %4112 = vmatmul.mubr.bf16.gmra.mxu1 %v5691_v37 }
 0x2a7   : > { %v1403_v9 = vpop.f32.mrf.mxu1  ;;  %4115 = vmatprep.mubr.msk.bf16.mxu1 %vm4579_vm5, %v6324_v11 }
 0x2a8   : > { %v5869_v52 = vadd.f32 %v1556_v0, %v1403_v9  ;;  %v1564_v2 = vpop.f32.mrf.mxu0  ;;  %v4516_v0 = vld [vmem:[%s6308_s5 + $0x228] sm:$0xff]  }
 0x2a9   : > { %v3893_v49 = vpop.f32.mrf.mxu1 }
 0x2aa   : > { %v3949_v25 = vpop.f32.mrf.mxu0 }
 0x2ab   : > { %v1406_v58 = vpop.f32.mrf.mxu1  ;;  %4168 = vmatmul.mubr.bf16.gmra.mxu0 %v5673_v7 }
 0x2ac   : > { %v5872_v21 = vadd.f32 %v1559_v44, %v1406_v58  ;;  %v1567_v14 = vpop.f32.mrf.mxu0  ;;  %4239 = vmatprep.mubr.msk.bf16.mxu0 %vm4579_vm5, %v6324_v11 }
 0x2ad   : > { %v3894_v8 = vpop.f32.mrf.mxu1 }
 0x2ae   : > { %v3950_v37 = vpop.f32.mrf.mxu0  ;;  %4116 = vmatmul.mubr.bf16.gmra.mxu1 %v5694_v17 }
 0x2af   : > { %v1411_v15 = vpop.f32.mrf.mxu1  ;;  %4187 = vmatprep.mubr.msk.bf16.mxu1 %vm4579_vm5, %v6324_v11 }
 0x2b0   : > { %v5879_v35 = vadd.f32 %v1564_v2, %v1411_v15  ;;  %v1572_v13 = vpop.f32.mrf.mxu0 }
 0x2b1   : > { %v3897_v22 = vpop.f32.mrf.mxu1 }
 0x2b2   : > { %v3953_v39 = vpop.f32.mrf.mxu0 }
 0x2b3   : > { %v1414_v7 = vpop.f32.mrf.mxu1  ;;  %4240 = vmatmul.mubr.bf16.vlgmr.msra.gmra.mxu0 %v5365_v51  ;;  %v4515_v51 = vld [vmem:[%s6308_s5 + $0x230] sm:$0xff]  }
 0x2b4   : > { %v5885_v24 = vadd.f32 %v1567_v14, %v1414_v7  ;;  %v1575_v59 = vpop.f32.mrf.mxu0  ;;  %4243 = vmatprep.mubr.msk.bf16.mxu0 %vm4579_vm5, %v6324_v11 }
 0x2b5   : > { %v3898_v17 = vpop.f32.mrf.mxu1 }
 0x2b6   : > { %v3954_v5 = vpop.f32.mrf.mxu0  ;;  %4188 = vmatmul.mubr.bf16.vlgmr.msra.gmra.mxu1 %v5230_v61  ;;  %v4517_v61 = vld [vmem:[%s6308_s5 + $0x220] sm:$0xff]  }
 0x2b7   : > { %4276 = vmatpush3.bf16.msra.mxu1 %v4514_v43  ;;  %4191 = vmatprep.mubr.msk.bf16.mxu1 %vm4579_vm5, %v6324_v11 }
 0x2b8   : > { %4277 = vmatprep.subr.bf16.mxu1 %v6324_v11 }
 0x2bb   : > { %4244 = vmatmul.mubr.bf16.gmra.mxu0 %v5375_v60  ;;  %4278 = vmatpush3.bf16.msra.mxu1 %v4515_v51  ;;  %v4518_v60 = vld [vmem:[%s6308_s5 + $0x218] sm:$0xff]  }
 0x2bc   : > { %4247 = vmatprep.mubr.msk.bf16.mxu0 %vm4579_vm5, %v6324_v11  ;;  %4279 = vmatprep.subr.bf16.mxu1 %v6324_v11 }
 0x2be   : > { %4192 = vmatmul.mubr.bf16.gmra.mxu1 %v5282_v4  ;;  %v4519_v4 = vld [vmem:[%s6308_s5 + $0x210] sm:$0xff]  }
 0x2bf   : > { %4195 = vmatprep.mubr.msk.bf16.mxu1 %vm4579_vm5, %v6324_v11  ;;  %4280 = vmatpush3.bf16.msra.mxu1 %v4516_v0 }
 0x2c0   : > { %4281 = vmatprep.subr.bf16.mxu1 %v6324_v11 }
 0x2c3   : > { %4248 = vmatmul.mubr.bf16.gmra.mxu0 %v5378_v56  ;;  %4282 = vmatpush3.bf16.msra.mxu1 %v4517_v61 }
 0x2c4   : > { %4251 = vmatprep.mubr.msk.bf16.mxu0 %vm4579_vm5, %v6324_v11  ;;  %4283 = vmatprep.subr.bf16.mxu1 %v6324_v11 }
 0x2c6   : > { %4196 = vmatmul.mubr.bf16.gmra.mxu1 %v5286_v1 }
 0x2c7   : > { %4199 = vmatprep.mubr.msk.bf16.mxu1 %vm4579_vm5, %v6324_v11  ;;  %4284 = vmatpush3.bf16.msra.mxu1 %v4518_v60 }
 0x2c8   : > { %4285 = vmatprep.subr.bf16.mxu1 %v6324_v11 }
 0x2c9   : > { %v1580_v56 = vpop.f32.mrf.mxu0 }
 0x2cb   : > { %v3957_v16 = vpop.f32.mrf.mxu0  ;;  %4252 = vmatmul.mubr.bf16.gmra.mxu0 %v5390_v50  ;;  %4286 = vmatpush3.bf16.msra.mxu1 %v4519_v4  ;;  %v4521_v50 = vld [vmem:[%s6308_s5 + $0x200] sm:$0xff]  }
 0x2cc   : > { %4255 = vmatprep.mubr.msk.bf16.mxu0 %vm4579_vm5, %v6324_v11  ;;  %4287 = vmatprep.subr.bf16.mxu1 %v6324_v11 }
 0x2cd   : > { %v1583_v1 = vpop.f32.mrf.mxu0 }
 0x2ce   : > { %v1419_v54 = vpop.f32.mrf.mxu1  ;;  %4200 = vmatmul.mubr.bf16.gmra.mxu1 %v6333_v48 }
 0x2cf   : > { %v5932_v44 = vadd.f32 %v1572_v13, %v1419_v54  ;;  %v3958_v41 = vpop.f32.mrf.mxu0  ;;  %4203 = vmatprep.mubr.msk.bf16.mxu1 %vm4579_vm5, %v6324_v11  ;;  %4288 = vmatpush3.bf16.msra.mxu1 %v4520_v6 }
 0x2d0   : > { %v3901_v27 = vpop.f32.mrf.mxu1  ;;  %4289 = vmatprep.subr.bf16.mxu1 %v6324_v11 }
 0x2d1   : > { %v1588_v9 = vpop.f32.mrf.mxu0 }
 0x2d2   : > { %v1422_v2 = vpop.f32.mrf.mxu1 }
 0x2d3   : > { %v5940_v49 = vadd.f32 %v1575_v59, %v1422_v2  ;;  %v3961_v25 = vpop.f32.mrf.mxu0  ;;  %4256 = vmatmul.mubr.bf16.gmra.mxu0 %v5485_v10  ;;  %4290 = vmatpush3.bf16.msra.mxu1 %v4521_v50 }
 0x2d4   : > { %v3902_v48 = vpop.f32.mrf.mxu1  ;;  %4259 = vmatprep.mubr.msk.bf16.mxu0 %vm4579_vm5, %v6324_v11 }
 0x2d5   : > { %v1591_v58 = vpop.f32.mrf.mxu0 }
 0x2d6   : > { %v1427_v14 = vpop.f32.mrf.mxu1  ;;  %4204 = vmatmul.mubr.bf16.gmra.mxu1 %v5467_v45 }
 0x2d7   : > { %v5946_v8 = vadd.f32 %v1580_v56, %v1427_v14  ;;  %v3962_v37 = vpop.f32.mrf.mxu0  ;;  %4207 = vmatprep.mubr.msk.bf16.mxu1 %vm4579_vm5, %v6324_v11 }
 0x2d8   : > { %v3905_v15 = vpop.f32.mrf.mxu1 }
 0x2d9   : > { %v1931_v13 = vpop.f32.mrf.mxu0 }
 0x2da   : > { %v1430_v22 = vpop.f32.mrf.mxu1 }
 0x2db   : > { %v5950_v39 = vadd.f32 %v1583_v1, %v1430_v22  ;;  %v4033_v10 = vpop.f32.mrf.mxu0  ;;  %4260 = vmatmul.mubr.bf16.gmra.mxu0 %v5542_v33 }
 0x2dc   : > { %v3906_v7 = vpop.f32.mrf.mxu1  ;;  %4263 = vmatprep.mubr.msk.bf16.mxu0 %vm4579_vm5, %v6324_v11 }
 0x2dd   : > { %v1934_v43 = vpop.f32.mrf.mxu0 }
 0x2de   : > { %v1435_v45 = vpop.f32.mrf.mxu1  ;;  %4208 = vmatmul.mubr.bf16.gmra.mxu1 %v5508_v28 }
 0x2df   : > { %v5956_v59 = vadd.f32 %v1588_v9, %v1435_v45  ;;  %v4034_v17 = vpop.f32.mrf.mxu0  ;;  %4211 = vmatprep.mubr.msk.bf16.mxu1 %vm4579_vm5, %v6324_v11 }
 0x2e0   : > { %v3909_v5 = vpop.f32.mrf.mxu1 }
 0x2e1   : > { %v1939_v51 = vpop.f32.mrf.mxu0 }
 0x2e2   : > { %v1438_v0 = vpop.f32.mrf.mxu1 }
 0x2e3   : > { %v5960_v61 = vadd.f32 %v1591_v58, %v1438_v0  ;;  %v4037_v33 = vpop.f32.mrf.mxu0  ;;  %4264 = vmatmul.mubr.bf16.gmra.mxu0 %v5699_v19 }
 0x2e4   : > { %v3910_v60 = vpop.f32.mrf.mxu1  ;;  %4267 = vmatprep.mubr.msk.bf16.mxu0 %vm4579_vm5, %v6324_v11 }
 0x2e5   : > { %v1942_v4 = vpop.f32.mrf.mxu0 }
 0x2e6   : > { %v1733_v28 = vpop.f32.mrf.mxu1  ;;  %4212 = vmatmul.mubr.bf16.gmra.mxu1 %v5669_v12 }
 0x2e7   : > { %v1804_v56 = vadd.f32 %v1733_v28, %v5814_v62  ;;  %v4038_v16 = vpop.f32.mrf.mxu0  ;;  %4215 = vmatprep.mubr.msk.bf16.mxu1 %vm4579_vm5, %v6324_v11 }
 0x2e8   : > { %v3981_v6 = vpop.f32.mrf.mxu1 }
 0x2e9   : > { %v1947_v1 = vpop.f32.mrf.mxu0  ;;  %v5969_v54 = vadd.f32 %v1931_v13, %v1804_v56 }
 0x2ea   : > { %v1736_v41 = vpop.f32.mrf.mxu1 }
 0x2eb   : > { %v1805_v19 = vadd.f32 %v1736_v41, %v5822_v3  ;;  %v4041_v50 = vpop.f32.mrf.mxu0  ;;  %4268 = vmatmul.mubr.bf16.gmra.mxu0 %v5819_v32 }
 0x2ec   : > { %v3982_v27 = vpop.f32.mrf.mxu1  ;;  %4271 = vmatprep.mubr.msk.bf16.mxu0 %vm4579_vm5, %v6324_v11 }
 0x2ed   : > { %v1950_v12 = vpop.f32.mrf.mxu0  ;;  %v5975_v62 = vadd.f32 %v1934_v43, %v1805_v19 }
 0x2ee   : > { %v1741_v9 = vpop.f32.mrf.mxu1  ;;  %4216 = vmatmul.mubr.bf16.gmra.mxu1 %v5800_v31 }
 0x2ef   : > { %v1806_v2 = vadd.f32 %v1741_v9, %v5836_v40  ;;  %v4042_v25 = vpop.f32.mrf.mxu0  ;;  %4219 = vmatprep.mubr.msk.bf16.mxu1 %vm4579_vm5, %v6324_v11 }
 0x2f0   : > { %v3985_v3 = vpop.f32.mrf.mxu1 }
 0x2f1   : > { %v1955_v48 = vpop.f32.mrf.mxu0  ;;  %v5981_v58 = vadd.f32 %v1939_v51, %v1806_v2 }
 0x2f2   : > { %v1744_v32 = vpop.f32.mrf.mxu1 }
 0x2f3   : > { %v1807_v14 = vadd.f32 %v1744_v32, %v5842_v63  ;;  %v4045_v37 = vpop.f32.mrf.mxu0  ;;  %4272 = vmatmul.mubr.bf16.gmra.mxu0 %v5840_v23 }
 0x2f4   : > { %v3986_v15 = vpop.f32.mrf.mxu1 }
 0x2f5   : > { %v1958_v13 = vpop.f32.mrf.mxu0  ;;  %v5985_v22 = vadd.f32 %v1942_v4, %v1807_v14 }
 0x2f6   : > { %v1749_v31 = vpop.f32.mrf.mxu1  ;;  %4220 = vmatmul.mubr.bf16.gmra.mxu1 %v5831_v26 }
 0x2f7   : > { %v1808_v40 = vadd.f32 %v1749_v31, %v5849_v57  ;;  %v4046_v10 = vpop.f32.mrf.mxu0  ;;  %4291 = vmatprep.mubr.msk.bf16.mxu1 %vm4579_vm5, %v6324_v11 }
 0x2f8   : > { %v3989_v7 = vpop.f32.mrf.mxu1 }
 0x2f9   : > { %v1963_v43 = vpop.f32.mrf.mxu0  ;;  %v5991_v45 = vadd.f32 %v1947_v1, %v1808_v40 }
 0x2fa   : > { %v1752_v63 = vpop.f32.mrf.mxu1 }
 0x2fb   : > { %v1809_v23 = vadd.f32 %v1752_v63, %v5852_v42  ;;  %v4049_v17 = vpop.f32.mrf.mxu0 }
 0x2fc   : > { %v3990_v5 = vpop.f32.mrf.mxu1 }
 0x2fd   : > { %v1966_v51 = vpop.f32.mrf.mxu0  ;;  %v5994_v0 = vadd.f32 %v1950_v12, %v1809_v23 }
 0x2fe   : > { %v1757_v33 = vpop.f32.mrf.mxu1  ;;  %4292 = vmatmul.mubr.bf16.vlgmr.msra.gmra.mxu1 %v5381_v18 }
 0x2ff   : > { %v1810_v26 = vadd.f32 %v1757_v33, %v5859_v46  ;;  %v4050_v57 = vpop.f32.mrf.mxu0  ;;  %4295 = vmatprep.mubr.msk.bf16.mxu1 %vm4579_vm5, %v6324_v11 }
 0x300   : > { %v3993_v60 = vpop.f32.mrf.mxu1 }
 0x301   : > { %v1971_v4 = vpop.f32.mrf.mxu0  ;;  %v6000_v28 = vadd.f32 %v1955_v48, %v1810_v26 }
 0x302   : > { %v1760_v56 = vpop.f32.mrf.mxu1 }
 0x303   : > { %v1811_v42 = vadd.f32 %v1760_v56, %v5862_v36  ;;  %v4053_v16 = vpop.f32.mrf.mxu0 }
 0x304   : > { %v3994_v6 = vpop.f32.mrf.mxu1 }
 0x305   : > { %v1974_v1 = vpop.f32.mrf.mxu0  ;;  %v6003_v41 = vadd.f32 %v1958_v13, %v1811_v42 }
 0x306   : > { %v1765_v19 = vpop.f32.mrf.mxu1  ;;  %4296 = vmatmul.mubr.bf16.gmra.mxu1 %v5393_v38 }
 0x307   : > { %v1812_v18 = vadd.f32 %v1765_v19, %v5869_v52  ;;  %v4054_v46 = vpop.f32.mrf.mxu0  ;;  %4299 = vmatprep.mubr.msk.bf16.mxu1 %vm4579_vm5, %v6324_v11 }
 0x308   : > { %v3997_v50 = vpop.f32.mrf.mxu1 }
 0x309   : > { %v1979_v27 = vpop.f32.mrf.mxu0  ;;  %v6009_v12 = vadd.f32 %v1963_v43, %v1812_v18 }
 0x30a   : > { %v1768_v9 = vpop.f32.mrf.mxu1 }
 0x30b   : > { %v1813_v36 = vadd.f32 %v1768_v9, %v5872_v21  ;;  %v4057_v2 = vpop.f32.mrf.mxu0 }
 0x30c   : > { %v3998_v25 = vpop.f32.mrf.mxu1 }
 0x30d   : > { %v1982_v3 = vpop.f32.mrf.mxu0  ;;  %v6012_v48 = vadd.f32 %v1966_v51, %v1813_v36  ;;  %v3202_v36 = vld [vmem:[%s6310_s7 + $0x68] sm:$0xff] }
 0x30e   : > { %v1773_v32 = vpop.f32.mrf.mxu1  ;;  %4300 = vmatmul.mubr.bf16.gmra.mxu1 %v5396_v53 }
 0x30f   : > { %v1814_v38 = vadd.f32 %v1773_v32, %v5879_v35  ;;  %v4058_v52 = vpop.f32.mrf.mxu0  ;;  %4303 = vmatprep.mubr.msk.bf16.mxu1 %vm4579_vm5, %v6324_v11 }
 0x310   : > { %v4001_v14 = vpop.f32.mrf.mxu1 }
 0x311   : > { %v6018_v37 = vadd.f32 %v1971_v4, %v1814_v38 }
 0x312   : > { %v1776_v15 = vpop.f32.mrf.mxu1 }
 0x313   : > { %v1815_v21 = vadd.f32 %v1776_v15, %v5885_v24 }
 0x314   : > { %v4002_v13 = vpop.f32.mrf.mxu1 }
 0x315   : > { %v6021_v31 = vadd.f32 %v1974_v1, %v1815_v21  ;;  %v3199_v21 = vld [vmem:[%s6310_s7 + $0x50] sm:$0xff] }
 0x316   : > { %v1781_v40 = vpop.f32.mrf.mxu1  ;;  %4304 = vmatmul.mubr.bf16.gmra.mxu1 %v5403_v47 }
 0x317   : > { %v1816_v53 = vadd.f32 %v1781_v40, %v5932_v44  ;;  %4307 = vmatprep.mubr.msk.bf16.mxu1 %vm4579_vm5, %v6324_v11 }
 0x318   : > { %v4005_v35 = vpop.f32.mrf.mxu1 }
 0x319   : > { %v6027_v10 = vadd.f32 %v1979_v27, %v1816_v53  ;;  %v3198_v35 = vld [vmem:[%s6310_s7 + $0x48] sm:$0xff] }
 0x31a   : > { %v1784_v7 = vpop.f32.mrf.mxu1 }
 0x31b   : > { %v1817_v43 = vadd.f32 %v1784_v7, %v5940_v49  ;;  %v1987_v63 = vpop.f32.mrf.mxu0 }
 0x31c   : > { %v4006_v23 = vpop.f32.mrf.mxu1 }
 0x31d   : > { %v4061_v24 = vpop.f32.mrf.mxu0  ;;  %v6030_v17 = vadd.f32 %v1982_v3, %v1817_v43  ;;  %v3201_v3 = vld [vmem:[%s6310_s7 + $0x60] sm:$0xff] }
 0x31e   : > { %v1789_v5 = vpop.f32.mrf.mxu1  ;;  %4308 = vmatmul.mubr.bf16.gmra.mxu1 %v5472_v55 }
 0x31f   : > { %v1818_v47 = vadd.f32 %v1789_v5, %v5946_v8  ;;  %v1990_v44 = vpop.f32.mrf.mxu0  ;;  %4311 = vmatprep.mubr.msk.bf16.mxu1 %vm4579_vm5, %v6324_v11 }
 0x320   : > { %v4009_v51 = vpop.f32.mrf.mxu1 }
 0x321   : > { %v4062_v33 = vpop.f32.mrf.mxu0  ;;  %v6036_v26 = vadd.f32 %v1987_v63, %v1818_v47  ;;  %v3197_v63 = vld [vmem:[%s6310_s7 + $0x40] sm:$0xff] }
 0x322   : > { %v1792_v57 = vpop.f32.mrf.mxu1  ;;  %v3194_v33 = vld [vmem:[%s6310_s7 + $0x28] sm:$0xff] }
 0x323   : > { %v1819_v49 = vadd.f32 %v1792_v57, %v5950_v39  ;;  %v1995_v60 = vpop.f32.mrf.mxu0  ;;  %v3204_v39 = vld [vmem:[%s6310_s7 + $0x78] sm:$0xff] }
 0x324   : > { %v4010_v4 = vpop.f32.mrf.mxu1  ;;  %4327 = vmatprep.subr.mxu0 %v3204_v39  ;;  %4386 = vmatprep.subr.mxu1 %v3204_v39 }
 0x325   : > { %v4065_v56 = vpop.f32.mrf.mxu0  ;;  %v6039_v42 = vadd.f32 %v1990_v44, %v1819_v49  ;;  %4328 = vmatpush3.msra.mxu0 %v3204_v39  ;;  %4402 = vmatpush3.msra.mxu1 %v3204_v39  ;;  %v3195_v44 = vld [vmem:[%s6310_s7 + $0x30] sm:$0xff] }
 0x326   : > { %v1797_v16 = vpop.f32.mrf.mxu1  ;;  %4312 = vmatmul.mubr.bf16.gmra.mxu1 %v5519_v20 }
 0x327   : > { %v1820_v55 = vadd.f32 %v1797_v16, %v5956_v59  ;;  %v1998_v8 = vpop.f32.mrf.mxu0  ;;  %4315 = vmatprep.mubr.msk.bf16.mxu1 %vm4579_vm5, %v6324_v11  ;;  %v3203_v59 = vld [vmem:[%s6310_s7 + $0x70] sm:$0xff] }
 0x328   : > { %v4013_v6 = vpop.f32.mrf.mxu1  ;;  %4329 = vmatprep.subr.mxu0 %v3203_v59  ;;  %4387 = vmatprep.subr.mxu1 %v3203_v59 }
 0x329   : > { %v4066_v1 = vpop.f32.mrf.mxu0  ;;  %v6045_v19 = vadd.f32 %v1995_v60, %v1820_v55  ;;  %4330 = vmatpush3.msra.mxu0 %v3203_v59  ;;  %4403 = vmatpush3.msra.mxu1 %v3203_v59 }
 0x32a   : > { %v1800_v18 = vpop.f32.mrf.mxu1  ;;  %4331 = vmatprep.subr.mxu0 %v3202_v36  ;;  %4388 = vmatprep.subr.mxu1 %v3202_v36 }
 0x32b   : > { %v1821_v46 = vadd.f32 %v1800_v18, %v5960_v61  ;;  %v2395_v20 = vpop.f32.mrf.mxu0  ;;  %4332 = vmatpush3.msra.mxu0 %v3202_v36  ;;  %4404 = vmatpush3.msra.mxu1 %v3202_v36 }
 0x32c   : > { %v4014_v50 = vpop.f32.mrf.mxu1  ;;  %4333 = vmatprep.subr.mxu0 %v3201_v3  ;;  %4389 = vmatprep.subr.mxu1 %v3201_v3 }
 0x32d   : > { %v4137_v27 = vpop.f32.mrf.mxu0  ;;  %v6054_v9 = vadd.f32 %v1998_v8, %v1821_v46  ;;  %4334 = vmatpush3.msra.mxu0 %v3201_v3  ;;  %4405 = vmatpush3.msra.mxu1 %v3201_v3  ;;  %v3191_v50 = vld [vmem:[%s6310_s7 + $0x10] sm:$0xff] }
 0x32e   : > { %v2178_v61 = vpop.f32.mrf.mxu1  ;;  %4316 = vmatmul.mubr.bf16.gmra.mxu1 %v5682_v34  ;;  %v3200_v34 = vld [vmem:[%s6310_s7 + $0x58] sm:$0xff]  ;;  %v3190_v27 = vld [vmem:[%s6310_s7 + $0x8] sm:$0xff] }
 0x32f   : > { %v2249_v2 = vadd.f32 %v2178_v61, %v5969_v54  ;;  %v2398_v25 = vpop.f32.mrf.mxu0  ;;  %4319 = vmatprep.mubr.msk.bf16.mxu1 %vm4579_vm5, %v6324_v11  ;;  %4335 = vmatprep.subr.mxu0 %v3200_v34 }
 0x330   : > { %v4085_v32 = vpop.f32.mrf.mxu1  ;;  %4336 = vmatpush3.msra.mxu0 %v3200_v34  ;;  %4390 = vmatprep.subr.mxu1 %v3200_v34 }
 0x331   : > { %v4138_v38 = vpop.f32.mrf.mxu0  ;;  %v6066_v52 = vadd.f32 %v2395_v20, %v2249_v2  ;;  %4337 = vmatprep.subr.mxu0 %v3199_v21  ;;  %4406 = vmatpush3.msra.mxu1 %v3200_v34  ;;  %v3189_v32 = vld [vmem:[%s6310_s7] sm:$0xff] }
 0x332   : > { %v2181_v54 = vpop.f32.mrf.mxu1  ;;  %4338 = vmatpush3.msra.mxu0 %v3199_v21  ;;  %4391 = vmatprep.subr.mxu1 %v3199_v21 }
 0x333   : > { %v2250_v14 = vadd.f32 %v2181_v54, %v5975_v62  ;;  %v2403_v15 = vpop.f32.mrf.mxu0  ;;  %4339 = vmatprep.subr.mxu0 %v3198_v35  ;;  %4407 = vmatpush3.msra.mxu1 %v3199_v21 }
 0x334   : > { %v4086_v13 = vpop.f32.mrf.mxu1  ;;  %4340 = vmatpush3.msra.mxu0 %v3198_v35  ;;  %4392 = vmatprep.subr.mxu1 %v3198_v35 }
 0x335   : > { %v4141_v40 = vpop.f32.mrf.mxu0  ;;  %v6075_v53 = vadd.f32 %v2398_v25, %v2250_v14  ;;  %4341 = vmatprep.subr.mxu0 %v3197_v63  ;;  %4408 = vmatpush3.msra.mxu1 %v3198_v35 }
 0x336   : > { %v2186_v62 = vpop.f32.mrf.mxu1  ;;  %4320 = vmatmul.mubr.bf16.gmra.mxu1 %v5807_v30  ;;  %4342 = vmatpush3.msra.mxu0 %v3197_v63  ;;  %v3196_v30 = vld [vmem:[%s6310_s7 + $0x38] sm:$0xff] }
 0x337   : > { %v2251_v7 = vadd.f32 %v2186_v62, %v5981_v58  ;;  %v2406_v43 = vpop.f32.mrf.mxu0  ;;  %4323 = vmatprep.mubr.msk.bf16.mxu1 %vm4579_vm5, %v6324_v11  ;;  %4343 = vmatprep.subr.mxu0 %v3196_v30 }
 0x338   : > { %v4089_v23 = vpop.f32.mrf.mxu1  ;;  %4344 = vmatpush3.msra.mxu0 %v3196_v30  ;;  %4393 = vmatprep.subr.mxu1 %v3197_v63 }
 0x339   : > { %v4142_v24 = vpop.f32.mrf.mxu0  ;;  %v6087_v5 = vadd.f32 %v2403_v15, %v2251_v7  ;;  %4345 = vmatprep.subr.mxu0 %v3195_v44  ;;  %4409 = vmatpush3.msra.mxu1 %v3197_v63 }
 0x33a   : > { %v2189_v58 = vpop.f32.mrf.mxu1  ;;  %4346 = vmatpush3.msra.mxu0 %v3195_v44  ;;  %4394 = vmatprep.subr.mxu1 %v3196_v30 }
 0x33b   : > { %v2252_v11 = vadd.f32 %v2189_v58, %v5985_v22  ;;  %v2411_v47 = vpop.f32.mrf.mxu0  ;;  %4347 = vmatprep.subr.mxu0 %v3194_v33  ;;  %4410 = vmatpush3.msra.mxu1 %v3196_v30 }
 0x33c   : > { %v4090_v51 = vpop.f32.mrf.mxu1  ;;  %4348 = vmatpush3.msra.mxu0 %v3194_v33  ;;  %4395 = vmatprep.subr.mxu1 %v3195_v44 }
 0x33d   : > { %v4145_v57 = vpop.f32.mrf.mxu0  ;;  %v6099_v49 = vadd.f32 %v2406_v43, %v2252_v11  ;;  %4411 = vmatpush3.msra.mxu1 %v3195_v44 }
 0x33e   : > { %v2194_v22 = vpop.f32.mrf.mxu1  ;;  %4324 = vmatmul.mubr.bf16.gmra.mxu1 %v5834_v29  ;;  %v3193_v29 = vld [vmem:[%s6310_s7 + $0x20] sm:$0xff]  ;;  %4396 = vmatprep.subr.mxu1 %v3194_v33 }
 0x33f   : > { %v2253_v60 = vadd.f32 %v2194_v22, %v5991_v45  ;;  %v2414_v4 = vpop.f32.mrf.mxu0  ;;  %v3192_v45 = vld [vmem:[%s6310_s7 + $0x18] sm:$0xff]  ;;  %4349 = vmatprep.subr.mxu0 %v3193_v29  ;;  %4412 = vmatpush3.msra.mxu1 %v3194_v33 }
 0x340   : > { %v4093_v56 = vpop.f32.mrf.mxu1  ;;  %4350 = vmatpush3.msra.mxu0 %v3193_v29  ;;  %4397 = vmatprep.subr.mxu1 %v3193_v29 }
 0x341   : > { %v4146_v16 = vpop.f32.mrf.mxu0  ;;  %v6103_v55 = vadd.f32 %v2411_v47, %v2253_v60  ;;  %4351 = vmatprep.subr.mxu0 %v3192_v45  ;;  %4413 = vmatpush3.msra.mxu1 %v3193_v29 }
 0x342   : > { %v2197_v8 = vpop.f32.mrf.mxu1  ;;  %4352 = vmatpush3.msra.mxu0 %v3192_v45  ;;  %4398 = vmatprep.subr.mxu1 %v3192_v45 }
 0x343   : > { %v2254_v6 = vadd.f32 %v2197_v8, %v5994_v0  ;;  %v2419_v1 = vpop.f32.mrf.mxu0  ;;  %4353 = vmatprep.subr.mxu0 %v3191_v50  ;;  %4414 = vmatpush3.msra.mxu1 %v3192_v45 }
 0x344   : > { %v4094_v39 = vpop.f32.mrf.mxu1  ;;  %4354 = vmatpush3.msra.mxu0 %v3191_v50  ;;  %4399 = vmatprep.subr.mxu1 %v3191_v50 }
 0x345   : > { %v4149_v18 = vpop.f32.mrf.mxu0  ;;  %v6112_v46 = vadd.f32 %v2414_v4, %v2254_v6  ;;  %4355 = vmatprep.subr.mxu0 %v3190_v27  ;;  %4415 = vmatpush3.msra.mxu1 %v3191_v50 }
 0x346   : > { %v2202_v20 = vpop.f32.mrf.mxu1  ;;  %4356 = vmatpush3.msra.mxu0 %v3190_v27  ;;  %4400 = vmatprep.subr.mxu1 %v3190_v27 }
 0x347   : > { %v2255_v0 = vadd.f32 %v2202_v20, %v6000_v28  ;;  %v2422_v59 = vpop.f32.mrf.mxu0  ;;  %4357 = vmatprep.subr.mxu0 %v3189_v32  ;;  %4416 = vmatpush3.msra.mxu1 %v3190_v27 }
 0x348   : > { %v4097_v36 = vpop.f32.mrf.mxu1  ;;  %4358 = vmatpush3.msra.mxu0 %v3189_v32  ;;  %4401 = vmatprep.subr.mxu1 %v3189_v32 }
 0x349   : > { %v4150_v61 = vpop.f32.mrf.mxu0  ;;  %v6121_v2 = vadd.f32 %v2419_v1, %v2255_v0  ;;  %4417 = vmatpush3.msra.mxu1 %v3189_v32 }
 0x34a   : > { %v2205_v28 = vpop.f32.mrf.mxu1 }
 0x34b   : > { %v2256_v25 = vadd.f32 %v2205_v28, %v6003_v41  ;;  %v2427_v3 = vpop.f32.mrf.mxu0 }
 0x34c   : > { %v4098_v38 = vpop.f32.mrf.mxu1 }
 0x34d   : > { %v4153_v34 = vpop.f32.mrf.mxu0  ;;  %v6127_v54 = vadd.f32 %v2422_v59, %v2256_v25 }
 0x34e   : > { %v2210_v14 = vpop.f32.mrf.mxu1 }
 0x34f   : > { %v2257_v15 = vadd.f32 %v2210_v14, %v6009_v12  ;;  %v2430_v41 = vpop.f32.mrf.mxu0 }
 0x350   : > { %v4101_v21 = vpop.f32.mrf.mxu1 }
 0x351   : > { %v4154_v13 = vpop.f32.mrf.mxu0  ;;  %v6130_v40 = vadd.f32 %v2427_v3, %v2257_v15 }
 0x352   : > { %v2213_v35 = vpop.f32.mrf.mxu1 }
 0x353   : > { %v2258_v62 = vadd.f32 %v2213_v35, %v6012_v48  ;;  %v2435_v7 = vpop.f32.mrf.mxu0 }
 0x354   : > { %v4102_v43 = vpop.f32.mrf.mxu1 }
 0x355   : > { %v4157_v63 = vpop.f32.mrf.mxu0  ;;  %v6133_v23 = vadd.f32 %v2430_v41, %v2258_v62 }
 0x356   : > { %v2218_v24 = vpop.f32.mrf.mxu1 }
 0x357   : > { %v2259_v30 = vadd.f32 %v2218_v24, %v6018_v37  ;;  %v2438_v58 = vpop.f32.mrf.mxu0 }
 0x358   : > { %v4105_v11 = vpop.f32.mrf.mxu1 }
 0x359   : > { %v4158_v47 = vpop.f32.mrf.mxu0  ;;  %v6136_v12 = vadd.f32 %v2435_v7, %v2259_v30 }
 0x35a   : > { %v2221_v44 = vpop.f32.mrf.mxu1 }
 0x35b   : > { %v2260_v51 = vadd.f32 %v2221_v44, %v6021_v31  ;;  %v2443_v33 = vpop.f32.mrf.mxu0 }
 0x35c   : > { %v4106_v57 = vpop.f32.mrf.mxu1 }
 0x35d   : > { %v4161_v22 = vpop.f32.mrf.mxu0  ;;  %v6139_v48 = vadd.f32 %v2438_v58, %v2260_v51 }
 0x35e   : > { %v2226_v60 = vpop.f32.mrf.mxu1 }
 0x35f   : > { %v2261_v4 = vadd.f32 %v2226_v60, %v6027_v10  ;;  %v2446_v56 = vpop.f32.mrf.mxu0 }
 0x360   : > { %v4109_v16 = vpop.f32.mrf.mxu1 }
 0x361   : > { %v4162_v8 = vpop.f32.mrf.mxu0  ;;  %v6142_v37 = vadd.f32 %v2443_v33, %v2261_v4 }
 0x362   : > { %v2229_v6 = vpop.f32.mrf.mxu1 }
 0x363   : > { %v2262_v1 = vadd.f32 %v2229_v6, %v6030_v17  ;;  %v2451_v29 = vpop.f32.mrf.mxu0 }
 0x364   : > { %v4110_v45 = vpop.f32.mrf.mxu1 }
 0x365   : > { %v4165_v39 = vpop.f32.mrf.mxu0  ;;  %v6145_v31 = vadd.f32 %v2446_v56, %v2262_v1 }
 0x366   : > { %v2234_v18 = vpop.f32.mrf.mxu1 }
 0x367   : > { %v2263_v20 = vadd.f32 %v2234_v18, %v6036_v26  ;;  %v2454_v0 = vpop.f32.mrf.mxu0 }
 0x368   : > { %v4113_v59 = vpop.f32.mrf.mxu1 }
 0x369   : > { %v4166_v50 = vpop.f32.mrf.mxu0  ;;  %v6148_v10 = vadd.f32 %v2451_v29, %v2263_v20 }
 0x36a   : > { %v2237_v27 = vpop.f32.mrf.mxu1 }
 0x36b   : > { %v2264_v36 = vadd.f32 %v2237_v27, %v6039_v42  ;;  %v2459_v61 = vpop.f32.mrf.mxu0 }
 0x36c   : > { %v4114_v28 = vpop.f32.mrf.mxu1 }
 0x36d   : > { %v4169_v25 = vpop.f32.mrf.mxu0  ;;  %v6151_v17 = vadd.f32 %v2454_v0, %v2264_v36 }
 0x36e   : > { %v2242_v3 = vpop.f32.mrf.mxu1 }
 0x36f   : > { %v2265_v32 = vadd.f32 %v2242_v3, %v6045_v19  ;;  %v2462_v38 = vpop.f32.mrf.mxu0 }
 0x370   : > { %v4117_v34 = vpop.f32.mrf.mxu1 }
 0x371   : > { %v4170_v14 = vpop.f32.mrf.mxu0  ;;  %v6154_v26 = vadd.f32 %v2459_v61, %v2265_v32 }
 0x372   : > { %v2245_v15 = vpop.f32.mrf.mxu1 }
 0x373   : > { %v2266_v41 = vadd.f32 %v2245_v15, %v6054_v9  ;;  %v2840_v21 = vpop.f32.mrf.mxu0 }
 0x374   : > { %v4118_v13 = vpop.f32.mrf.mxu1 }
 0x375   : > { %v4241_v35 = vpop.f32.mrf.mxu0  ;;  %v6157_v42 = vadd.f32 %v2462_v38, %v2266_v41 }
 0x376   : > { %v2593_v62 = vpop.f32.mrf.mxu1 }
 0x377   : > { %v2664_v7 = vadd.f32 %v2593_v62, %v6066_v52  ;;  %v2843_v43 = vpop.f32.mrf.mxu0 }
 0x378   : > { %v4189_v63 = vpop.f32.mrf.mxu1 }
 0x379   : > { %v4242_v24 = vpop.f32.mrf.mxu0  ;;  %v6160_v19 = vadd.f32 %v2840_v21, %v2664_v7 }
 0x37a   : > { %v2596_v30 = vpop.f32.mrf.mxu1 }
 0x37b   : > { %v2665_v58 = vadd.f32 %v2596_v30, %v6075_v53  ;;  %v2848_v11 = vpop.f32.mrf.mxu0 }
 0x37c   : > { %v4190_v47 = vpop.f32.mrf.mxu1 }
 0x37d   : > { %v4245_v44 = vpop.f32.mrf.mxu0  ;;  %v6163_v9 = vadd.f32 %v2843_v43, %v2665_v58 }
 0x37e   : > { %v2601_v51 = vpop.f32.mrf.mxu1 }
 0x37f   : > { %v2666_v33 = vadd.f32 %v2601_v51, %v6087_v5  ;;  %v2851_v57 = vpop.f32.mrf.mxu0 }
 0x380   : > { %v4193_v22 = vpop.f32.mrf.mxu1 }
 0x381   : > { %v4246_v60 = vpop.f32.mrf.mxu0  ;;  %v6166_v52 = vadd.f32 %v2848_v11, %v2666_v33 }
 0x382   : > { %v2604_v4 = vpop.f32.mrf.mxu1 }
 0x383   : > { %v2667_v56 = vadd.f32 %v2604_v4, %v6099_v49  ;;  %v2856_v16 = vpop.f32.mrf.mxu0 }
 0x384   : > { %v4194_v8 = vpop.f32.mrf.mxu1 }
 0x385   : > { %v4249_v6 = vpop.f32.mrf.mxu0  ;;  %v6169_v53 = vadd.f32 %v2851_v57, %v2667_v56 }
 0x386   : > { %v2609_v1 = vpop.f32.mrf.mxu1 }
 0x387   : > { %v2668_v29 = vadd.f32 %v2609_v1, %v6103_v55  ;;  %v2859_v45 = vpop.f32.mrf.mxu0 }
 0x388   : > { %v4197_v39 = vpop.f32.mrf.mxu1 }
 0x389   : > { %v4250_v18 = vpop.f32.mrf.mxu0  ;;  %v6172_v5 = vadd.f32 %v2856_v16, %v2668_v29 }
 0x38a   : > { %v2612_v20 = vpop.f32.mrf.mxu1 }
 0x38b   : > { %v2669_v0 = vadd.f32 %v2612_v20, %v6112_v46  ;;  %v2864_v59 = vpop.f32.mrf.mxu0 }
 0x38c   : > { %v4198_v50 = vpop.f32.mrf.mxu1 }
 0x38d   : > { %v4253_v27 = vpop.f32.mrf.mxu0  ;;  %v6175_v49 = vadd.f32 %v2859_v45, %v2669_v0 }
 0x38e   : > { %v2617_v36 = vpop.f32.mrf.mxu1 }
 0x38f   : > { %v2670_v61 = vadd.f32 %v2617_v36, %v6121_v2  ;;  %v2867_v28 = vpop.f32.mrf.mxu0 }
 0x390   : > { %v4201_v25 = vpop.f32.mrf.mxu1 }
 0x391   : > { %v4254_v3 = vpop.f32.mrf.mxu0  ;;  %v6178_v55 = vadd.f32 %v2864_v59, %v2670_v61 }
 0x392   : > { %v2620_v32 = vpop.f32.mrf.mxu1 }
 0x393   : > { %v2671_v38 = vadd.f32 %v2620_v32, %v6127_v54  ;;  %v2872_v34 = vpop.f32.mrf.mxu0 }
 0x394   : > { %v4202_v14 = vpop.f32.mrf.mxu1 }
 0x395   : > { %v4257_v15 = vpop.f32.mrf.mxu0  ;;  %v6181_v46 = vadd.f32 %v2867_v28, %v2671_v38 }
 0x396   : > { %v2625_v41 = vpop.f32.mrf.mxu1 }
 0x397   : > { %v2672_v21 = vadd.f32 %v2625_v41, %v6130_v40  ;;  %v2875_v13 = vpop.f32.mrf.mxu0 }
 0x398   : > { %v4205_v35 = vpop.f32.mrf.mxu1 }
 0x399   : > { %v4258_v62 = vpop.f32.mrf.mxu0  ;;  %v6184_v2 = vadd.f32 %v2872_v34, %v2672_v21 }
 0x39a   : > { %v2628_v7 = vpop.f32.mrf.mxu1 }
 0x39b   : > { %v2673_v43 = vadd.f32 %v2628_v7, %v6133_v23  ;;  %v2880_v63 = vpop.f32.mrf.mxu0  ;;  %v6216_v7 = vld [vmem:[%s6309_s6] ss:$0 sm:$0xff] }
 0x39c   : > { %v4206_v24 = vpop.f32.mrf.mxu1 }
 0x39d   : > { %v4261_v30 = vpop.f32.mrf.mxu0  ;;  %v6187_v54 = vadd.f32 %v2875_v13, %v2673_v43 }
 0x39e   : > { %v2633_v58 = vpop.f32.mrf.mxu1 }
 0x39f   : > { %v2674_v11 = vadd.f32 %v2633_v58, %v6136_v12  ;;  %v2883_v47 = vpop.f32.mrf.mxu0 }
 0x3a0   : > { %v4209_v44 = vpop.f32.mrf.mxu1 }
 0x3a1   : > { %v4262_v51 = vpop.f32.mrf.mxu0  ;;  %v6190_v40 = vadd.f32 %v2880_v63, %v2674_v11 }
 0x3a2   : > { %v2636_v33 = vpop.f32.mrf.mxu1 }
 0x3a3   : > { %v2675_v57 = vadd.f32 %v2636_v33, %v6139_v48  ;;  %v2888_v22 = vpop.f32.mrf.mxu0 }
 0x3a4   : > { %v4210_v60 = vpop.f32.mrf.mxu1 }
 0x3a5   : > { %v4265_v4 = vpop.f32.mrf.mxu0  ;;  %v6193_v23 = vadd.f32 %v2883_v47, %v2675_v57 }
 0x3a6   : > { %v2641_v56 = vpop.f32.mrf.mxu1 }
 0x3a7   : > { %v2676_v16 = vadd.f32 %v2641_v56, %v6142_v37  ;;  %v2891_v8 = vpop.f32.mrf.mxu0 }
 0x3a8   : > { %v4213_v6 = vpop.f32.mrf.mxu1 }
 0x3a9   : > { %v4266_v1 = vpop.f32.mrf.mxu0  ;;  %v6196_v12 = vadd.f32 %v2888_v22, %v2676_v16 }
 0x3aa   : > { %v2644_v29 = vpop.f32.mrf.mxu1 }
 0x3ab   : > { %v2677_v45 = vadd.f32 %v2644_v29, %v6145_v31  ;;  %v2896_v39 = vpop.f32.mrf.mxu0 }
 0x3ac   : > { %v4214_v18 = vpop.f32.mrf.mxu1 }
 0x3ad   : > { %v4269_v20 = vpop.f32.mrf.mxu0  ;;  %v6199_v48 = vadd.f32 %v2891_v8, %v2677_v45 }
 0x3ae   : > { %v2649_v0 = vpop.f32.mrf.mxu1 }
 0x3af   : > { %v2678_v59 = vadd.f32 %v2649_v0, %v6148_v10  ;;  %v2899_v50 = vpop.f32.mrf.mxu0 }
 0x3b0   : > { %v4217_v27 = vpop.f32.mrf.mxu1 }
 0x3b1   : > { %v4270_v36 = vpop.f32.mrf.mxu0  ;;  %v6202_v37 = vadd.f32 %v2896_v39, %v2678_v59 }
 0x3b2   : > { %v2652_v61 = vpop.f32.mrf.mxu1 }
 0x3b3   : > { %v2679_v28 = vadd.f32 %v2652_v61, %v6151_v17  ;;  %v2904_v25 = vpop.f32.mrf.mxu0 }
 0x3b4   : > { %v4218_v3 = vpop.f32.mrf.mxu1 }
 0x3b5   : > { %v4273_v32 = vpop.f32.mrf.mxu0  ;;  %v6205_v31 = vadd.f32 %v2899_v50, %v2679_v28 }
 0x3b6   : > { %v2657_v38 = vpop.f32.mrf.mxu1 }
 0x3b7   : > { %v2680_v34 = vadd.f32 %v2657_v38, %v6154_v26  ;;  %v2907_v14 = vpop.f32.mrf.mxu0 }
 0x3b8   : > { %v4221_v15 = vpop.f32.mrf.mxu1 }
 0x3b9   : > { %v4274_v41 = vpop.f32.mrf.mxu0  ;;  %v6208_v10 = vadd.f32 %v2904_v25, %v2680_v34 }
 0x3ba   : > { %v2660_v21 = vpop.f32.mrf.mxu1 }
 0x3bb   : > { %v2681_v13 = vadd.f32 %v2660_v21, %v6157_v42 }
 0x3bc   : > { %v4222_v35 = vpop.f32.mrf.mxu1 }
 0x3bd   : > { %v6211_v62 = vadd.f32 %v2907_v14, %v2681_v13 }
 0x3be   : > { %v3057_v17 = vpop.f32.mrf.mxu1 }
 0x3bf   : > { %v3128_v43 = vadd.f32 %v3057_v17, %v6160_v19 }
 0x3c0   : > { %v4293_v26 = vpop.f32.mrf.mxu1 }
 0x3c1   : > { %v3153_v63 = vadd.f32 %v6216_v7, %v3128_v43 }
 0x3c2   : > { %v3060_v24 = vpop.f32.mrf.mxu1 }
 0x3c3   : > { %v3171_v30 = vmax.f32 %v3153_v63, 0.0  ;;  %v3129_v58 = vadd.f32 %v3060_v24, %v6163_v9 }
 0x3c4   : > { %v4294_v11 = vpop.f32.mrf.mxu1 }
 0x3c5   : > { %v3154_v42 = vadd.f32 %v6216_v7, %v3129_v58  ;;  %4359 = vmatprep.mubr.f32.mxu0 %v3171_v30 }
 0x3c6   : > { %v3065_v47 = vpop.f32.mrf.mxu1 }
 0x3c7   : > { %v3172_v44 = vmax.f32 %v3154_v42, 0.0  ;;  %v3130_v51 = vadd.f32 %v3065_v47, %v6166_v52 }
 0x3c8   : > { %v4297_v33 = vpop.f32.mrf.mxu1 }
 0x3c9   : > { %v3155_v57 = vadd.f32 %v6216_v7, %v3130_v51  ;;  %4360 = vmatmul.mubr.f32.vlgmr.msra.gmra.mxu0 %v3172_v44 }
 0x3ca   : > { %v3068_v19 = vpop.f32.mrf.mxu1 }
 0x3cb   : > { %v3173_v22 = vmax.f32 %v3155_v57, 0.0  ;;  %v3131_v60 = vadd.f32 %v3068_v19, %v6169_v53 }
 0x3cc   : > { %v4298_v4 = vpop.f32.mrf.mxu1 }
 0x3cd   : > { %v3156_v56 = vadd.f32 %v6216_v7, %v3131_v60  ;;  %4362 = vmatprep.mubr.f32.mxu0 %v3173_v22 }
 0x3ce   : > { %v3073_v9 = vpop.f32.mrf.mxu1 }
 0x3cf   : > { %v3174_v16 = vmax.f32 %v3156_v56, 0.0  ;;  %v3132_v8 = vadd.f32 %v3073_v9, %v6172_v5 }
 0x3d0   : > { %v4301_v6 = vpop.f32.mrf.mxu1 }
 0x3d1   : > { %v3157_v1 = vadd.f32 %v6216_v7, %v3132_v8  ;;  %4363 = vmatmul.mubr.f32.gmra.mxu0 %v3174_v16 }
 0x3d2   : > { %v3076_v52 = vpop.f32.mrf.mxu1 }
 0x3d3   : > { %v3175_v29 = vmax.f32 %v3157_v1, 0.0  ;;  %v3133_v45 = vadd.f32 %v3076_v52, %v6175_v49 }
 0x3d4   : > { %v4302_v39 = vpop.f32.mrf.mxu1 }
 0x3d5   : > { %v3158_v18 = vadd.f32 %v6216_v7, %v3133_v45  ;;  %4365 = vmatprep.mubr.f32.mxu0 %v3175_v29 }
 0x3d6   : > { %v3081_v53 = vpop.f32.mrf.mxu1 }
 0x3d7   : > { %v3176_v20 = vmax.f32 %v3158_v18, 0.0  ;;  %v3134_v0 = vadd.f32 %v3081_v53, %v6178_v55 }
 0x3d8   : > { %v4305_v59 = vpop.f32.mrf.mxu1 }
 0x3d9   : > { %v3159_v50 = vadd.f32 %v6216_v7, %v3134_v0  ;;  %4366 = vmatmul.mubr.f32.gmra.mxu0 %v3176_v20 }
 0x3da   : > { %v3084_v5 = vpop.f32.mrf.mxu1 }
 0x3db   : > { %v3177_v27 = vmax.f32 %v3159_v50, 0.0  ;;  %v3135_v36 = vadd.f32 %v3084_v5, %v6181_v46 }
 0x3dc   : > { %v4306_v61 = vpop.f32.mrf.mxu1 }
 0x3dd   : > { %v3160_v28 = vadd.f32 %v6216_v7, %v3135_v36  ;;  %4368 = vmatprep.mubr.f32.mxu0 %v3177_v27 }
 0x3de   : > { %v3089_v49 = vpop.f32.mrf.mxu1 }
 0x3df   : > { %v3178_v25 = vmax.f32 %v3160_v28, 0.0  ;;  %v3136_v3 = vadd.f32 %v3089_v49, %v6184_v2 }
 0x3e0   : > { %v4309_v32 = vpop.f32.mrf.mxu1 }
 0x3e1   : > { %v3161_v38 = vadd.f32 %v6216_v7, %v3136_v3  ;;  %4369 = vmatmul.mubr.f32.gmra.mxu0 %v3178_v25 }
 0x3e2   : > { %v3092_v55 = vpop.f32.mrf.mxu1 }
 0x3e3   : > { %v3179_v34 = vmax.f32 %v3161_v38, 0.0  ;;  %v3137_v14 = vadd.f32 %v3092_v55, %v6187_v54 }
 0x3e4   : > { %v4310_v15 = vpop.f32.mrf.mxu1 }
 0x3e5   : > { %v3162_v41 = vadd.f32 %v6216_v7, %v3137_v14  ;;  %4371 = vmatprep.mubr.f32.mxu0 %v3179_v34 }
 0x3e6   : > { %v3097_v46 = vpop.f32.mrf.mxu1 }
 0x3e7   : > { %v3180_v21 = vmax.f32 %v3162_v41, 0.0  ;;  %v3138_v13 = vadd.f32 %v3097_v46, %v6190_v40 }
 0x3e8   : > { %v4313_v35 = vpop.f32.mrf.mxu1 }
 0x3e9   : > { %v3163_v17 = vadd.f32 %v6216_v7, %v3138_v13  ;;  %4372 = vmatmul.mubr.f32.gmra.mxu0 %v3180_v21 }
 0x3ea   : > { %v3100_v2 = vpop.f32.mrf.mxu1 }
 0x3eb   : > { %v3181_v43 = vmax.f32 %v3163_v17, 0.0  ;;  %v3139_v26 = vadd.f32 %v3100_v2, %v6193_v23 }
 0x3ec   : > { %v4314_v63 = vpop.f32.mrf.mxu1 }
 0x3ed   : > { %v3164_v24 = vadd.f32 %v6216_v7, %v3139_v26  ;;  %4374 = vmatprep.mubr.f32.mxu1 %v3181_v43 }
 0x3ee   : > { %v3105_v54 = vpop.f32.mrf.mxu1 }
 0x3ef   : > { %v3182_v30 = vmax.f32 %v3164_v24, 0.0  ;;  %v3140_v58 = vadd.f32 %v3105_v54, %v6196_v12 }
 0x3f0   : > { %v4317_v11 = vpop.f32.mrf.mxu1 }
 0x3f1   : > { %v3165_v42 = vadd.f32 %v6216_v7, %v3140_v58  ;;  %4375 = vmatmul.mubr.f32.vlgmr.msra.gmra.mxu1 %v3182_v30 }
 0x3f2   : > { %v3108_v40 = vpop.f32.mrf.mxu1 }
 0x3f3   : > { %v3183_v47 = vmax.f32 %v3165_v42, 0.0  ;;  %v3141_v44 = vadd.f32 %v3108_v40, %v6199_v48 }
 0x3f4   : > { %v4318_v51 = vpop.f32.mrf.mxu1 }
 0x3f5   : > { %v3166_v33 = vadd.f32 %v6216_v7, %v3141_v44  ;;  %4377 = vmatprep.mubr.f32.mxu1 %v3183_v47 }
 0x3f6   : > { %v3113_v23 = vpop.f32.mrf.mxu1 }
 0x3f7   : > { %v3184_v57 = vmax.f32 %v3166_v33, 0.0  ;;  %v3142_v19 = vadd.f32 %v3113_v23, %v6202_v37 }
 0x3f8   : > { %v4321_v22 = vpop.f32.mrf.mxu1 }
 0x3f9   : > { %v3167_v60 = vadd.f32 %v6216_v7, %v3142_v19  ;;  %4378 = vmatmul.mubr.f32.gmra.mxu1 %v3184_v57 }
 0x3fa   : > { %v3116_v12 = vpop.f32.mrf.mxu1 }
 0x3fb   : > { %v3185_v4 = vmax.f32 %v3167_v60, 0.0  ;;  %v3143_v56 = vadd.f32 %v3116_v12, %v6205_v31 }
 0x3fc   : > { %v4322_v9 = vpop.f32.mrf.mxu1 }
 0x3fd   : > { %v3168_v16 = vadd.f32 %v6216_v7, %v3143_v56  ;;  %4380 = vmatprep.mubr.f32.mxu1 %v3185_v4 }
 0x3fe   : > { %v3121_v48 = vpop.f32.mrf.mxu1 }
 0x3ff   : > { %v3186_v8 = vmax.f32 %v3168_v16, 0.0  ;;  %v3144_v6 = vadd.f32 %v3121_v48, %v6208_v10  ;;  %v3669_v10 = vld [vmem:[%s6311_s8] ss:$0 sm:$0xff] }
 0x400   : > { %v4325_v1 = vpop.f32.mrf.mxu1 }
 0x401   : > { %v3169_v37 = vadd.f32 %v6216_v7, %v3144_v6  ;;  %4381 = vmatmul.mubr.f32.gmra.mxu1 %v3186_v8 }
 0x402   : > { %v3124_v52 = vpop.f32.mrf.mxu1 }
 0x403   : > { %v3187_v29 = vmax.f32 %v3169_v37, 0.0  ;;  %v3145_v45 = vadd.f32 %v3124_v52, %v6211_v62 }
 0x404   : > { %v4326_v39 = vpop.f32.mrf.mxu1 }
 0x405   : > { %v3170_v31 = vadd.f32 %v6216_v7, %v3145_v45  ;;  %4383 = vmatprep.mubr.f32.mxu1 %v3187_v29 }
 0x407   : > { %v3188_v18 = vmax.f32 %v3170_v31, 0.0 }
 0x409   : > { %4384 = vmatmul.mubr.f32.gmra.mxu1 %v3188_v18 }
 0x489   : > { %v4361_v62 = vpop.f32.mrf.mxu0 }
 0x48a   : > { %v3284_v7 = vadd.f32 %v4361_v62, %v3669_v10 }
 0x48b   : > { %v3278_v53 = vpop.f32.mrf.mxu0 }
 0x48c   : > { %3369 = vst.msk [vmem:[%s6262_s29 + $0x8] sm:$0xff] %vm3367_vm10, %v3284_v7  ;;  %v3279_v20 = vadd.f32 %v3669_v10, %v3278_v53 }
 0x48e   : > { %3368 = vst.msk [vmem:[%s6262_s29] sm:$0xff] %vm3367_vm10, %v3279_v20 }
 0x491   : > { %v4364_v0 = vpop.f32.mrf.mxu0 }
 0x492   : > { %v3294_v59 = vadd.f32 %v4364_v0, %v3669_v10 }
 0x493   : > { %v3288_v50 = vpop.f32.mrf.mxu0 }
 0x494   : > { %3371 = vst.msk [vmem:[%s6262_s29 + $0x18] sm:$0xff] %vm3367_vm10, %v3294_v59  ;;  %v3289_v5 = vadd.f32 %v3669_v10, %v3288_v50 }
 0x496   : > { %3370 = vst.msk [vmem:[%s6262_s29 + $0x10] sm:$0xff] %vm3367_vm10, %v3289_v5 }
 0x499   : > { %v4367_v27 = vpop.f32.mrf.mxu0 }
 0x49a   : > { %v3304_v36 = vadd.f32 %v4367_v27, %v3669_v10 }
 0x49b   : > { %v3298_v61 = vpop.f32.mrf.mxu0 }
 0x49c   : > { %3373 = vst.msk [vmem:[%s6262_s29 + $0x28] sm:$0xff] %vm3367_vm10, %v3304_v36  ;;  %v3299_v28 = vadd.f32 %v3669_v10, %v3298_v61 }
 0x49e   : > { %3372 = vst.msk [vmem:[%s6262_s29 + $0x20] sm:$0xff] %vm3367_vm10, %v3299_v28 }
 0x4a1   : > { %v4370_v49 = vpop.f32.mrf.mxu0 }
 0x4a2   : > { %v3314_v25 = vadd.f32 %v4370_v49, %v3669_v10 }
 0x4a3   : > { %v3308_v3 = vpop.f32.mrf.mxu0 }
 0x4a4   : > { %3375 = vst.msk [vmem:[%s6262_s29 + $0x38] sm:$0xff] %vm3367_vm10, %v3314_v25  ;;  %v3309_v32 = vadd.f32 %v3669_v10, %v3308_v3 }
 0x4a6   : > { %3374 = vst.msk [vmem:[%s6262_s29 + $0x30] sm:$0xff] %vm3367_vm10, %v3309_v32 }
 0x4a9   : > { %v4373_v38 = vpop.f32.mrf.mxu0 }
 0x4aa   : > { %v3324_v55 = vadd.f32 %v4373_v38, %v3669_v10 }
 0x4ab   : > { %v3318_v34 = vpop.f32.mrf.mxu0 }
 0x4ac   : > { %3377 = vst.msk [vmem:[%s6262_s29 + $0x48] sm:$0xff] %vm3367_vm10, %v3324_v55  ;;  %v3319_v14 = vadd.f32 %v3669_v10, %v3318_v34 }
 0x4ae   : > { %3376 = vst.msk [vmem:[%s6262_s29 + $0x40] sm:$0xff] %vm3367_vm10, %v3319_v14 }
 0x4b1   : > { %v4376_v15 = vpop.f32.mrf.mxu1 }
 0x4b2   : > { %v3334_v41 = vadd.f32 %v4376_v15, %v3669_v10 }
 0x4b3   : > { %v3328_v46 = vpop.f32.mrf.mxu1 }
 0x4b4   : > { %3379 = vst.msk [vmem:[%s6262_s29 + $0x58] sm:$0xff] %vm3367_vm10, %v3334_v41  ;;  %v3329_v21 = vadd.f32 %v3669_v10, %v3328_v46 }
 0x4b6   : > { %3378 = vst.msk [vmem:[%s6262_s29 + $0x50] sm:$0xff] %vm3367_vm10, %v3329_v21 }
 0x4b9   : > { %v4379_v13 = vpop.f32.mrf.mxu1 }
 0x4ba   : > { %v3344_v35 = vadd.f32 %v4379_v13, %v3669_v10 }
 0x4bb   : > { %v3338_v17 = vpop.f32.mrf.mxu1 }
 0x4bc   : > { %3381 = vst.msk [vmem:[%s6262_s29 + $0x68] sm:$0xff] %vm3367_vm10, %v3344_v35  ;;  %v3339_v2 = vadd.f32 %v3669_v10, %v3338_v17 }
 0x4be   : > { %3380 = vst.msk [vmem:[%s6262_s29 + $0x60] sm:$0xff] %vm3367_vm10, %v3339_v2 }
 0x4c1   : > { %v4382_v43 = vpop.f32.mrf.mxu1 }
 0x4c2   : > { %v3354_v26 = vadd.f32 %v4382_v43, %v3669_v10 }
 0x4c3   : > { %v3348_v63 = vpop.f32.mrf.mxu1 }
 0x4c4   : > { %3383 = vst.msk [vmem:[%s6262_s29 + $0x78] sm:$0xff] %vm3367_vm10, %v3354_v26  ;;  %v3349_v24 = vadd.f32 %v3669_v10, %v3348_v63 }
 0x4c6   : > { %3382 = vst.msk [vmem:[%s6262_s29 + $0x70] sm:$0xff] %vm3367_vm10, %v3349_v24 }
 0x4c9   : > { %v4385_v54 = vpop.f32.mrf.mxu1 }
 0x4ca   : > { %v3364_v30 = vadd.f32 %v4385_v54, %v3669_v10 }
 0x4cb   : > { %v3358_v58 = vpop.f32.mrf.mxu1 }
 0x4cc   : > { %3385 = vst.msk [vmem:[%s6262_s29 + $0x88] sm:$0xff] %vm3367_vm10, %v3364_v30  ;;  %v3359_v11 = vadd.f32 %v3669_v10, %v3358_v58 }
 0x4ce   : > { %3384 = vst.msk [vmem:[%s6262_s29 + $0x80] sm:$0xff] %vm3367_vm10, %v3359_v11 }
 0x4cf PF: > { %s19_s30 = sadd.s32 1, %s4574_s30  }
 0x4d0   : > { %p16_p4 = scmp.ge.s32.totalorder %s19_s30, 4  }
 0x4d2   :  { %18 = sbr.rel (!%p16_p4) target bundleno = 1 (0x1), region = 93 }

</bundles_post_ra>
